<compile_context>
chip_gen: v7x
topology: tpu7x:2x2x1
jax: 0.10.0
libtpu: 0.0.40
codegen_flags: <defaults>
</compile_context>

<pallas_src>
import functools
import math
from typing import Dict, List

import jax
import jax.numpy as jnp
import numpy as np
from jax.experimental import pallas as pl
from jax.experimental.pallas import tpu as pltpu


# ----------------------------------------------------------------------------
# Model geometry (fixed by the synthetic detector definition)
# ----------------------------------------------------------------------------
NUM_CLASSES = 8
NUM_ANCHORS = 3
IMG_SIZE = 32
STRIDE = 4                       # 32 -> 16 -> 8 grid
H1 = IMG_SIZE // 2               # conv1 output spatial size (16)
H2 = IMG_SIZE // 4               # conv2 / head output spatial size (8)
C1, C2 = 16, 32                  # conv1 / conv2 output channels
PRED = 5 + NUM_CLASSES           # 13 fields per anchor
POS1 = H1 * H1                   # 256 conv1 output positions / image
POS2 = H2 * H2                   # 64 head positions / image
TAPS = 9                         # 3x3 conv taps
PAD1 = IMG_SIZE + 2              # padded input spatial size (34)
ANCHORS = ((10.0, 13.0), (16.0, 30.0), (33.0, 23.0))


def _silu(x):
    return x * jax.nn.sigmoid(x)


def _pick_grid(batch_size: int):
    """Steps x images/step: 1 fat step on 1-TC chips, >=2 parallel steps on v7x."""
    multi_tc = False
    try:
        kind = jax.devices()[0].device_kind.lower()
        multi_tc = "v7" in kind
    except Exception:
        pass
    n_steps = 2 if (multi_tc and batch_size >= 2) else 1
    imgs = max(1, math.ceil(batch_size / n_steps))
    imgs = min(imgs, 8)                      # keep per-step working set small
    n_steps = max(1, math.ceil(batch_size / imgs))
    return n_steps, imgs


# ----------------------------------------------------------------------------
# Fused Pallas kernel: conv1 -> conv2 -> head -> decode, `imgs` images per step
# ----------------------------------------------------------------------------
def _fused_yolo_kernel(patches_ref, w1_ref, b1_ref, s2_ref, w2_ref, b2_ref,
                       w3_ref, b3_ref, gxy_ref, awh_ref, out_ref, *,
                       imgs, stride, conf, num_classes, num_anchors, out_w):
    W = imgs * num_anchors                  # lane width of one decode field

    # ---- conv1 (3->16, 3x3 s2): block-diag weights, all images in one dot ---
    patches = patches_ref[0]                                   # (256, I*27) bf16
    h1 = jnp.dot(patches, w1_ref[...], preferred_element_type=jnp.float32)
    h1 = _silu(h1 + b1_ref[...])                               # (256, I*16) f32

    # ---- conv2 (16->32, 3x3 s2) ---------------------------------------------
    # Spatial gather on the MXU: rows of S2 are (tap, out-pos); all-zero rows
    # realize the conv's zero padding.
    g = jnp.dot(s2_ref[...], h1.astype(jnp.bfloat16),
                preferred_element_type=jnp.float32)            # (9*64, I*16)
    g = g.astype(jnp.bfloat16)
    # Fold the tap axis onto lanes (9 sublane-aligned slices + one lane concat)
    # so the 9 per-tap matmuls collapse into a single K = 9*I*16 dot.
    gcat = jnp.concatenate(
        [g[t * POS2:(t + 1) * POS2, :] for t in range(TAPS)], axis=1)
    h2 = jnp.dot(gcat, w2_ref[...], preferred_element_type=jnp.float32)
    h2 = _silu(h2 + b2_ref[...])                               # (64, I*32) f32

    # ---- 1x1 head, field-major (field, image, anchor) lane layout -----------
    head = jnp.dot(h2.astype(jnp.bfloat16), w3_ref[...],
                   preferred_element_type=jnp.float32) + b3_ref[...]
    sig = jax.nn.sigmoid(head)                                 # (64, 13*W): one EUP pass

    # ---- YOLO decode, vectorized over all images x anchors ------------------
    tx = sig[:, 0 * W:1 * W]
    ty = sig[:, 1 * W:2 * W]
    tw = sig[:, 2 * W:3 * W]
    th = sig[:, 3 * W:4 * W]
    obj = sig[:, 4 * W:5 * W]

    gx = gxy_ref[:, 0:1]                                       # (64, 1)
    gy = gxy_ref[:, 1:2]
    x = (tx * 2.0 - 0.5 + gx) * stride
    y = (ty * 2.0 - 0.5 + gy) * stride
    awh = awh_ref[...]                                         # (2, W)
    half_w = (tw * 2.0) ** 2 * awh[0:1, :] * 0.5
    half_h = (th * 2.0) ** 2 * awh[1:2, :] * 0.5

    best = sig[:, 5 * W:6 * W]
    for c in range(1, num_classes):
        best = jnp.maximum(best, sig[:, (5 + c) * W:(6 + c) * W])
    label = jnp.full_like(best, float(num_classes))
    for c in range(num_classes - 1, -1, -1):   # reverse -> first argmax wins
        label = jnp.where(sig[:, (5 + c) * W:(6 + c) * W] >= best,
                          float(c), label)
    score = obj * best
    valid = (score > conf).astype(jnp.float32)

    pad = jnp.zeros((POS2, out_w - 7 * W), jnp.float32)
    # Single lane-dense store: [x1|y1|x2|y2|score|label|valid|zeros] blocks of
    # width W each, zero-padded to a multiple of 128 lanes.
    out_ref[0] = jnp.concatenate(
        [x - half_w, y - half_h, x + half_w, y + half_h, score, label, valid,
         pad], axis=-1)


# ----------------------------------------------------------------------------
# Detector wrapper (mirrors the torch module's batching + result formatting)
# ----------------------------------------------------------------------------
class YOLODetectorPallas:
    NUM_CLASSES = NUM_CLASSES
    NUM_ANCHORS = NUM_ANCHORS
    IMG_SIZE = IMG_SIZE
    STRIDE = STRIDE

    def __init__(self, batch_size=4, confidence=0.5):
        self.batch_size = int(batch_size)
        self.confidence = float(confidence)
        self.n_steps, self.imgs = _pick_grid(self.batch_size)
        self.padded_batch = self.n_steps * self.imgs
        self.out_w = max(128, int(math.ceil(8 * self.imgs * NUM_ANCHORS / 128)) * 128)
        self._init_params()
        self._jit_run = jax.jit(self._run_batch_impl)

    def _init_params(self):
        I = self.imgs
        rng = np.random.RandomState(0)
        # TODO(synk): the reference loads pretrained yolov5s via torch.hub
        # (network download); a deterministic synthetic yolov5-style
        # conv(3->16,s2) -> conv(16->32,s2) -> 1x1 head is used instead.
        w1 = (rng.randn(3, 3, 3, C1) * 0.1).astype(np.float32)      # (kh,kw,cin,c1)
        w2 = (rng.randn(3, 3, C1, C2) * 0.1).astype(np.float32)
        w3 = (rng.randn(C2, NUM_ANCHORS, PRED) * 0.1).astype(np.float32)
        b1 = np.zeros((C1,), np.float32)
        b2 = np.zeros((C2,), np.float32)
        b3 = np.zeros((NUM_ANCHORS, PRED), np.float32)

        # conv1 weights, block-diagonal over the images stacked on lanes.
        w1_mat = w1.reshape(TAPS * 3, C1)                            # rows = t*3 + cin
        self.W1_bd = jnp.asarray(np.kron(np.eye(I, dtype=np.float32), w1_mat),
                                 jnp.bfloat16)                       # (I*27, I*16)
        self.b1_s = jnp.asarray(np.tile(b1, I)[None, :], jnp.float32)

        # conv2 spatial 0/1 gather matrix (tap-major rows), shared by all images.
        s2 = np.zeros((TAPS * POS2, POS1), np.float32)
        for di in range(3):
            for dj in range(3):
                t = di * 3 + dj
                for oy in range(H2):
                    for ox in range(H2):
                        ry, rx = 2 * oy + di - 1, 2 * ox + dj - 1
                        if 0 <= ry < H1 and 0 <= rx < H1:
                            s2[t * POS2 + oy * H2 + ox, ry * H1 + rx] = 1.0
        self.S2 = jnp.asarray(s2, jnp.bfloat16)                      # (576, 256)

        # conv2 weights for the single merged dot: rows = (tap, image, c1).
        w2_t = w2.reshape(TAPS, C1, C2)
        eye_i = np.eye(I, dtype=np.float32)
        W2_big = np.zeros((TAPS * I * C1, I * C2), np.float32)
        for t in range(TAPS):
            W2_big[t * I * C1:(t + 1) * I * C1, :] = np.kron(eye_i, w2_t[t])
        self.W2_big = jnp.asarray(W2_big, jnp.bfloat16)              # (9*I*16, I*32)
        self.b2_s = jnp.asarray(np.tile(b2, I)[None, :], jnp.float32)

        # 1x1 head weights, columns reordered field-major: lane = f*(I*3)+i*3+a
        # so the decode vectorizes over all images x anchors at once.
        Wd = I * NUM_ANCHORS
        W3_arr = np.zeros((I * C2, PRED * Wd), np.float32)
        b3_s = np.zeros((1, PRED * Wd), np.float32)
        for i in range(I):
            for a in range(NUM_ANCHORS):
                for f in range(PRED):
                    col = f * Wd + i * NUM_ANCHORS + a
                    W3_arr[i * C2:(i + 1) * C2, col] = w3[:, a, f]
                    b3_s[0, col] = b3[a, f]
        self.W3_arr = jnp.asarray(W3_arr, jnp.bfloat16)              # (I*32, 13*I*3)
        self.b3_s = jnp.asarray(b3_s, jnp.float32)

        # grid-cell coordinates per head position and anchor sizes per lane.
        yy, xx = np.meshgrid(np.arange(H2), np.arange(H2), indexing="ij")
        self.gxy = jnp.asarray(
            np.stack([xx, yy], -1).reshape(POS2, 2).astype(np.float32))
        aw = np.tile(np.asarray([a[0] for a in ANCHORS], np.float32), I)
        ah = np.tile(np.asarray([a[1] for a in ANCHORS], np.float32), I)
        self.awh = jnp.asarray(np.stack([aw, ah], 0))                # (2, I*3)

        # conv1 im2col gather indices into the zero-padded (34x34) image,
        # ordered (out position, tap): one XLA gather replaces pad+9 slices+concat.
        idx = np.zeros((POS1, TAPS), np.int32)
        for oy in range(H1):
            for ox in range(H1):
                for di in range(3):
                    for dj in range(3):
                        idx[oy * H1 + ox, di * 3 + dj] = \
                            (2 * oy + di) * PAD1 + (2 * ox + dj)
        self.patch_idx = jnp.asarray(idx.reshape(-1))                # (256*9,)

    # -- jitted batch path: one gather of conv1 patches + the fused kernel ----
    def _run_batch_impl(self, x_nchw):
        S, I = self.n_steps, self.imgs
        xpad = jnp.pad(x_nchw, ((0, 0), (0, 0), (1, 1), (1, 1)))     # (B,3,34,34)
        flat = xpad.reshape(self.padded_batch, 3, PAD1 * PAD1)
        g = jnp.take(flat, self.patch_idx, axis=2)                   # (B,3,256*9)
        patches = (g.reshape(S, I, 3, POS1, TAPS)
                    .transpose(0, 3, 1, 4, 2)                        # (S,256,I,9,3)
                    .reshape(S, POS1, I * TAPS * 3)
                    .astype(jnp.bfloat16))

        kernel = functools.partial(
            _fused_yolo_kernel, imgs=I, stride=float(self.STRIDE),
            conf=self.confidence, num_classes=NUM_CLASSES,
            num_anchors=NUM_ANCHORS, out_w=self.out_w)

        c27, c16, c32 = I * TAPS * 3, I * C1, I * C2
        wd = I * NUM_ANCHORS
        out = pl.pallas_call(
            kernel,
            out_shape=jax.ShapeDtypeStruct((S, POS2, self.out_w), jnp.float32),
            grid=(S,),
            in_specs=[
                pl.BlockSpec((1, POS1, c27), lambda s: (s, 0, 0)),
                pl.BlockSpec((c27, c16), lambda s: (0, 0)),
                pl.BlockSpec((1, c16), lambda s: (0, 0)),
                pl.BlockSpec((TAPS * POS2, POS1), lambda s: (0, 0)),
                pl.BlockSpec((TAPS * c16, c32), lambda s: (0, 0)),
                pl.BlockSpec((1, c32), lambda s: (0, 0)),
                pl.BlockSpec((c32, PRED * wd), lambda s: (0, 0)),
                pl.BlockSpec((1, PRED * wd), lambda s: (0, 0)),
                pl.BlockSpec((POS2, 2), lambda s: (0, 0)),
                pl.BlockSpec((2, wd), lambda s: (0, 0)),
            ],
            out_specs=pl.BlockSpec((1, POS2, self.out_w), lambda s: (s, 0, 0)),
            compiler_params=pltpu.CompilerParams(
                dimension_semantics=("parallel",)),
        )(patches, self.W1_bd, self.b1_s, self.S2, self.W2_big, self.b2_s,
          self.W3_arr, self.b3_s, self.gxy, self.awh)
        return out                                                   # (S, 64, out_w)

    def forward(self, images: List[jnp.ndarray]) -> List[Dict[str, np.ndarray]]:
        results = []
        for i0 in range(0, len(images), self.batch_size):
            chunk = images[i0:i0 + self.batch_size]
            nb = len(chunk)
            batch = jnp.stack(list(chunk), axis=0).astype(jnp.float32)
            if nb < self.padded_batch:
                batch = jnp.pad(
                    batch, ((0, self.padded_batch - nb), (0, 0), (0, 0), (0, 0)))
            out = np.asarray(jax.block_until_ready(self._jit_run(batch)))
            wd = self.imgs * NUM_ANCHORS
            # (S, 64, out_w) -> (B, position*anchor, 8 fields)
            packed = (out[:, :, :8 * wd]
                      .reshape(self.n_steps, POS2, 8, self.imgs, NUM_ANCHORS)
                      .transpose(0, 3, 1, 4, 2)
                      .reshape(self.padded_batch, POS2 * NUM_ANCHORS, 8))
            # TODO(synk): NMS (dynamic-length, data-dependent) has no clean
            # Pallas equivalent; only the confidence threshold is applied.
            for b in range(nb):
                keep = packed[b, :, 6] > 0.5
                if keep.any():
                    results.append({
                        "boxes": packed[b, keep, 0:4].astype(np.float32),
                        "scores": packed[b, keep, 4].astype(np.float32),
                        "labels": packed[b, keep, 5].astype(np.int64),
                    })
                else:
                    results.append({
                        "boxes": np.empty((0, 4), np.float32),
                        "scores": np.empty((0,), np.float32),
                        "labels": np.empty((0,), np.int64),
                    })
        return results

    __call__ = forward


if __name__ == "__main__":
    key = jax.random.PRNGKey(0)
    img_keys = jax.random.split(key, 2)
    images = [jax.random.uniform(k, (3, IMG_SIZE, IMG_SIZE), jnp.float32)
              for k in img_keys]

    detector = YOLODetectorPallas(batch_size=4, confidence=0.5)
    results = detector(images)

    assert len(results) == len(images)
    for r in results:
        assert r["boxes"].ndim == 2 and r["boxes"].shape[1] == 4
        assert r["scores"].ndim == 1
        assert r["labels"].dtype == np.int64
    print("KERNEL_OK")
</pallas_src>

<mosaic_0001>
module attributes {stable_mosaic.version = 11 : i64} {
  func.func @_fused_yolo_kernel(%arg0: i32, %arg1: memref<1x256x108xbf16, #tpu.memory_space<vmem>>, %arg2: memref<108x64xbf16, #tpu.memory_space<vmem>>, %arg3: memref<1x64xf32, #tpu.memory_space<vmem>>, %arg4: memref<576x256xbf16, #tpu.memory_space<vmem>>, %arg5: memref<576x128xbf16, #tpu.memory_space<vmem>>, %arg6: memref<1x128xf32, #tpu.memory_space<vmem>>, %arg7: memref<128x156xbf16, #tpu.memory_space<vmem>>, %arg8: memref<1x156xf32, #tpu.memory_space<vmem>>, %arg9: memref<64x2xf32, #tpu.memory_space<vmem>>, %arg10: memref<2x12xf32, #tpu.memory_space<vmem>>, %arg11: memref<1x64x128xf32, #tpu.memory_space<vmem>>) attributes {dimension_semantics = [#tpu.dimension_semantics<parallel>], iteration_bounds = array<i64: 1>, scalar_prefetch = 0 : i64, scratch_operands = 0 : i64, tpu.core_type = #tpu.core_type<tc>, window_params = [{transform_indices = @transform_0, window_bounds = array<i64: 1, 256, 108>}, {pipeline_mode = #tpu.pipeline_mode<synchronous>, transform_indices = @transform_1, window_bounds = array<i64: 108, 64>}, {pipeline_mode = #tpu.pipeline_mode<synchronous>, transform_indices = @transform_2, window_bounds = array<i64: 1, 64>}, {pipeline_mode = #tpu.pipeline_mode<synchronous>, transform_indices = @transform_3, window_bounds = array<i64: 576, 256>}, {pipeline_mode = #tpu.pipeline_mode<synchronous>, transform_indices = @transform_4, window_bounds = array<i64: 576, 128>}, {pipeline_mode = #tpu.pipeline_mode<synchronous>, transform_indices = @transform_5, window_bounds = array<i64: 1, 128>}, {pipeline_mode = #tpu.pipeline_mode<synchronous>, transform_indices = @transform_6, window_bounds = array<i64: 128, 156>}, {pipeline_mode = #tpu.pipeline_mode<synchronous>, transform_indices = @transform_7, window_bounds = array<i64: 1, 156>}, {pipeline_mode = #tpu.pipeline_mode<synchronous>, transform_indices = @transform_8, window_bounds = array<i64: 64, 2>}, {pipeline_mode = #tpu.pipeline_mode<synchronous>, transform_indices = @transform_9, window_bounds = array<i64: 2, 12>}, {transform_indices = @transform_10, window_bounds = array<i64: 1, 64, 128>}]} {
    %c0 = arith.constant 0 : index
    %c0_0 = arith.constant 0 : index
    %c0_1 = arith.constant 0 : index
    %0 = vector.load %arg1[%c0, %c0_0, %c0_1] : memref<1x256x108xbf16, #tpu.memory_space<vmem>>, vector<1x256x108xbf16>
    %1 = vector.shape_cast %0 : vector<1x256x108xbf16> to vector<256x108xbf16>
    %c0_2 = arith.constant 0 : index
    %c0_3 = arith.constant 0 : index
    %2 = vector.load %arg2[%c0_2, %c0_3] : memref<108x64xbf16, #tpu.memory_space<vmem>>, vector<108x64xbf16>
    %cst = arith.constant dense<0.000000e+00> : vector<256x64xf32>
    %3 = tpu.matmul %1, %2, %cst {dimension_numbers = #tpu.dot_dimension_numbers<[1], [0], [0], [1], [0, 0, 1, 1], [], []>} : vector<256x108xbf16>, vector<108x64xbf16>, vector<256x64xf32> -> vector<256x64xf32>
    %c0_4 = arith.constant 0 : index
    %c0_5 = arith.constant 0 : index
    %4 = vector.load %arg3[%c0_4, %c0_5] : memref<1x64xf32, #tpu.memory_space<vmem>>, vector<1x64xf32>
    %5 = vector.broadcast %4 : vector<1x64xf32> to vector<256x64xf32>
    %6 = arith.addf %3, %5 : vector<256x64xf32>
    %7 = arith.negf %6 : vector<256x64xf32>
    %8 = math.exp %7 : vector<256x64xf32>
    %cst_6 = arith.constant 1.000000e+00 : f32
    %9 = vector.broadcast %cst_6 : f32 to vector<256x64xf32>
    %10 = arith.addf %9, %8 : vector<256x64xf32>
    %11 = arith.divf %9, %10 : vector<256x64xf32>
    %12 = arith.mulf %6, %11 : vector<256x64xf32>
    %c0_7 = arith.constant 0 : index
    %c0_8 = arith.constant 0 : index
    %13 = vector.load %arg4[%c0_7, %c0_8] : memref<576x256xbf16, #tpu.memory_space<vmem>>, vector<576x256xbf16>
    %14 = arith.truncf %12 : vector<256x64xf32> to vector<256x64xbf16>
    %cst_9 = arith.constant dense<0.000000e+00> : vector<576x64xf32>
    %15 = tpu.matmul %13, %14, %cst_9 {dimension_numbers = #tpu.dot_dimension_numbers<[1], [0], [0], [1], [0, 0, 1, 1], [], []>} : vector<576x256xbf16>, vector<256x64xbf16>, vector<576x64xf32> -> vector<576x64xf32>
    %16 = arith.truncf %15 : vector<576x64xf32> to vector<576x64xbf16>
    %17 = vector.extract_strided_slice %16 {offsets = [0, 0], sizes = [64, 64], strides = [1, 1]} : vector<576x64xbf16> to vector<64x64xbf16>
    %18 = vector.extract_strided_slice %16 {offsets = [64, 0], sizes = [64, 64], strides = [1, 1]} : vector<576x64xbf16> to vector<64x64xbf16>
    %19 = vector.extract_strided_slice %16 {offsets = [128, 0], sizes = [64, 64], strides = [1, 1]} : vector<576x64xbf16> to vector<64x64xbf16>
    %20 = vector.extract_strided_slice %16 {offsets = [192, 0], sizes = [64, 64], strides = [1, 1]} : vector<576x64xbf16> to vector<64x64xbf16>
    %21 = vector.extract_strided_slice %16 {offsets = [256, 0], sizes = [64, 64], strides = [1, 1]} : vector<576x64xbf16> to vector<64x64xbf16>
    %22 = vector.extract_strided_slice %16 {offsets = [320, 0], sizes = [64, 64], strides = [1, 1]} : vector<576x64xbf16> to vector<64x64xbf16>
    %23 = vector.extract_strided_slice %16 {offsets = [384, 0], sizes = [64, 64], strides = [1, 1]} : vector<576x64xbf16> to vector<64x64xbf16>
    %24 = vector.extract_strided_slice %16 {offsets = [448, 0], sizes = [64, 64], strides = [1, 1]} : vector<576x64xbf16> to vector<64x64xbf16>
    %25 = vector.extract_strided_slice %16 {offsets = [512, 0], sizes = [64, 64], strides = [1, 1]} : vector<576x64xbf16> to vector<64x64xbf16>
    %26 = tpu.concatenate %17, %18, %19, %20, %21, %22, %23, %24, %25 in 1 : vector<64x64xbf16>, vector<64x64xbf16>, vector<64x64xbf16>, vector<64x64xbf16>, vector<64x64xbf16>, vector<64x64xbf16>, vector<64x64xbf16>, vector<64x64xbf16>, vector<64x64xbf16> -> vector<64x576xbf16>
    %c0_10 = arith.constant 0 : index
    %c0_11 = arith.constant 0 : index
    %27 = vector.load %arg5[%c0_10, %c0_11] : memref<576x128xbf16, #tpu.memory_space<vmem>>, vector<576x128xbf16>
    %cst_12 = arith.constant dense<0.000000e+00> : vector<64x128xf32>
    %28 = tpu.matmul %26, %27, %cst_12 {dimension_numbers = #tpu.dot_dimension_numbers<[1], [0], [0], [1], [0, 0, 1, 1], [], []>} : vector<64x576xbf16>, vector<576x128xbf16>, vector<64x128xf32> -> vector<64x128xf32>
    %c0_13 = arith.constant 0 : index
    %c0_14 = arith.constant 0 : index
    %29 = vector.load %arg6[%c0_13, %c0_14] : memref<1x128xf32, #tpu.memory_space<vmem>>, vector<1x128xf32>
    %30 = vector.broadcast %29 : vector<1x128xf32> to vector<64x128xf32>
    %31 = arith.addf %28, %30 : vector<64x128xf32>
    %32 = arith.negf %31 : vector<64x128xf32>
    %33 = math.exp %32 : vector<64x128xf32>
    %cst_15 = arith.constant 1.000000e+00 : f32
    %34 = vector.broadcast %cst_15 : f32 to vector<64x128xf32>
    %35 = arith.addf %34, %33 : vector<64x128xf32>
    %36 = arith.divf %34, %35 : vector<64x128xf32>
    %37 = arith.mulf %31, %36 : vector<64x128xf32>
    %38 = arith.truncf %37 : vector<64x128xf32> to vector<64x128xbf16>
    %c0_16 = arith.constant 0 : index
    %c0_17 = arith.constant 0 : index
    %39 = vector.load %arg7[%c0_16, %c0_17] : memref<128x156xbf16, #tpu.memory_space<vmem>>, vector<128x156xbf16>
    %cst_18 = arith.constant dense<0.000000e+00> : vector<64x156xf32>
    %40 = tpu.matmul %38, %39, %cst_18 {dimension_numbers = #tpu.dot_dimension_numbers<[1], [0], [0], [1], [0, 0, 1, 1], [], []>} : vector<64x128xbf16>, vector<128x156xbf16>, vector<64x156xf32> -> vector<64x156xf32>
    %c0_19 = arith.constant 0 : index
    %c0_20 = arith.constant 0 : index
    %41 = vector.load %arg8[%c0_19, %c0_20] : memref<1x156xf32, #tpu.memory_space<vmem>>, vector<1x156xf32>
    %42 = vector.broadcast %41 : vector<1x156xf32> to vector<64x156xf32>
    %43 = arith.addf %40, %42 : vector<64x156xf32>
    %44 = arith.negf %43 : vector<64x156xf32>
    %45 = math.exp %44 : vector<64x156xf32>
    %cst_21 = arith.constant 1.000000e+00 : f32
    %46 = vector.broadcast %cst_21 : f32 to vector<64x156xf32>
    %47 = arith.addf %46, %45 : vector<64x156xf32>
    %48 = arith.divf %46, %47 : vector<64x156xf32>
    %49 = vector.extract_strided_slice %48 {offsets = [0, 0], sizes = [64, 12], strides = [1, 1]} : vector<64x156xf32> to vector<64x12xf32>
    %50 = vector.extract_strided_slice %48 {offsets = [0, 12], sizes = [64, 12], strides = [1, 1]} : vector<64x156xf32> to vector<64x12xf32>
    %51 = vector.extract_strided_slice %48 {offsets = [0, 24], sizes = [64, 12], strides = [1, 1]} : vector<64x156xf32> to vector<64x12xf32>
    %52 = vector.extract_strided_slice %48 {offsets = [0, 36], sizes = [64, 12], strides = [1, 1]} : vector<64x156xf32> to vector<64x12xf32>
    %53 = vector.extract_strided_slice %48 {offsets = [0, 48], sizes = [64, 12], strides = [1, 1]} : vector<64x156xf32> to vector<64x12xf32>
    %c0_22 = arith.constant 0 : index
    %c0_23 = arith.constant 0 : index
    %54 = vector.load %arg9[%c0_22, %c0_23] : memref<64x2xf32, #tpu.memory_space<vmem>>, vector<64x1xf32>
    %c0_24 = arith.constant 0 : index
    %c1 = arith.constant 1 : index
    %55 = vector.load %arg9[%c0_24, %c1] : memref<64x2xf32, #tpu.memory_space<vmem>>, vector<64x1xf32>
    %cst_25 = arith.constant 2.000000e+00 : f32
    %56 = vector.broadcast %cst_25 : f32 to vector<64x12xf32>
    %57 = arith.mulf %49, %56 : vector<64x12xf32>
    %cst_26 = arith.constant 5.000000e-01 : f32
    %58 = vector.broadcast %cst_26 : f32 to vector<64x12xf32>
    %59 = arith.subf %57, %58 : vector<64x12xf32>
    %60 = vector.broadcast %54 : vector<64x1xf32> to vector<64x12xf32>
    %61 = arith.addf %59, %60 : vector<64x12xf32>
    %cst_27 = arith.constant 4.000000e+00 : f32
    %62 = vector.broadcast %cst_27 : f32 to vector<64x12xf32>
    %63 = arith.mulf %61, %62 : vector<64x12xf32>
    %cst_28 = arith.constant 2.000000e+00 : f32
    %64 = vector.broadcast %cst_28 : f32 to vector<64x12xf32>
    %65 = arith.mulf %50, %64 : vector<64x12xf32>
    %cst_29 = arith.constant 5.000000e-01 : f32
    %66 = vector.broadcast %cst_29 : f32 to vector<64x12xf32>
    %67 = arith.subf %65, %66 : vector<64x12xf32>
    %68 = vector.broadcast %55 : vector<64x1xf32> to vector<64x12xf32>
    %69 = arith.addf %67, %68 : vector<64x12xf32>
    %cst_30 = arith.constant 4.000000e+00 : f32
    %70 = vector.broadcast %cst_30 : f32 to vector<64x12xf32>
    %71 = arith.mulf %69, %70 : vector<64x12xf32>
    %c0_31 = arith.constant 0 : index
    %c0_32 = arith.constant 0 : index
    %72 = vector.load %arg10[%c0_31, %c0_32] : memref<2x12xf32, #tpu.memory_space<vmem>>, vector<2x12xf32>
    %cst_33 = arith.constant 2.000000e+00 : f32
    %73 = vector.broadcast %cst_33 : f32 to vector<64x12xf32>
    %74 = arith.mulf %51, %73 : vector<64x12xf32>
    %75 = arith.mulf %74, %74 : vector<64x12xf32>
    %76 = vector.extract_strided_slice %72 {offsets = [0, 0], sizes = [1, 12], strides = [1, 1]} : vector<2x12xf32> to vector<1x12xf32>
    %77 = vector.broadcast %76 : vector<1x12xf32> to vector<64x12xf32>
    %78 = arith.mulf %75, %77 : vector<64x12xf32>
    %cst_34 = arith.constant 5.000000e-01 : f32
    %79 = vector.broadcast %cst_34 : f32 to vector<64x12xf32>
    %80 = arith.mulf %78, %79 : vector<64x12xf32>
    %cst_35 = arith.constant 2.000000e+00 : f32
    %81 = vector.broadcast %cst_35 : f32 to vector<64x12xf32>
    %82 = arith.mulf %52, %81 : vector<64x12xf32>
    %83 = arith.mulf %82, %82 : vector<64x12xf32>
    %84 = vector.extract_strided_slice %72 {offsets = [1, 0], sizes = [1, 12], strides = [1, 1]} : vector<2x12xf32> to vector<1x12xf32>
    %85 = vector.broadcast %84 : vector<1x12xf32> to vector<64x12xf32>
    %86 = arith.mulf %83, %85 : vector<64x12xf32>
    %cst_36 = arith.constant 5.000000e-01 : f32
    %87 = vector.broadcast %cst_36 : f32 to vector<64x12xf32>
    %88 = arith.mulf %86, %87 : vector<64x12xf32>
    %89 = vector.extract_strided_slice %48 {offsets = [0, 60], sizes = [64, 12], strides = [1, 1]} : vector<64x156xf32> to vector<64x12xf32>
    %90 = vector.extract_strided_slice %48 {offsets = [0, 72], sizes = [64, 12], strides = [1, 1]} : vector<64x156xf32> to vector<64x12xf32>
    %91 = arith.maximumf %89, %90 : vector<64x12xf32>
    %92 = vector.extract_strided_slice %48 {offsets = [0, 84], sizes = [64, 12], strides = [1, 1]} : vector<64x156xf32> to vector<64x12xf32>
    %93 = arith.maximumf %91, %92 : vector<64x12xf32>
    %94 = vector.extract_strided_slice %48 {offsets = [0, 96], sizes = [64, 12], strides = [1, 1]} : vector<64x156xf32> to vector<64x12xf32>
    %95 = arith.maximumf %93, %94 : vector<64x12xf32>
    %96 = vector.extract_strided_slice %48 {offsets = [0, 108], sizes = [64, 12], strides = [1, 1]} : vector<64x156xf32> to vector<64x12xf32>
    %97 = arith.maximumf %95, %96 : vector<64x12xf32>
    %98 = vector.extract_strided_slice %48 {offsets = [0, 120], sizes = [64, 12], strides = [1, 1]} : vector<64x156xf32> to vector<64x12xf32>
    %99 = arith.maximumf %97, %98 : vector<64x12xf32>
    %100 = vector.extract_strided_slice %48 {offsets = [0, 132], sizes = [64, 12], strides = [1, 1]} : vector<64x156xf32> to vector<64x12xf32>
    %101 = arith.maximumf %99, %100 : vector<64x12xf32>
    %102 = vector.extract_strided_slice %48 {offsets = [0, 144], sizes = [64, 12], strides = [1, 1]} : vector<64x156xf32> to vector<64x12xf32>
    %103 = arith.maximumf %101, %102 : vector<64x12xf32>
    %cst_37 = arith.constant 8.000000e+00 : f32
    %104 = vector.broadcast %cst_37 : f32 to vector<64x12xf32>
    %105 = vector.extract_strided_slice %48 {offsets = [0, 144], sizes = [64, 12], strides = [1, 1]} : vector<64x156xf32> to vector<64x12xf32>
    %106 = arith.cmpf oge, %105, %103 : vector<64x12xf32>
    %cst_38 = arith.constant 7.000000e+00 : f32
    %107 = vector.broadcast %cst_38 : f32 to vector<64x12xf32>
    %108 = arith.select %106, %107, %104 : vector<64x12xi1>, vector<64x12xf32>
    %109 = vector.extract_strided_slice %48 {offsets = [0, 132], sizes = [64, 12], strides = [1, 1]} : vector<64x156xf32> to vector<64x12xf32>
    %110 = arith.cmpf oge, %109, %103 : vector<64x12xf32>
    %cst_39 = arith.constant 6.000000e+00 : f32
    %111 = vector.broadcast %cst_39 : f32 to vector<64x12xf32>
    %112 = arith.select %110, %111, %108 : vector<64x12xi1>, vector<64x12xf32>
    %113 = vector.extract_strided_slice %48 {offsets = [0, 120], sizes = [64, 12], strides = [1, 1]} : vector<64x156xf32> to vector<64x12xf32>
    %114 = arith.cmpf oge, %113, %103 : vector<64x12xf32>
    %cst_40 = arith.constant 5.000000e+00 : f32
    %115 = vector.broadcast %cst_40 : f32 to vector<64x12xf32>
    %116 = arith.select %114, %115, %112 : vector<64x12xi1>, vector<64x12xf32>
    %117 = vector.extract_strided_slice %48 {offsets = [0, 108], sizes = [64, 12], strides = [1, 1]} : vector<64x156xf32> to vector<64x12xf32>
    %118 = arith.cmpf oge, %117, %103 : vector<64x12xf32>
    %cst_41 = arith.constant 4.000000e+00 : f32
    %119 = vector.broadcast %cst_41 : f32 to vector<64x12xf32>
    %120 = arith.select %118, %119, %116 : vector<64x12xi1>, vector<64x12xf32>
    %121 = vector.extract_strided_slice %48 {offsets = [0, 96], sizes = [64, 12], strides = [1, 1]} : vector<64x156xf32> to vector<64x12xf32>
    %122 = arith.cmpf oge, %121, %103 : vector<64x12xf32>
    %cst_42 = arith.constant 3.000000e+00 : f32
    %123 = vector.broadcast %cst_42 : f32 to vector<64x12xf32>
    %124 = arith.select %122, %123, %120 : vector<64x12xi1>, vector<64x12xf32>
    %125 = vector.extract_strided_slice %48 {offsets = [0, 84], sizes = [64, 12], strides = [1, 1]} : vector<64x156xf32> to vector<64x12xf32>
    %126 = arith.cmpf oge, %125, %103 : vector<64x12xf32>
    %cst_43 = arith.constant 2.000000e+00 : f32
    %127 = vector.broadcast %cst_43 : f32 to vector<64x12xf32>
    %128 = arith.select %126, %127, %124 : vector<64x12xi1>, vector<64x12xf32>
    %129 = vector.extract_strided_slice %48 {offsets = [0, 72], sizes = [64, 12], strides = [1, 1]} : vector<64x156xf32> to vector<64x12xf32>
    %130 = arith.cmpf oge, %129, %103 : vector<64x12xf32>
    %cst_44 = arith.constant 1.000000e+00 : f32
    %131 = vector.broadcast %cst_44 : f32 to vector<64x12xf32>
    %132 = arith.select %130, %131, %128 : vector<64x12xi1>, vector<64x12xf32>
    %133 = vector.extract_strided_slice %48 {offsets = [0, 60], sizes = [64, 12], strides = [1, 1]} : vector<64x156xf32> to vector<64x12xf32>
    %134 = arith.cmpf oge, %133, %103 : vector<64x12xf32>
    %cst_45 = arith.constant 0.000000e+00 : f32
    %135 = vector.broadcast %cst_45 : f32 to vector<64x12xf32>
    %136 = arith.select %134, %135, %132 : vector<64x12xi1>, vector<64x12xf32>
    %137 = arith.mulf %53, %103 : vector<64x12xf32>
    %cst_46 = arith.constant 5.000000e-01 : f32
    %138 = vector.broadcast %cst_46 : f32 to vector<64x12xf32>
    %139 = arith.cmpf ogt, %137, %138 : vector<64x12xf32>
    %140 = arith.extui %139 : vector<64x12xi1> to vector<64x12xi32>
    %141 = arith.sitofp %140 : vector<64x12xi32> to vector<64x12xf32>
    %cst_47 = arith.constant 0.000000e+00 : f32
    %142 = vector.broadcast %cst_47 : f32 to vector<64x44xf32>
    %143 = arith.subf %63, %80 : vector<64x12xf32>
    %144 = arith.subf %71, %88 : vector<64x12xf32>
    %145 = arith.addf %63, %80 : vector<64x12xf32>
    %146 = arith.addf %71, %88 : vector<64x12xf32>
    %147 = tpu.concatenate %143, %144, %145, %146, %137, %136, %141, %142 in 1 : vector<64x12xf32>, vector<64x12xf32>, vector<64x12xf32>, vector<64x12xf32>, vector<64x12xf32>, vector<64x12xf32>, vector<64x12xf32>, vector<64x44xf32> -> vector<64x128xf32>
    %c0_48 = arith.constant 0 : index
    %c0_49 = arith.constant 0 : index
    %c0_50 = arith.constant 0 : index
    %148 = vector.load %arg11[%c0_48, %c0_49, %c0_50] : memref<1x64x128xf32, #tpu.memory_space<vmem>>, vector<1x64x128xf32>
    %149 = vector.shape_cast %148 : vector<1x64x128xf32> to vector<64x128xf32>
    %150 = vector.shape_cast %147 : vector<64x128xf32> to vector<1x64x128xf32>
    tpu.vector_store %arg11[%c0_48, %c0_49, %c0_50], %150 {strides = array<i32>} : memref<1x64x128xf32, #tpu.memory_space<vmem>>, vector<1x64x128xf32>,
    return
  }
  func.func @transform_0(%arg0: i32) -> (i32, i32, i32) {
    %c0_i32 = arith.constant 0 : i32
    %c0_i32_0 = arith.constant 0 : i32
    %c0_i32_1 = arith.constant 0 : i32
    return %arg0, %c0_i32, %c0_i32_0 : i32, i32, i32
  }
  func.func @transform_1(%arg0: i32) -> (i32, i32) {
    %c0_i32 = arith.constant 0 : i32
    %c0_i32_0 = arith.constant 0 : i32
    %c0_i32_1 = arith.constant 0 : i32
    return %c0_i32, %c0_i32_0 : i32, i32
  }
  func.func @transform_2(%arg0: i32) -> (i32, i32) {
    %c0_i32 = arith.constant 0 : i32
    %c0_i32_0 = arith.constant 0 : i32
    %c0_i32_1 = arith.constant 0 : i32
    return %c0_i32, %c0_i32_0 : i32, i32
  }
  func.func @transform_3(%arg0: i32) -> (i32, i32) {
    %c0_i32 = arith.constant 0 : i32
    %c0_i32_0 = arith.constant 0 : i32
    %c0_i32_1 = arith.constant 0 : i32
    return %c0_i32, %c0_i32_0 : i32, i32
  }
  func.func @transform_4(%arg0: i32) -> (i32, i32) {
    %c0_i32 = arith.constant 0 : i32
    %c0_i32_0 = arith.constant 0 : i32
    %c0_i32_1 = arith.constant 0 : i32
    return %c0_i32, %c0_i32_0 : i32, i32
  }
  func.func @transform_5(%arg0: i32) -> (i32, i32) {
    %c0_i32 = arith.constant 0 : i32
    %c0_i32_0 = arith.constant 0 : i32
    %c0_i32_1 = arith.constant 0 : i32
    return %c0_i32, %c0_i32_0 : i32, i32
  }
  func.func @transform_6(%arg0: i32) -> (i32, i32) {
    %c0_i32 = arith.constant 0 : i32
    %c0_i32_0 = arith.constant 0 : i32
    %c0_i32_1 = arith.constant 0 : i32
    return %c0_i32, %c0_i32_0 : i32, i32
  }
  func.func @transform_7(%arg0: i32) -> (i32, i32) {
    %c0_i32 = arith.constant 0 : i32
    %c0_i32_0 = arith.constant 0 : i32
    %c0_i32_1 = arith.constant 0 : i32
    return %c0_i32, %c0_i32_0 : i32, i32
  }
  func.func @transform_8(%arg0: i32) -> (i32, i32) {
    %c0_i32 = arith.constant 0 : i32
    %c0_i32_0 = arith.constant 0 : i32
    %c0_i32_1 = arith.constant 0 : i32
    return %c0_i32, %c0_i32_0 : i32, i32
  }
  func.func @transform_9(%arg0: i32) -> (i32, i32) {
    %c0_i32 = arith.constant 0 : i32
    %c0_i32_0 = arith.constant 0 : i32
    %c0_i32_1 = arith.constant 0 : i32
    return %c0_i32, %c0_i32_0 : i32, i32
  }
  func.func @transform_10(%arg0: i32) -> (i32, i32, i32) {
    %c0_i32 = arith.constant 0 : i32
    %c0_i32_0 = arith.constant 0 : i32
    %c0_i32_1 = arith.constant 0 : i32
    return %arg0, %c0_i32, %c0_i32_0 : i32, i32, i32
  }
}

</mosaic_0001>

<bundles_post_ra>
// kernel: _run_batch_impl.1
= control target key start
LH: loop header
LB: loop body
LE: loop exit
PB: predicated region body
PF: predicated region fallthrough
CT: control target
= control target key end

     0   :  { %vm211_vm0 = vcmask 883712   ;;  %vm260_vm1 = vcmask 1045504   ;;  %s6695_s0 = inlined_call_operand.vmem [shape: bf16[1,256,108], index: 0, kind: input, shape index: {}]   ;;  %s6696_s1 = inlined_call_operand.vmem [shape: bf16[108,64], index: 1, kind: input, shape index: {}]   ;;  %s6697_s2 = inlined_call_operand.vmem [shape: f32[1,64], index: 2, kind: input, shape index: {}]   ;;  %s6698_s3 = inlined_call_operand.vmem [shape: bf16[576,256], index: 3, kind: input, shape index: {}]   ;;  %s6699_s4 = inlined_call_operand.vmem [shape: bf16[576,128], index: 4, kind: input, shape index: {}]   ;;  %s6700_s5 = inlined_call_operand.vmem [shape: f32[1,128], index: 5, kind: input, shape index: {}]   ;;  %s6701_s6 = inlined_call_operand.vmem [shape: bf16[128,156], index: 6, kind: input, shape index: {}]   ;;  %s6702_s7 = inlined_call_operand.vmem [shape: f32[1,156], index: 7, kind: input, shape index: {}]   ;;  %s6703_s8 = inlined_call_operand.vmem [shape: f32[64,2], index: 8, kind: input, shape index: {}]   ;;  %s6704_s9 = inlined_call_operand.vmem [shape: f32[2,12], index: 9, kind: input, shape index: {}]   ;;  %s6705_s10 = inlined_call_operand.hbm [shape: f32[1,64,128], index: 10, kind: output, shape index: {}]  }
   0x1   :  { %v4421_v0 = vld [vmem:[%s6696_s1] sm:$0xff]   ;;  %v4422_v1 = vld [vmem:[%s6696_s1 + $0x8] sm:$0xff]   ;;  %v4423_v2 = vld [vmem:[%s6696_s1 + $0x10] sm:$0xff]  }
   0x2   :  { %4120 = vmatprep.subr.bf16.mxu0 %v4421_v0  ;;  %v4428_v3 = vld [vmem:[%s6695_s0] sm:$0xff]   ;;  %v4424_v4 = vld [vmem:[%s6696_s1 + $0x18] sm:$0xff]   ;;  %v4426_v6 = vld [vmem:[%s6696_s1 + $0x28] sm:$0xff]  }
   0x3   :  { %4121 = vmatpush3.bf16.msra.mxu0 %v4421_v0  ;;  %4134 = vmatprep.mubr.msk.bf16.mxu0 %vm211_vm0, %v4428_v3  ;;  %v4425_v5 = vld [vmem:[%s6696_s1 + $0x20] sm:$0xff]   ;;  %v4427_v7 = vld [vmem:[%s6696_s1 + $0x30] sm:$0x3f]   ;;  %v4429_v9 = vld [vmem:[%s6695_s0 + $0x8] sm:$0xff]  }
   0x4   :  { %4122 = vmatprep.subr.bf16.mxu0 %v4422_v1  ;;  %v262_v8 = vsel %vm260_vm1, %v4427_v7, 0  ;;  %v4430_v10 = vld [vmem:[%s6695_s0 + $0x10] sm:$0xff]   ;;  %v4431_v11 = vld [vmem:[%s6695_s0 + $0x18] sm:$0xff]   ;;  %v4432_v12 = vld [vmem:[%s6695_s0 + $0x20] sm:$0xff]  }
   0x5   :  { %v4433_v13 = vld [vmem:[%s6695_s0 + $0x28] sm:$0xff]   ;;  %v4434_v14 = vld [vmem:[%s6695_s0 + $0x30] sm:$0xff]   ;;  %v4435_v15 = vld [vmem:[%s6695_s0 + $0x38] sm:$0xff]  }
   0x6   :  { %v4436_v16 = vld [vmem:[%s6695_s0 + $0x40] sm:$0xff]   ;;  %v4437_v17 = vld [vmem:[%s6695_s0 + $0x48] sm:$0xff]   ;;  %v4438_v18 = vld [vmem:[%s6695_s0 + $0x50] sm:$0xff]  }
   0x7   :  { %4123 = vmatpush3.bf16.msra.mxu0 %v4422_v1  ;;  %v4439_v19 = vld [vmem:[%s6695_s0 + $0x58] sm:$0xff]   ;;  %v4440_v20 = vld [vmem:[%s6695_s0 + $0x60] sm:$0xff]   ;;  %v4441_v21 = vld [vmem:[%s6695_s0 + $0x68] sm:$0xff]  }
   0x8   :  { %4124 = vmatprep.subr.bf16.mxu0 %v4423_v2  ;;  %v4442_v22 = vld [vmem:[%s6695_s0 + $0x70] sm:$0xff]  }
   0xb   :  { %4125 = vmatpush3.bf16.msra.mxu0 %v4423_v2 }
   0xc   :  { %4126 = vmatprep.subr.bf16.mxu0 %v4424_v4 }
   0xf   :  { %4127 = vmatpush3.bf16.msra.mxu0 %v4424_v4 }
  0x10   :  { %4128 = vmatprep.subr.bf16.mxu0 %v4425_v5 }
  0x13   :  { %4129 = vmatpush3.bf16.msra.mxu0 %v4425_v5 }
  0x14   :  { %4130 = vmatprep.subr.bf16.mxu0 %v4426_v6 }
  0x17   :  { %4131 = vmatpush3.bf16.msra.mxu0 %v4426_v6 }
  0x18   :  { %4214 = vmatprep.subr.msk.bf16.mxu0 %vm260_vm1, %v4427_v7 }
  0x1b   :  { %4133 = vmatpush3.bf16.msra.mxu0 %v262_v8 }
  0x1e   :  { %4135 = vmatmul.mubr.msk.bf16.vlgmr.msra.gmra.mrb[0].mxu0 %vm211_vm0, %v4429_v9 }
  0x1f   :  { %4138 = vmatprep.mubr.msk.bf16.mxu0 %vm211_vm0, %v4430_v10 }
  0x26   :  { %4139 = vmatmul.mubr.msk.bf16.gmra.mrb[4].mxu0 %vm211_vm0, %v4431_v11 }
  0x27   :  { %4142 = vmatprep.mubr.msk.bf16.mxu0 %vm211_vm0, %v4432_v12 }
  0x2e   :  { %4143 = vmatmul.mubr.msk.bf16.gmra.mrb[8].mxu0 %vm211_vm0, %v4433_v13 }
  0x2f   :  { %4146 = vmatprep.mubr.msk.bf16.mxu0 %vm211_vm0, %v4434_v14 }
  0x36   :  { %4147 = vmatmul.mubr.msk.bf16.gmra.mrb[12].mxu0 %vm211_vm0, %v4435_v15 }
  0x37   :  { %4150 = vmatprep.mubr.msk.bf16.mxu0 %vm211_vm0, %v4436_v16 }
  0x3e   :  { %4151 = vmatmul.mubr.msk.bf16.gmra.mrb[16].mxu0 %vm211_vm0, %v4437_v17 }
  0x3f   :  { %4154 = vmatprep.mubr.msk.bf16.mxu0 %vm211_vm0, %v4438_v18 }
  0x46   :  { %4155 = vmatmul.mubr.msk.bf16.gmra.mrb[20].mxu0 %vm211_vm0, %v4439_v19 }
  0x47   :  { %4158 = vmatprep.mubr.msk.bf16.mxu0 %vm211_vm0, %v4440_v20 }
  0x48   :  { %15 = vsyncpa [#allocation3], 0  ;;  %v4443_v23 = vld [vmem:[%s6695_s0 + $0x78] sm:$0xff]   ;;  %v4860_v24 = vmov 0   ;;  %v4446_v25 = vld [vmem:[%s6698_s3 + $0x4] ss:$8 sps:$4 sm:$0xff]  }
  0x49   :  { %1097 = vmatprep.subr.bf16.mxu0 %v4860_v24  ;;  %4182 = vmatprep.subr.bf16.mxu1 %v4860_v24  ;;  %v4449_v26 = vld [vmem:[%s6698_s3 + $0x84] ss:$8 sps:$4 sm:$0xff]   ;;  %v5035_v27 = vld [vmem:[%s6697_s2] ss:$0 sm:$0xff]  ;;  %s4861_s11 = smov 64   ;;  %vm1502_vm2 = vcmask 523264  }
  0x4a   :  { %4277 = vset.pattern.permute.xlu0 %v4860_v24  ;;  %4278 = vset.pattern.permute.xlu1 %v4860_v24  ;;  %s4863_s13 = smov 68   ;;  %s4865_s14 = smov 92   ;;  %vm2767_vm3 = vcmask 556032  }
  0x4b   :  { %1193 = vmatprep.mubr.bf16.mxu1 %v4449_v26  ;;  %s4866_s1 = smov 80   ;;  %s4867_s15 = smov 56  }
  0x4c   :  { %s4868_s16 = smov 44   ;;  %s4869_s17 = smov 84  }
  0x4d   :  { %s4870_s18 = smov 72   ;;  %s4872_s19 = smov 60  }
  0x4e   :  { %4159 = vmatmul.mubr.msk.bf16.gmra.mrb[24].mxu0 %vm211_vm0, %v4441_v21  ;;  %s4873_s28 = smov 48  }
  0x4f   :  { %4162 = vmatprep.mubr.msk.bf16.mxu0 %vm211_vm0, %v4442_v22 }
  0x56   :  { %4163 = vmatmul.mubr.msk.bf16.gmra.mrb[28].mxu0 %vm211_vm0, %v4443_v23 }
  0x57   :  { %1129 = vmatprep.mubr.bf16.mxu0 %v4446_v25 }
  0xf1   :  { %v4136_v28 = vpop.f32.mrb[0].mxu0 }
  0xf2   :  { %v5038_v29 = vadd.f32 %v4136_v28, %v5035_v27  ;;  %v298_v30 = vpop.f32.mrb[1].mxu0 }
  0xf3   :  { %v5041_v31 = vadd.f32 %v5035_v27, %v298_v30  ;;  %v4137_v32 = vpop.f32.mrb[2].mxu0 }
  0xf4   :  { %v3810_v33 = vmul.f32 -1.442695, %v5038_v29  ;;  %v5045_v34 = vadd.f32 %v4137_v32, %v5035_v27  ;;  %v301_v35 = vpop.f32.mrb[3].mxu0 }
  0xf5   :  { %v3808_v36 = vmul.f32 -1.442695, %v5041_v31  ;;  %v5049_v37 = vadd.f32 %v5035_v27, %v301_v35 }
  0xf6   :  { %4612 = vpow2.f32 %v3810_v33  ;;  %v3811_v38 = vmul.f32 -1.442695, %v5045_v34 }
  0xf7   :  { %4614 = vpow2.f32 %v3808_v36  ;;  %v3809_v39 = vmul.f32 -1.442695, %v5049_v37 }
  0xf8   :  { %4616 = vpow2.f32 %v3811_v38 }
  0xf9   :  { %4618 = vpow2.f32 %v3809_v39  ;;  %v4140_v40 = vpop.f32.mrb[4].mxu0 }
  0xfa   :  { %v5054_v41 = vadd.f32 %v4140_v40, %v5035_v27  ;;  %v314_v42 = vpop.f32.mrb[5].mxu0 }
  0xfb   :  { %v5057_v43 = vadd.f32 %v5035_v27, %v314_v42  ;;  %v4141_v44 = vpop.f32.mrb[6].mxu0 }
  0xfc   :  { %v3814_v45 = vmul.f32 -1.442695, %v5054_v41  ;;  %v5061_v46 = vadd.f32 %v4141_v44, %v5035_v27  ;;  %v317_v47 = vpop.f32.mrb[7].mxu0 }
  0xfd   :  { %v3812_v48 = vmul.f32 -1.442695, %v5057_v43  ;;  %v5065_v49 = vadd.f32 %v5035_v27, %v317_v47 }
  0xfe   :  { %4620 = vpow2.f32 %v3814_v45  ;;  %v3815_v50 = vmul.f32 -1.442695, %v5061_v46 }
  0xff   :  { %4622 = vpow2.f32 %v3812_v48  ;;  %v3813_v51 = vmul.f32 -1.442695, %v5065_v49 }
 0x100   :  { %v4613_v52 = vpop.eup %4612  ;;  %4624 = vpow2.f32 %v3815_v50 }
 0x101   :  { %v4615_v53 = vpop.eup %4614  ;;  %v523_v54 = vadd.f32 1.0, %v4613_v52  ;;  %4626 = vpow2.f32 %v3813_v51  ;;  %v4144_v55 = vpop.f32.mrb[8].mxu0 }
 0x102   :  { %v4617_v56 = vpop.eup %4616  ;;  %v521_v57 = vadd.f32 1.0, %v4615_v53  ;;  %v5070_v58 = vadd.f32 %v4144_v55, %v5035_v27  ;;  %v330_v59 = vpop.f32.mrb[9].mxu0 }
 0x103   :  { %v4619_v60 = vpop.eup %4618  ;;  %4628 = vrcp.f32 %v523_v54  ;;  %v524_v61 = vadd.f32 1.0, %v4617_v56  ;;  %v5073_v62 = vadd.f32 %v5035_v27, %v330_v59  ;;  %v4145_v63 = vpop.f32.mrb[10].mxu0 }
 0x104   :  { %4630 = vrcp.f32 %v521_v57  ;;  %v522_v0 = vadd.f32 1.0, %v4619_v60  ;;  %v3818_v1 = vmul.f32 -1.442695, %v5070_v58  ;;  %v5077_v2 = vadd.f32 %v4145_v63, %v5035_v27  ;;  %v333_v3 = vpop.f32.mrb[11].mxu0 }
 0x105   :  { %4632 = vrcp.f32 %v524_v61  ;;  %v3816_v4 = vmul.f32 -1.442695, %v5073_v62  ;;  %v5081_v5 = vadd.f32 %v5035_v27, %v333_v3 }
 0x106   :  { %4634 = vrcp.f32 %v522_v0  ;;  %v3819_v6 = vmul.f32 -1.442695, %v5077_v2 }
 0x107   :  { %4636 = vpow2.f32 %v3818_v1  ;;  %v3817_v7 = vmul.f32 -1.442695, %v5081_v5 }
 0x108   :  { %v4621_v8 = vpop.eup %4620  ;;  %4638 = vpow2.f32 %v3816_v4 }
 0x109   :  { %v4623_v9 = vpop.eup %4622  ;;  %v527_v10 = vadd.f32 1.0, %v4621_v8  ;;  %4640 = vpow2.f32 %v3819_v6  ;;  %v4148_v11 = vpop.f32.mrb[12].mxu0 }
 0x10a   :  { %v4625_v12 = vpop.eup %4624  ;;  %v525_v13 = vadd.f32 1.0, %v4623_v9  ;;  %4642 = vpow2.f32 %v3817_v7  ;;  %v5086_v14 = vadd.f32 %v4148_v11, %v5035_v27  ;;  %v346_v15 = vpop.f32.mrb[13].mxu0 }
 0x10b   :  { %v4627_v16 = vpop.eup %4626  ;;  %4644 = vrcp.f32 %v527_v10  ;;  %v528_v17 = vadd.f32 1.0, %v4625_v12  ;;  %v5089_v18 = vadd.f32 %v5035_v27, %v346_v15  ;;  %v4149_v19 = vpop.f32.mrb[14].mxu0 }
 0x10c   :  { %4646 = vrcp.f32 %v525_v13  ;;  %v526_v20 = vadd.f32 1.0, %v4627_v16  ;;  %v3822_v21 = vmul.f32 -1.442695, %v5086_v14  ;;  %v5093_v22 = vadd.f32 %v4149_v19, %v5035_v27  ;;  %v349_v23 = vpop.f32.mrb[15].mxu0 }
 0x10d   :  { %v4629_v25 = vpop.eup %4628  ;;  %4648 = vrcp.f32 %v528_v17  ;;  %v3820_v26 = vmul.f32 -1.442695, %v5089_v18  ;;  %v5097_v28 = vadd.f32 %v5035_v27, %v349_v23 }
 0x10e   :  { %v4631_v30 = vpop.eup %4630  ;;  %4650 = vrcp.f32 %v526_v20  ;;  %v3823_v32 = vmul.f32 -1.442695, %v5093_v22  ;;  %v619_v38 = vmul.f32 %v4629_v25, %v5038_v29 }
 0x10f   :  { %v4633_v33 = vpop.eup %4632  ;;  %4652 = vpow2.f32 %v3822_v21  ;;  %v3821_v35 = vmul.f32 -1.442695, %v5097_v28  ;;  %v617_v42 = vmul.f32 %v4631_v30, %v5041_v31 }
 0x110   :  { %v4635_v36 = vpop.eup %4634  ;;  %v620_v39 = vmul.f32 %v4633_v33, %v5045_v34  ;;  %4654 = vpow2.f32 %v3820_v26 }
 0x111   :  { %v4637_v40 = vpop.eup %4636  ;;  %v618_v44 = vmul.f32 %v4635_v36, %v5049_v37  ;;  %4656 = vpow2.f32 %v3823_v32  ;;  %v4152_v45 = vpop.f32.mrb[16].mxu0 }
 0x112   :  { %v4639_v47 = vpop.eup %4638  ;;  %v722_v48 = vpack.c.bf16 %v620_v39, %v619_v38  ;;  %v531_v50 = vadd.f32 1.0, %v4637_v40  ;;  %4658 = vpow2.f32 %v3821_v35  ;;  %v5106_v51 = vadd.f32 %v4152_v45, %v5035_v27  ;;  %v362_v52 = vpop.f32.mrb[17].mxu0 }
 0x113   :  { %v4641_v53 = vpop.eup %4640  ;;  %v721_v29 = vpack.c.bf16 %v618_v44, %v617_v42  ;;  %v529_v54 = vadd.f32 1.0, %v4639_v47  ;;  %v5109_v34 = vadd.f32 %v5035_v27, %v362_v52  ;;  %v4153_v55 = vpop.f32.mrb[18].mxu0 }
 0x114   :  { %v4643_v31 = vpop.eup %4642  ;;  %4660 = vrcp.f32 %v531_v50  ;;  %v532_v37 = vadd.f32 1.0, %v4641_v53  ;;  %v3826_v56 = vmul.f32 -1.442695, %v5106_v51  ;;  %v5113_v57 = vadd.f32 %v4153_v55, %v5035_v27  ;;  %v365_v59 = vpop.f32.mrb[19].mxu0 }
 0x115   :  { %v4645_v60 = vpop.eup %4644  ;;  %4662 = vrcp.f32 %v529_v54  ;;  %v530_v61 = vadd.f32 1.0, %v4643_v31  ;;  %v3824_v63 = vmul.f32 -1.442695, %v5109_v34  ;;  %v5117_v0 = vadd.f32 %v5035_v27, %v365_v59  ;;  %1098 = vmatpush1.bf16.msra.mxu0 %v721_v29  ;;  %4198 = vmatpush1.bf16.msra.mxu1 %v721_v29 }
 0x116   :  { %v4647_v1 = vpop.eup %4646  ;;  %4664 = vrcp.f32 %v532_v37  ;;  %v3827_v3 = vmul.f32 -1.442695, %v5113_v57  ;;  %1099 = vmatprep.subr.bf16.mxu0 %v4860_v24  ;;  %4183 = vmatprep.subr.bf16.mxu1 %v4860_v24  ;;  %v623_v8 = vmul.f32 %v4645_v60, %v5054_v41 }
 0x117   :  { %v4649_v4 = vpop.eup %4648  ;;  %4666 = vrcp.f32 %v530_v61  ;;  %v3825_v6 = vmul.f32 -1.442695, %v5117_v0  ;;  %v621_v11 = vmul.f32 %v4647_v1, %v5057_v43 }
 0x118   :  { %v4651_v7 = vpop.eup %4650  ;;  %v624_v9 = vmul.f32 %v4649_v4, %v5061_v46  ;;  %4668 = vpow2.f32 %v3826_v56 }
 0x119   :  { %v4653_v10 = vpop.eup %4652  ;;  %v622_v12 = vmul.f32 %v4651_v7, %v5065_v49  ;;  %4670 = vpow2.f32 %v3824_v63  ;;  %v4156_v13 = vpop.f32.mrb[20].mxu0  ;;  %1100 = vmatpush1.bf16.msra.mxu0 %v722_v48  ;;  %4199 = vmatpush1.bf16.msra.mxu1 %v722_v48 }
 0x11a   :  { %v4655_v15 = vpop.eup %4654  ;;  %v724_v16 = vpack.c.bf16 %v624_v9, %v623_v8  ;;  %v535_v17 = vadd.f32 1.0, %v4653_v10  ;;  %4672 = vpow2.f32 %v3827_v3  ;;  %v5128_v19 = vadd.f32 %v4156_v13, %v5035_v27  ;;  %v378_v41 = vpop.f32.mrb[21].mxu0  ;;  %1101 = vmatprep.subr.bf16.mxu0 %v4860_v24  ;;  %4184 = vmatprep.subr.bf16.mxu1 %v4860_v24 }
 0x11b   :  { %v4657_v46 = vpop.eup %4656  ;;  %v723_v43 = vpack.c.bf16 %v622_v12, %v621_v11  ;;  %v533_v20 = vadd.f32 1.0, %v4655_v15  ;;  %4674 = vpow2.f32 %v3825_v6  ;;  %v5133_v49 = vadd.f32 %v5035_v27, %v378_v41  ;;  %v4157_v21 = vpop.f32.mrb[22].mxu0 }
 0x11c   :  { %v4659_v23 = vpop.eup %4658  ;;  %4676 = vrcp.f32 %v535_v17  ;;  %v536_v25 = vadd.f32 1.0, %v4657_v46  ;;  %v3830_v26 = vmul.f32 -1.442695, %v5128_v19  ;;  %v5137_v30 = vadd.f32 %v4157_v21, %v5035_v27  ;;  %v381_v32 = vpop.f32.mrb[23].mxu0 }
 0x11d   :  { %4678 = vrcp.f32 %v533_v20  ;;  %v534_v33 = vadd.f32 1.0, %v4659_v23  ;;  %v3828_v35 = vmul.f32 -1.442695, %v5133_v49  ;;  %v5141_v36 = vadd.f32 %v5035_v27, %v381_v32  ;;  %1102 = vmatpush1.bf16.msra.mxu0 %v723_v43  ;;  %4200 = vmatpush1.bf16.msra.mxu1 %v723_v43 }
 0x11e   :  { %v4661_v38 = vpop.eup %4660  ;;  %4680 = vrcp.f32 %v536_v25  ;;  %v3831_v39 = vmul.f32 -1.442695, %v5137_v30  ;;  %1103 = vmatprep.subr.bf16.mxu0 %v4860_v24  ;;  %4185 = vmatprep.subr.bf16.mxu1 %v4860_v24 }
 0x11f   :  { %v4663_v40 = vpop.eup %4662  ;;  %4682 = vrcp.f32 %v534_v33  ;;  %v3829_v42 = vmul.f32 -1.442695, %v5141_v36  ;;  %v627_v47 = vmul.f32 %v4661_v38, %v5070_v58 }
 0x120   :  { %v4665_v44 = vpop.eup %4664  ;;  %4684 = vpow2.f32 %v3830_v26  ;;  %v625_v53 = vmul.f32 %v4663_v40, %v5073_v62 }
 0x121   :  { %v4667_v45 = vpop.eup %4666  ;;  %v628_v48 = vmul.f32 %v4665_v44, %v5077_v2  ;;  %4686 = vpow2.f32 %v3828_v35  ;;  %v4160_v50 = vpop.f32.mrb[24].mxu0  ;;  %1104 = vmatpush1.bf16.msra.mxu0 %v724_v16  ;;  %4201 = vmatpush1.bf16.msra.mxu1 %v724_v16 }
 0x122   :  { %v4669_v52 = vpop.eup %4668  ;;  %v626_v29 = vmul.f32 %v4667_v45, %v5081_v5  ;;  %4688 = vpow2.f32 %v3831_v39  ;;  %v5152_v54 = vadd.f32 %v4160_v50, %v5035_v27  ;;  %v394_v55 = vpop.f32.mrb[25].mxu0  ;;  %1105 = vmatprep.subr.bf16.mxu0 %v4860_v24  ;;  %4186 = vmatprep.subr.bf16.mxu1 %v4860_v24 }
 0x123   :  { %v4671_v58 = vpop.eup %4670  ;;  %v726_v2 = vpack.c.bf16 %v628_v48, %v627_v47  ;;  %v539_v31 = vadd.f32 1.0, %v4669_v52  ;;  %4690 = vpow2.f32 %v3829_v42  ;;  %v5157_v37 = vadd.f32 %v5035_v27, %v394_v55  ;;  %v4161_v56 = vpop.f32.mrb[26].mxu0 }
 0x124   :  { %v4673_v62 = vpop.eup %4672  ;;  %v725_v59 = vpack.c.bf16 %v626_v29, %v625_v53  ;;  %v537_v5 = vadd.f32 1.0, %v4671_v58  ;;  %v5160_v60 = vadd.f32 %v4161_v56, %v5035_v27  ;;  %v397_v61 = vpop.f32.mrb[27].mxu0  ;;  %v3834_v3 = vmul.f32 -1.442695, %v5152_v54 }
 0x125   :  { %v4675_v63 = vpop.eup %4674  ;;  %4692 = vrcp.f32 %v539_v31  ;;  %v540_v1 = vadd.f32 1.0, %v4673_v62  ;;  %v5164_v4 = vadd.f32 %v5035_v27, %v397_v61  ;;  %v3832_v8 = vmul.f32 -1.442695, %v5157_v37 }
 0x126   :  { %v4677_v6 = vpop.eup %4676  ;;  %4694 = vrcp.f32 %v537_v5  ;;  %v538_v7 = vadd.f32 1.0, %v4675_v63  ;;  %1106 = vmatpush1.bf16.msra.mxu0 %v725_v59  ;;  %4202 = vmatpush1.bf16.msra.mxu1 %v725_v59  ;;  %v3835_v10 = vmul.f32 -1.442695, %v5160_v60 }
 0x127   :  { %v4679_v9 = vpop.eup %4678  ;;  %4696 = vrcp.f32 %v540_v1  ;;  %1107 = vmatprep.subr.bf16.mxu0 %v4860_v24  ;;  %4187 = vmatprep.subr.bf16.mxu1 %v4860_v24  ;;  %v3833_v12 = vmul.f32 -1.442695, %v5164_v4  ;;  %v631_v15 = vmul.f32 %v4677_v6, %v5086_v14 }
 0x128   :  { %v4681_v11 = vpop.eup %4680  ;;  %4698 = vrcp.f32 %v538_v7  ;;  %v629_v46 = vmul.f32 %v4679_v9, %v5089_v18 }
 0x129   :  { %v4683_v13 = vpop.eup %4682  ;;  %v632_v16 = vmul.f32 %v4681_v11, %v5093_v22  ;;  %4700 = vpow2.f32 %v3834_v3  ;;  %v4164_v17 = vpop.f32.mrb[28].mxu0 }
 0x12a   :  { %v4685_v41 = vpop.eup %4684  ;;  %v630_v43 = vmul.f32 %v4683_v13, %v5097_v28  ;;  %4702 = vpow2.f32 %v3832_v8  ;;  %v5176_v20 = vadd.f32 %v4164_v17, %v5035_v27  ;;  %1108 = vmatpush1.bf16.msra.mxu0 %v726_v2  ;;  %4203 = vmatpush1.bf16.msra.mxu1 %v726_v2  ;;  %v410_v21 = vpop.f32.mrb[29].mxu0 }
 0x12b   :  { %v4687_v23 = vpop.eup %4686  ;;  %v728_v25 = vpack.c.bf16 %v632_v16, %v631_v15  ;;  %v543_v26 = vadd.f32 1.0, %v4685_v41  ;;  %4704 = vpow2.f32 %v3835_v10  ;;  %v5179_v14 = vadd.f32 %v5035_v27, %v410_v21  ;;  %v4165_v22 = vpop.f32.mrb[30].mxu0  ;;  %1109 = vmatprep.subr.bf16.mxu0 %v4860_v24  ;;  %4188 = vmatprep.subr.bf16.mxu1 %v4860_v24 }
 0x12c   :  { %v4689_v18 = vpop.eup %4688  ;;  %v727_v28 = vpack.c.bf16 %v630_v43, %v629_v46  ;;  %v541_v32 = vadd.f32 1.0, %v4687_v23  ;;  %4706 = vpow2.f32 %v3833_v12  ;;  %v413_v33 = vpop.f32.mrb[31].mxu0  ;;  %v3838_v39 = vmul.f32 -1.442695, %v5176_v20 }
 0x12d   :  { %v4691_v35 = vpop.eup %4690  ;;  %4708 = vrcp.f32 %v543_v26  ;;  %v544_v38 = vadd.f32 1.0, %v4689_v18  ;;  %v5185_v40 = vadd.f32 %v4165_v22, %v5035_v27  ;;  %v3836_v44 = vmul.f32 -1.442695, %v5179_v14 }
 0x12e   :  { %4710 = vrcp.f32 %v541_v32  ;;  %v542_v42 = vadd.f32 1.0, %v4691_v35  ;;  %v5189_v45 = vadd.f32 %v5035_v27, %v413_v33  ;;  %1110 = vmatpush1.bf16.msra.mxu0 %v727_v28  ;;  %4204 = vmatpush1.bf16.msra.mxu1 %v727_v28 }
 0x12f   :  { %v4693_v47 = vpop.eup %4692  ;;  %4712 = vrcp.f32 %v544_v38  ;;  %v3839_v48 = vmul.f32 -1.442695, %v5185_v40  ;;  %1111 = vmatprep.subr.bf16.mxu0 %v4860_v24  ;;  %4189 = vmatprep.subr.bf16.mxu1 %v4860_v24 }
 0x130   :  { %v4695_v50 = vpop.eup %4694  ;;  %4714 = vrcp.f32 %v542_v42  ;;  %v3837_v52 = vmul.f32 -1.442695, %v5189_v45  ;;  %v635_v27 = vmul.f32 %v4693_v47, %v5106_v51  ;;  %v4455_v47 = vld [vmem:[%s6698_s3 + $0x90] ss:$8 sps:$4 sm:$0xff]  }
 0x131   :  { %v4697_v53 = vpop.eup %4696  ;;  %4716 = vpow2.f32 %v3838_v39  ;;  %v633_v2 = vmul.f32 %v4695_v50, %v5109_v34  ;;  %v4458_v50 = vld [vmem:[%s6698_s3 + $0xa4] ss:$8 sps:$4 sm:$0xff]  }
 0x132   :  { %v4699_v29 = vpop.eup %4698  ;;  %v636_v55 = vmul.f32 %v4697_v53, %v5113_v57  ;;  %4718 = vpow2.f32 %v3836_v44  ;;  %1112 = vmatpush1.bf16.msra.mxu0 %v728_v25  ;;  %4205 = vmatpush1.bf16.msra.mxu1 %v728_v25  ;;  %v4452_v44 = vld [vmem:[%s6698_s3 + $0x94] ss:$8 sps:$4 sm:$0xff]   ;;  %v4461_v53 = vld [vmem:[%s6698_s3 + $0xa0] ss:$8 sps:$4 sm:$0xff]  }
 0x133   :  { %v4701_v58 = vpop.eup %4700  ;;  %v634_v31 = vmul.f32 %v4699_v29, %v5117_v0  ;;  %4720 = vpow2.f32 %v3839_v48  ;;  %1113 = vmatprep.subr.bf16.mxu0 %v4860_v24  ;;  %4190 = vmatprep.subr.bf16.mxu1 %v4860_v24  ;;  %v4456_v48 = vld [vmem:[%s6698_s3 + $0x24] ss:$8 sps:$4 sm:$0xff]   ;;  %v4462_v29 = vld [vmem:[%s6698_s3 + $0x34] ss:$8 sps:$4 sm:$0xff]  }
 0x134   :  { %v4703_v56 = vpop.eup %4702  ;;  %v730_v62 = vpack.c.bf16 %v636_v55, %v635_v27  ;;  %v547_v59 = vadd.f32 1.0, %v4701_v58  ;;  %4722 = vpow2.f32 %v3837_v52  ;;  %v4460_v52 = vld [vmem:[%s6698_s3 + $0x20] ss:$8 sps:$4 sm:$0xff]   ;;  %v4464_v27 = vld [vmem:[%s6698_s3 + $0xb4] ss:$8 sps:$4 sm:$0xff]  }
 0x135   :  { %v4705_v51 = vpop.eup %4704  ;;  %v729_v5 = vpack.c.bf16 %v634_v31, %v633_v2  ;;  %v545_v57 = vadd.f32 1.0, %v4703_v56  ;;  %v4466_v55 = vld [vmem:[%s6698_s3 + $0x30] ss:$8 sps:$4 sm:$0xff]   ;;  %v4468_v2 = vld [vmem:[%s6698_s3 + $0x44] ss:$8 sps:$4 sm:$0xff]  }
 0x136   :  { %v4707_v61 = vpop.eup %4706  ;;  %4724 = vrcp.f32 %v547_v59  ;;  %v548_v63 = vadd.f32 1.0, %v4705_v51  ;;  %v4467_v58 = vld [vmem:[%s6698_s3 + $0xb0] ss:$8 sps:$4 sm:$0xff]   ;;  %v4470_v31 = vld [vmem:[%s6698_s3 + $0xc4] ss:$8 sps:$4 sm:$0xff]  }
 0x137   :  { %v4709_v1 = vpop.eup %4708  ;;  %4726 = vrcp.f32 %v545_v57  ;;  %v546_v34 = vadd.f32 1.0, %v4707_v61  ;;  %1114 = vmatpush1.bf16.msra.mxu0 %v729_v5  ;;  %4206 = vmatpush1.bf16.msra.mxu1 %v729_v5  ;;  %v4472_v56 = vld [vmem:[%s6698_s3 + $0x40] ss:$8 sps:$4 sm:$0xff]   ;;  %v4474_v59 = vld [vmem:[%s6698_s3 + $0x54] ss:$8 sps:$4 sm:$0xff]  }
 0x138   :  { %v4711_v0 = vpop.eup %4710  ;;  %4728 = vrcp.f32 %v548_v63  ;;  %1115 = vmatprep.subr.bf16.mxu0 %v4860_v24  ;;  %4191 = vmatprep.subr.bf16.mxu1 %v4860_v24  ;;  %v639_v7 = vmul.f32 %v4709_v1, %v5128_v19  ;;  %v4476_v51 = vld [vmem:[%s6698_s3 + $0xd4] ss:$8 sps:$4 sm:$0xff]   ;;  %v4478_v5 = vld [vmem:[%s6698_s3 + $0x50] ss:$8 sps:$4 sm:$0xff]   ;;  %v4480_v61 = vld [vmem:[%s6698_s3 + $0x64] ss:$8 sps:$4 sm:$0xff]  }
 0x139   :  { %v4713_v3 = vpop.eup %4712  ;;  %4730 = vrcp.f32 %v546_v34  ;;  %v637_v10 = vmul.f32 %v4711_v0, %v5133_v49  ;;  %v4479_v57 = vld [vmem:[%s6698_s3 + $0xd0] ss:$8 sps:$4 sm:$0xff]   ;;  %v4482_v63 = vld [vmem:[%s6698_s3 + $0xe4] ss:$8 sps:$4 sm:$0xff]   ;;  %v4484_v1 = vld [vmem:[%s6698_s3 + $0x60] ss:$8 sps:$4 sm:$0xff]  }
 0x13a   :  { %v4715_v6 = vpop.eup %4714  ;;  %v640_v8 = vmul.f32 %v4713_v3, %v5137_v30  ;;  %v4485_v34 = vld [vmem:[%s6698_s3 + $0xe0] ss:$8 sps:$4 sm:$0xff]   ;;  %v4486_v0 = vld [vmem:[%s6698_s3 + $0x74] ss:$8 sps:$4 sm:$0xff]  }
 0x13b   :  { %v4717_v9 = vpop.eup %4716  ;;  %v638_v11 = vmul.f32 %v4715_v6, %v5141_v36  ;;  %1116 = vmatpush1.bf16.msra.mxu0 %v730_v62  ;;  %4207 = vmatpush1.bf16.msra.mxu1 %v730_v62  ;;  %v4473_v62 = vld [vmem:[%s6698_s3 + $0xc0] ss:$8 sps:$4 sm:$0xff]   ;;  %v4488_v3 = vld [vmem:[%s6698_s3 + $0xf4] ss:$8 sps:$4 sm:$0xff]   ;;  %v4490_v6 = vld [vmem:[%s6698_s3 + $0x70] ss:$8 sps:$4 sm:$0xff]  }
 0x13c   :  { %v4719_v12 = vpop.eup %4718  ;;  %v732_v13 = vpack.c.bf16 %v640_v8, %v639_v7  ;;  %v551_v15 = vadd.f32 1.0, %v4717_v9  ;;  %1117 = vmatprep.subr.bf16.mxu0 %v4860_v24  ;;  %4192 = vmatprep.subr.bf16.mxu1 %v4860_v24  ;;  %v4491_v7 = vld [vmem:[%s6698_s3 + $0xf0] ss:$8 sps:$4 sm:$0xff]   ;;  %v4492_v8 = vld [vmem:[%s6698_s3 + $0x104] ss:$8 sps:$4 sm:$0xff]  }
 0x13d   :  { %v4721_v16 = vpop.eup %4720  ;;  %v731_v17 = vpack.c.bf16 %v638_v11, %v637_v10  ;;  %v549_v41 = vadd.f32 1.0, %v4719_v12  ;;  %v4494_v9 = vld [vmem:[%s6698_s3 + $0x100] ss:$8 sps:$4 sm:$0xff]   ;;  %v4495_v10 = vld [vmem:[%s6698_s3 + $0x114] ss:$8 sps:$4 sm:$0xff]  }
 0x13e   :  { %v4723_v19 = vpop.eup %4722  ;;  %4732 = vrcp.f32 %v551_v15  ;;  %v552_v30 = vadd.f32 1.0, %v4721_v16  ;;  %v4497_v11 = vld [vmem:[%s6698_s3 + $0x110] ss:$8 sps:$4 sm:$0xff]   ;;  %v4498_v12 = vld [vmem:[%s6698_s3 + $0x124] ss:$8 sps:$4 sm:$0xff]  }
 0x13f   :  { %4734 = vrcp.f32 %v549_v41  ;;  %v550_v46 = vadd.f32 1.0, %v4723_v19  ;;  %1118 = vmatpush1.bf16.msra.mxu0 %v731_v17  ;;  %4208 = vmatpush1.bf16.msra.mxu1 %v731_v17  ;;  %v4501_v15 = vld [vmem:[%s6698_s3 + $0x134] ss:$8 sps:$4 sm:$0xff]   ;;  %v4503_v16 = vld [vmem:[%s6698_s3 + $0x130] ss:$8 sps:$4 sm:$0xff]  }
 0x140   :  { %v4725_v49 = vpop.eup %4724  ;;  %4736 = vrcp.f32 %v552_v30  ;;  %1119 = vmatprep.subr.bf16.mxu0 %v4860_v24  ;;  %4193 = vmatprep.subr.bf16.mxu1 %v4860_v24  ;;  %v4504_v17 = vld [vmem:[%s6698_s3 + $0x144] ss:$8 sps:$4 sm:$0xff]   ;;  %v4506_v41 = vld [vmem:[%s6698_s3 + $0x140] ss:$8 sps:$4 sm:$0xff]   ;;  %v4507_v19 = vld [vmem:[%s6698_s3 + $0x154] ss:$8 sps:$4 sm:$0xff]  }
 0x141   :  { %v4727_v36 = vpop.eup %4726  ;;  %4738 = vrcp.f32 %v550_v46  ;;  %v643_v23 = vmul.f32 %v4725_v49, %v5152_v54  ;;  %v4509_v30 = vld [vmem:[%s6698_s3 + $0x150] ss:$8 sps:$4 sm:$0xff]   ;;  %v4510_v46 = vld [vmem:[%s6698_s3 + $0x164] ss:$8 sps:$4 sm:$0xff]   ;;  %v4512_v49 = vld [vmem:[%s6698_s3 + $0x160] ss:$8 sps:$4 sm:$0xff]  }
 0x142   :  { %v4729_v43 = vpop.eup %4728  ;;  %v641_v26 = vmul.f32 %v4727_v36, %v5157_v37  ;;  %v4513_v36 = vld [vmem:[%s6698_s3 + $0x174] ss:$8 sps:$4 sm:$0xff]  }
 0x143   :  { %v4731_v21 = vpop.eup %4730  ;;  %v644_v25 = vmul.f32 %v4729_v43, %v5160_v60  ;;  %1120 = vmatpush1.bf16.msra.mxu0 %v732_v13  ;;  %4209 = vmatpush1.bf16.msra.mxu1 %v732_v13  ;;  %v4500_v13 = vld [vmem:[%s6698_s3 + $0x120] ss:$8 sps:$4 sm:$0xff]   ;;  %v4515_v43 = vld [vmem:[%s6698_s3 + $0x170] ss:$8 sps:$4 sm:$0xff]  }
 0x144   :  { %v642_v22 = vmul.f32 %v4731_v21, %v5164_v4  ;;  %1121 = vmatprep.subr.bf16.mxu0 %v4860_v24  ;;  %4194 = vmatprep.subr.bf16.mxu1 %v4860_v24  ;;  %v4516_v21 = vld [vmem:[%s6698_s3 + $0x184] ss:$8 sps:$4 sm:$0xff]  }
 0x145   :  { %v734_v18 = vpack.c.bf16 %v644_v25, %v643_v23  ;;  %v4518_v23 = vld [vmem:[%s6698_s3 + $0x180] ss:$8 sps:$4 sm:$0xff]   ;;  %v4519_v25 = vld [vmem:[%s6698_s3 + $0x194] ss:$8 sps:$4 sm:$0xff]  }
 0x146   :  { %v733_v28 = vpack.c.bf16 %v642_v22, %v641_v26  ;;  %v4521_v26 = vld [vmem:[%s6698_s3 + $0x190] ss:$8 sps:$4 sm:$0xff]   ;;  %v4522_v22 = vld [vmem:[%s6698_s3 + $0x1a4] ss:$8 sps:$4 sm:$0xff]  }
 0x148   :  { %v4733_v32 = vpop.eup %4732  ;;  %1122 = vmatpush1.bf16.msra.mxu0 %v733_v28  ;;  %4210 = vmatpush1.bf16.msra.mxu1 %v733_v28  ;;  %v4525_v28 = vld [vmem:[%s6698_s3 + $0x1b4] ss:$8 sps:$4 sm:$0xff]  }
 0x149   :  { %v4735_v33 = vpop.eup %4734  ;;  %1123 = vmatprep.subr.bf16.mxu0 %v4860_v24  ;;  %4195 = vmatprep.subr.bf16.mxu1 %v4860_v24  ;;  %v647_v37 = vmul.f32 %v4733_v32, %v5176_v20  ;;  %v4444_v20 = vld [vmem:[%s6698_s3] ss:$8 sps:$4 sm:$0xff]   ;;  %v4527_v32 = vld [vmem:[%s6698_s3 + $0x1b0] ss:$8 sps:$4 sm:$0xff]  }
 0x14a   :  { %v4737_v54 = vpop.eup %4736  ;;  %v645_v35 = vmul.f32 %v4735_v33, %v5179_v14  ;;  %v4447_v14 = vld [vmem:[%s6698_s3 + $0x80] ss:$8 sps:$4 sm:$0xff]   ;;  %v4528_v33 = vld [vmem:[%s6698_s3 + $0x1c4] ss:$8 sps:$4 sm:$0xff]  }
 0x14b   :  { %v4739_v60 = vpop.eup %4738  ;;  %v648_v4 = vmul.f32 %v4737_v54, %v5185_v40  ;;  %v4450_v40 = vld [vmem:[%s6698_s3 + $0x14] ss:$8 sps:$4 sm:$0xff]   ;;  %v4530_v54 = vld [vmem:[%s6698_s3 + $0x1c0] ss:$8 sps:$4 sm:$0xff]  }
 0x14c   :  { %v646_v38 = vmul.f32 %v4739_v60, %v5189_v45  ;;  %1124 = vmatpush1.bf16.msra.mxu0 %v734_v18  ;;  %4211 = vmatpush1.bf16.msra.mxu1 %v734_v18  ;;  %v4454_v45 = vld [vmem:[%s6698_s3 + $0x10] ss:$8 sps:$4 sm:$0xff]   ;;  %v4524_v18 = vld [vmem:[%s6698_s3 + $0x1a0] ss:$8 sps:$4 sm:$0xff]   ;;  %v4531_v60 = vld [vmem:[%s6698_s3 + $0x1d4] ss:$8 sps:$4 sm:$0xff]  }
 0x14d   :  { %v736_v39 = vpack.c.bf16 %v648_v4, %v647_v37  ;;  %1125 = vmatprep.subr.bf16.mxu0 %v4860_v24  ;;  %4196 = vmatprep.subr.bf16.mxu1 %v4860_v24  ;;  %v4533_v37 = vld [vmem:[%s6698_s3 + $0x1d0] ss:$8 sps:$4 sm:$0xff]   ;;  %v4534_v4 = vld [vmem:[%s6698_s3 + $0x1e4] ss:$8 sps:$4 sm:$0xff]  }
 0x14e   :  { %v735_v42 = vpack.c.bf16 %v646_v38, %v645_v35  ;;  %v4536_v35 = vld [vmem:[%s6698_s3 + $0x1e0] ss:$8 sps:$4 sm:$0xff]   ;;  %v4537_v38 = vld [vmem:[%s6698_s3 + $0x1f4] ss:$8 sps:$4 sm:$0xff]  }
 0x150   :  { %1126 = vmatpush1.bf16.msra.mxu0 %v735_v42  ;;  %4212 = vmatpush1.bf16.msra.mxu1 %v735_v42  ;;  %v4540_v42 = vld [vmem:[%s6698_s3 + $0x204] ss:$8 sps:$4 sm:$0xff]  }
 0x151   :  { %1127 = vmatprep.subr.bf16.mxu0 %v4860_v24  ;;  %4197 = vmatprep.subr.bf16.mxu1 %v4860_v24 }
 0x154   :  { %1128 = vmatpush1.bf16.msra.mxu0 %v736_v39  ;;  %4213 = vmatpush1.bf16.msra.mxu1 %v736_v39  ;;  %v4539_v39 = vld [vmem:[%s6698_s3 + $0x1f0] ss:$8 sps:$4 sm:$0xff]  }
 0x157   :  { %1130 = vmatmul.mubr.bf16.vlgmr.msra.gmra.mrb[32].mxu0 %v4444_v20  ;;  %1194 = vmatmul.mubr.bf16.vlgmr.msra.gmra.mrb[0].mxu1 %v4447_v14  ;;  %v4542_v20 = vld [vmem:[%s6698_s3 + $0x200] ss:$8 sps:$4 sm:$0xff]   ;;  %v4543_v14 = vld [vmem:[%s6698_s3 + $0x214] ss:$8 sps:$4 sm:$0xff]  }
 0x158   :  { %1137 = vmatprep.mubr.bf16.mxu0 %v4450_v40  ;;  %1201 = vmatprep.mubr.bf16.mxu1 %v4452_v44  ;;  %v4545_v40 = vld [vmem:[%s6698_s3 + $0x210] ss:$8 sps:$4 sm:$0xff]   ;;  %v4546_v44 = vld [vmem:[%s6698_s3 + $0x224] ss:$8 sps:$4 sm:$0xff]  }
 0x15f   :  { %1138 = vmatmul.mubr.bf16.gmra.mrb[36].mxu0 %v4454_v45  ;;  %1202 = vmatmul.mubr.bf16.gmra.mrb[4].mxu1 %v4455_v47  ;;  %v4548_v45 = vld [vmem:[%s6698_s3 + $0x220] ss:$8 sps:$4 sm:$0xff]   ;;  %v4549_v47 = vld [vmem:[%s6698_s3 + $0x234] ss:$8 sps:$4 sm:$0xff]  }
 0x160   :  { %1145 = vmatprep.mubr.bf16.mxu0 %v4456_v48  ;;  %1209 = vmatprep.mubr.bf16.mxu1 %v4458_v50  ;;  %v4552_v48 = vld [vmem:[%s6699_s4 + $0x40] sm:$0xff]  }
 0x161   :  { %v4553_v50 = vld [vmem:[%s6699_s4] sm:$0xff]   ;;  %4032 = vmatprep.subr.bf16.mxu0 %v4552_v48 }
 0x162   :  { %4033 = vmatpush3.bf16.msra.mxu0 %v4553_v50 }
 0x167   :  { %1146 = vmatmul.mubr.bf16.gmra.mrb[40].mxu0 %v4460_v52  ;;  %1210 = vmatmul.mubr.bf16.gmra.mrb[8].mxu1 %v4461_v53  ;;  %v4554_v52 = vld [vmem:[%s6699_s4 + $0x48] sm:$0xff]  }
 0x168   :  { %1153 = vmatprep.mubr.bf16.mxu0 %v4462_v29  ;;  %1217 = vmatprep.mubr.bf16.mxu1 %v4464_v27  ;;  %v4555_v27 = vld [vmem:[%s6699_s4 + $0x8] sm:$0xff]  }
 0x169   :  { %4034 = vmatprep.subr.bf16.mxu0 %v4554_v52 }
 0x16a   :  { %4035 = vmatpush3.bf16.msra.mxu0 %v4555_v27 }
 0x16f   :  { %1154 = vmatmul.mubr.bf16.gmra.mrb[44].mxu0 %v4466_v55  ;;  %1218 = vmatmul.mubr.bf16.gmra.mrb[12].mxu1 %v4467_v58 }
 0x170   :  { %1161 = vmatprep.mubr.bf16.mxu0 %v4468_v2  ;;  %1225 = vmatprep.mubr.bf16.mxu1 %v4470_v31  ;;  %v4551_v2 = vld [vmem:[%s6698_s3 + $0x230] ss:$8 sps:$4 sm:$0xff]   ;;  %s4864_s3 = smov 104  }
 0x177   :  { %1162 = vmatmul.mubr.bf16.gmra.mrb[48].mxu0 %v4472_v56  ;;  %1226 = vmatmul.mubr.bf16.gmra.mrb[16].mxu1 %v4473_v62 }
 0x178   :  { %1169 = vmatprep.mubr.bf16.mxu0 %v4474_v59  ;;  %1233 = vmatprep.mubr.bf16.mxu1 %v4476_v51 }
 0x17f   :  { %1170 = vmatmul.mubr.bf16.gmra.mrb[52].mxu0 %v4478_v5  ;;  %1234 = vmatmul.mubr.bf16.gmra.mrb[20].mxu1 %v4479_v57  ;;  %v4556_v57 = vld [vmem:[%s6699_s4 + $0x50] sm:$0xff]  }
 0x180   :  { %1177 = vmatprep.mubr.bf16.mxu0 %v4480_v61  ;;  %1241 = vmatprep.mubr.bf16.mxu1 %v4482_v63  ;;  %v4557_v61 = vld [vmem:[%s6699_s4 + $0x10] sm:$0xff]   ;;  %v4558_v63 = vld [vmem:[%s6699_s4 + $0x58] sm:$0xff]  }
 0x181   :  { %4036 = vmatprep.subr.bf16.mxu0 %v4556_v57 }
 0x182   :  { %4037 = vmatpush3.bf16.msra.mxu0 %v4557_v61 }
 0x183   :  { %4038 = vmatprep.subr.bf16.mxu0 %v4558_v63 }
 0x187   :  { %1178 = vmatmul.mubr.bf16.gmra.mrb[56].mxu0 %v4484_v1  ;;  %1242 = vmatmul.mubr.bf16.gmra.mrb[24].mxu1 %v4485_v34 }
 0x188   :  { %1185 = vmatprep.mubr.bf16.mxu0 %v4486_v0  ;;  %1249 = vmatprep.mubr.bf16.mxu1 %v4488_v3  ;;  %v4559_v0 = vld [vmem:[%s6699_s4 + $0x18] sm:$0xff]  }
 0x189   :  { %4039 = vmatpush3.bf16.msra.mxu0 %v4559_v0 }
 0x18f   :  { %1186 = vmatmul.mubr.bf16.gmra.mrb[60].mxu0 %v4490_v6  ;;  %1250 = vmatmul.mubr.bf16.gmra.mrb[28].mxu1 %v4491_v7 }
 0x190   :  { %1257 = vmatprep.mubr.bf16.mxu1 %v4492_v8 }
 0x197   :  { %1258 = vmatmul.mubr.bf16.gmra.mrb[32].mxu1 %v4494_v9 }
 0x198   :  { %1265 = vmatprep.mubr.bf16.mxu1 %v4495_v10 }
 0x19f   :  { %1266 = vmatmul.mubr.bf16.gmra.mrb[36].mxu1 %v4497_v11 }
 0x1a0   :  { %1273 = vmatprep.mubr.bf16.mxu1 %v4498_v12 }
 0x1a7   :  { %1274 = vmatmul.mubr.bf16.gmra.mrb[40].mxu1 %v4500_v13  ;;  %v4560_v13 = vld [vmem:[%s6699_s4 + $0x60] sm:$0xff]  }
 0x1a8   :  { %1281 = vmatprep.mubr.bf16.mxu1 %v4501_v15  ;;  %v4561_v15 = vld [vmem:[%s6699_s4 + $0x20] sm:$0xff]   ;;  %4040 = vmatprep.subr.bf16.mxu0 %v4560_v13 }
 0x1a9   :  { %4041 = vmatpush3.bf16.msra.mxu0 %v4561_v15 }
 0x1af   :  { %1282 = vmatmul.mubr.bf16.gmra.mrb[44].mxu1 %v4503_v16  ;;  %v4562_v16 = vld [vmem:[%s6699_s4 + $0x68] sm:$0xff]  }
 0x1b0   :  { %1289 = vmatprep.mubr.bf16.mxu1 %v4504_v17  ;;  %4042 = vmatprep.subr.bf16.mxu0 %v4562_v16 }
 0x1b7   :  { %1290 = vmatmul.mubr.bf16.gmra.mrb[48].mxu1 %v4506_v41 }
 0x1b8   :  { %1297 = vmatprep.mubr.bf16.mxu1 %v4507_v19  ;;  %v4563_v19 = vld [vmem:[%s6699_s4 + $0x28] sm:$0xff]  }
 0x1b9   :  { %4043 = vmatpush3.bf16.msra.mxu0 %v4563_v19 }
 0x1bf   :  { %1298 = vmatmul.mubr.bf16.gmra.mrb[52].mxu1 %v4509_v30 }
 0x1c0   :  { %1305 = vmatprep.mubr.bf16.mxu1 %v4510_v46 }
 0x1c7   :  { %1306 = vmatmul.mubr.bf16.gmra.mrb[56].mxu1 %v4512_v49 }
 0x1c8   :  { %1313 = vmatprep.mubr.bf16.mxu1 %v4513_v36 }
 0x1cf   :  { %1314 = vmatmul.mubr.bf16.gmra.mrb[60].mxu1 %v4515_v43 }
 0x1d0   :  { %1321 = vmatprep.mubr.bf16.mxu1 %v4516_v21 }
 0x1d7   :  { %1322 = vmatmul.mubr.bf16.gmra.mrb[64].mxu1 %v4518_v23 }
 0x1d8   :  { %1329 = vmatprep.mubr.bf16.mxu1 %v4519_v25 }
 0x1df   :  { %1330 = vmatmul.mubr.bf16.gmra.mrb[68].mxu1 %v4521_v26  ;;  %v4564_v26 = vld [vmem:[%s6699_s4 + $0x70] sm:$0xff]  }
 0x1e0   :  { %1337 = vmatprep.mubr.bf16.mxu1 %v4522_v22  ;;  %v4565_v22 = vld [vmem:[%s6699_s4 + $0x30] sm:$0xff]   ;;  %4044 = vmatprep.subr.bf16.mxu0 %v4564_v26 }
 0x1e1   :  { %4045 = vmatpush3.bf16.msra.mxu0 %v4565_v22 }
 0x1e7   :  { %1338 = vmatmul.mubr.bf16.gmra.mrb[72].mxu1 %v4524_v18  ;;  %v4566_v18 = vld [vmem:[%s6699_s4 + $0x78] sm:$0xff]  }
 0x1e8   :  { %1345 = vmatprep.mubr.bf16.mxu1 %v4525_v28  ;;  %4046 = vmatprep.subr.bf16.mxu0 %v4566_v18 }
 0x1ef   :  { %1346 = vmatmul.mubr.bf16.gmra.mrb[76].mxu1 %v4527_v32 }
 0x1f0   :  { %1353 = vmatprep.mubr.bf16.mxu1 %v4528_v33  ;;  %v4567_v33 = vld [vmem:[%s6699_s4 + $0x38] sm:$0xff]  }
 0x1f1   :  { %4047 = vmatpush3.bf16.msra.mxu0 %v4567_v33 }
 0x1f7   :  { %1354 = vmatmul.mubr.bf16.gmra.mrb[80].mxu1 %v4530_v54 }
 0x1f8   :  { %1361 = vmatprep.mubr.bf16.mxu1 %v4531_v60 }
 0x1ff   :  { %1362 = vmatmul.mubr.bf16.gmra.mrb[84].mxu1 %v4533_v37 }
 0x200   :  { %1369 = vmatprep.mubr.bf16.mxu1 %v4534_v4 }
 0x207   :  { %1370 = vmatmul.mubr.bf16.gmra.mrb[88].mxu1 %v4536_v35 }
 0x208   :  { %1377 = vmatprep.mubr.bf16.mxu1 %v4537_v38 }
 0x20f   :  { %1378 = vmatmul.mubr.bf16.gmra.mrb[92].mxu1 %v4539_v39 }
 0x210   :  { %1385 = vmatprep.mubr.bf16.mxu1 %v4540_v42 }
 0x217   :  { %1386 = vmatmul.mubr.bf16.gmra.mrb[96].mxu1 %v4542_v20 }
 0x218   :  { %1393 = vmatprep.mubr.bf16.mxu1 %v4543_v14 }
 0x21f   :  { %1394 = vmatmul.mubr.bf16.gmra.mrb[100].mxu1 %v4545_v40 }
 0x220   :  { %1401 = vmatprep.mubr.bf16.mxu1 %v4546_v44 }
 0x227   :  { %1402 = vmatmul.mubr.bf16.gmra.mrb[104].mxu1 %v4548_v45 }
 0x228   :  { %1409 = vmatprep.mubr.bf16.mxu1 %v4549_v47 }
 0x22a   :  { %v5443_v53 = vpop.f32.mrb[0].mxu1  ;;  %v5445_v29 = vpop.f32.mrb[32].mxu0 }
 0x22b   :  { %v1197_v55 = vpop.f32.mrb[1].mxu1  ;;  %v1133_v58 = vpop.f32.mrb[33].mxu0 }
 0x22c   :  { %v5453_v31 = vpop.f32.mrb[2].mxu1  ;;  %v5455_v56 = vpop.f32.mrb[34].mxu0 }
 0x22d   :  { %v1426_v62 = vpack.c.bf16 %v5453_v31, %v5443_v53  ;;  %v1200_v59 = vpop.f32.mrb[3].mxu1  ;;  %v1418_v51 = vpack.c.bf16 %v5455_v56, %v5445_v29  ;;  %v1136_v5 = vpop.f32.mrb[35].mxu0  ;;  %v4571_v31 = vld [vmem:[%s6699_s4 + $0x88] sm:$0xff]  }
 0x22f   :  { %1410 = vmatmul.mubr.bf16.gmra.mrb[108].mxu1 %v4551_v2 }
 0x232   :  { %v5470_v1 = vpop.f32.mrb[4].mxu1  ;;  %v5472_v34 = vpop.f32.mrb[36].mxu0 }
 0x233   :  { %v1205_v3 = vpop.f32.mrb[5].mxu1  ;;  %v1141_v6 = vpop.f32.mrb[37].mxu0 }
 0x234   :  { %v5477_v7 = vpop.f32.mrb[6].mxu1  ;;  %v5479_v8 = vpop.f32.mrb[38].mxu0 }
 0x235   :  { %v1427_v9 = vpack.c.bf16 %v5477_v7, %v5470_v1  ;;  %v1208_v10 = vpop.f32.mrb[7].mxu1  ;;  %v1419_v11 = vpack.c.bf16 %v5479_v8, %v5472_v34  ;;  %v1144_v12 = vpop.f32.mrb[39].mxu0  ;;  %v4575_v7 = vld [vmem:[%s6699_s4 + $0x98] sm:$0xff]  }
 0x23a   :  { %v5494_v17 = vpop.f32.mrb[8].mxu1  ;;  %v5496_v41 = vpop.f32.mrb[40].mxu0 }
 0x23b   :  { %v1213_v30 = vpop.f32.mrb[9].mxu1  ;;  %v1149_v46 = vpop.f32.mrb[41].mxu0 }
 0x23c   :  { %v5501_v49 = vpop.f32.mrb[10].mxu1  ;;  %v5503_v36 = vpop.f32.mrb[42].mxu0 }
 0x23d   :  { %v1428_v43 = vpack.c.bf16 %v5501_v49, %v5494_v17  ;;  %v1216_v21 = vpop.f32.mrb[11].mxu1  ;;  %v1420_v23 = vpack.c.bf16 %v5503_v36, %v5496_v41  ;;  %v1152_v25 = vpop.f32.mrb[43].mxu0  ;;  %v4579_v49 = vld [vmem:[%s6699_s4 + $0xa8] sm:$0xff]  }
 0x242   :  { %v5518_v28 = vpop.f32.mrb[12].mxu1  ;;  %v5520_v32 = vpop.f32.mrb[44].mxu0 }
 0x243   :  { %v1221_v54 = vpop.f32.mrb[13].mxu1  ;;  %v1157_v60 = vpop.f32.mrb[45].mxu0 }
 0x244   :  { %v5525_v37 = vpop.f32.mrb[14].mxu1  ;;  %v5527_v4 = vpop.f32.mrb[46].mxu0 }
 0x245   :  { %v1429_v35 = vpack.c.bf16 %v5525_v37, %v5518_v28  ;;  %v1224_v38 = vpop.f32.mrb[15].mxu1  ;;  %v1421_v39 = vpack.c.bf16 %v5527_v4, %v5520_v32  ;;  %v1160_v42 = vpop.f32.mrb[47].mxu0  ;;  %v4583_v37 = vld [vmem:[%s6699_s4 + $0xb8] sm:$0xff]  }
 0x24a   :  { %v1227_v20 = vpop.f32.mrb[16].mxu1  ;;  %v1163_v14 = vpop.f32.mrb[48].mxu0 }
 0x24b   :  { %v1229_v40 = vpop.f32.mrb[17].mxu1  ;;  %v1165_v44 = vpop.f32.mrb[49].mxu0 }
 0x24c   :  { %v1230_v45 = vpop.f32.mrb[18].mxu1  ;;  %v1166_v47 = vpop.f32.mrb[50].mxu0 }
 0x24d   :  { %v1430_v48 = vpack.c.bf16 %v1230_v45, %v1227_v20  ;;  %v1232_v50 = vpop.f32.mrb[19].mxu1  ;;  %v1422_v52 = vpack.c.bf16 %v1166_v47, %v1163_v14  ;;  %v1168_v27 = vpop.f32.mrb[51].mxu0 }
 0x24f   :  { %1470 = vrot.lane.b32.xlu0 %v1430_v48, %s4861_s11 }
 0x252   :  { %v1235_v55 = vpop.f32.mrb[20].mxu1  ;;  %v1171_v58 = vpop.f32.mrb[52].mxu0 }
 0x253   :  { %v1237_v2 = vpop.f32.mrb[21].mxu1  ;;  %1458 = vrot.lane.b32.xlu0 %v1422_v52, %s4861_s11  ;;  %v1173_v59 = vpop.f32.mrb[53].mxu0 }
 0x254   :  { %v1238_v5 = vpop.f32.mrb[22].mxu1  ;;  %v1174_v57 = vpop.f32.mrb[54].mxu0 }
 0x255   :  { %v1431_v61 = vpack.c.bf16 %v1238_v5, %v1235_v55  ;;  %v1240_v63 = vpop.f32.mrb[23].mxu1  ;;  %v1423_v0 = vpack.c.bf16 %v1174_v57, %v1171_v58  ;;  %v1176_v3 = vpop.f32.mrb[55].mxu0 }
 0x257   :  { %1472 = vrot.lane.b32.xlu1 %v1431_v61, %s4861_s11 }
 0x25a   :  { %v1179_v6 = vpop.f32.mrb[56].mxu0  ;;  %v1243_v10 = vpop.f32.mrb[24].mxu1 }
 0x25b   :  { %v1245_v12 = vpop.f32.mrb[25].mxu1  ;;  %1460 = vrot.lane.b32.xlu1 %v1423_v0, %s4861_s11  ;;  %v1181_v13 = vpop.f32.mrb[57].mxu0 }
 0x25c   :  { %v1182_v15 = vpop.f32.mrb[58].mxu0  ;;  %v1246_v16 = vpop.f32.mrb[26].mxu1 }
 0x25d   :  { %v1424_v19 = vpack.c.bf16 %v1182_v15, %v1179_v6  ;;  %v1432_v30 = vpack.c.bf16 %v1246_v16, %v1243_v10  ;;  %v1248_v46 = vpop.f32.mrb[27].mxu1  ;;  %v1184_v21 = vpop.f32.mrb[59].mxu0 }
 0x25f   :  { %1474 = vrot.lane.b32.xlu0 %v1432_v30, %s4861_s11  ;;  %1462 = vrot.lane.b32.xlu1 %v1424_v19, %s4861_s11 }
 0x262   :  { %v1187_v25 = vpop.f32.mrb[60].mxu0  ;;  %v1251_v26 = vpop.f32.mrb[28].mxu1 }
 0x263   :  { %v1189_v22 = vpop.f32.mrb[61].mxu0  ;;  %v1253_v18 = vpop.f32.mrb[29].mxu1 }
 0x264   :  { %v1190_v33 = vpop.f32.mrb[62].mxu0  ;;  %v1254_v54 = vpop.f32.mrb[30].mxu1 }
 0x265   :  { %v1425_v60 = vpack.c.bf16 %v1190_v33, %v1187_v25  ;;  %v1433_v38 = vpack.c.bf16 %v1254_v54, %v1251_v26  ;;  %v1256_v42 = vpop.f32.mrb[31].mxu1  ;;  %v1192_v20 = vpop.f32.mrb[63].mxu0  ;;  %v4568_v26 = vld [vmem:[%s6699_s4 + $0xc0] sm:$0xff]  }
 0x266   :  { %4072 = vmatprep.subr.bf16.mxu0 %v4568_v26 }
 0x267   :  { %1476 = vrot.lane.b32.xlu0 %v1433_v38, %s4861_s11  ;;  %1464 = vrot.lane.b32.xlu1 %v1425_v60, %s4861_s11 }
 0x26a   :  { %v5541_v14 = vpop.f32.mrb[32].mxu1 }
 0x26b   :  { %v1261_v40 = vpop.f32.mrb[33].mxu1 }
 0x26c   :  { %v5543_v44 = vpop.f32.mrb[34].mxu1 }
 0x26d   :  { %v1434_v45 = vpack.c.bf16 %v5543_v44, %v5541_v14  ;;  %v1264_v47 = vpop.f32.mrb[35].mxu1  ;;  %v4587_v14 = vld [vmem:[%s6699_s4 + $0x118] sm:$0xff]  }
 0x272   :  { %v5547_v48 = vpop.f32.mrb[36].mxu1 }
 0x273   :  { %v1269_v50 = vpop.f32.mrb[37].mxu1 }
 0x274   :  { %v5549_v52 = vpop.f32.mrb[38].mxu1 }
 0x275   :  { %v1435_v27 = vpack.c.bf16 %v5549_v52, %v5547_v48  ;;  %v1272_v55 = vpop.f32.mrb[39].mxu1 }
 0x27a   :  { %v5553_v58 = vpop.f32.mrb[40].mxu1 }
 0x27b   :  { %v1277_v2 = vpop.f32.mrb[41].mxu1 }
 0x27c   :  { %v5555_v59 = vpop.f32.mrb[42].mxu1 }
 0x27d   :  { %v1436_v5 = vpack.c.bf16 %v5555_v59, %v5553_v58  ;;  %v1280_v57 = vpop.f32.mrb[43].mxu1 }
 0x282   :  { %v5559_v61 = vpop.f32.mrb[44].mxu1 }
 0x283   :  { %v1285_v63 = vpop.f32.mrb[45].mxu1 }
 0x284   :  { %v5561_v0 = vpop.f32.mrb[46].mxu1 }
 0x285   :  { %v1437_v3 = vpack.c.bf16 %v5561_v0, %v5559_v61  ;;  %v1288_v6 = vpop.f32.mrb[47].mxu1 }
 0x28a   :  { %v1291_v10 = vpop.f32.mrb[48].mxu1 }
 0x28b   :  { %v1293_v12 = vpop.f32.mrb[49].mxu1 }
 0x28c   :  { %v1294_v13 = vpop.f32.mrb[50].mxu1 }
 0x28d   :  { %v1438_v15 = vpack.c.bf16 %v1294_v13, %v1291_v10  ;;  %v1296_v16 = vpop.f32.mrb[51].mxu1 }
 0x28f   :  { %1482 = vrot.lane.b32.xlu1 %v1438_v15, %s4861_s11 }
 0x292   :  { %v1299_v19 = vpop.f32.mrb[52].mxu1 }
 0x293   :  { %v1301_v30 = vpop.f32.mrb[53].mxu1 }
 0x294   :  { %v1302_v46 = vpop.f32.mrb[54].mxu1 }
 0x295   :  { %v1439_v21 = vpack.c.bf16 %v1302_v46, %v1299_v19  ;;  %v1304_v25 = vpop.f32.mrb[55].mxu1 }
 0x297   :  { %1484 = vrot.lane.b32.xlu1 %v1439_v21, %s4861_s11 }
 0x29a   :  { %v1307_v22 = vpop.f32.mrb[56].mxu1 }
 0x29b   :  { %v1309_v18 = vpop.f32.mrb[57].mxu1 }
 0x29c   :  { %v1310_v33 = vpop.f32.mrb[58].mxu1 }
 0x29d   :  { %v1440_v54 = vpack.c.bf16 %v1310_v33, %v1307_v22  ;;  %v1312_v60 = vpop.f32.mrb[59].mxu1 }
 0x29f   :  { %1486 = vrot.lane.b32.xlu1 %v1440_v54, %s4861_s11  ;;  %v4569_v54 = vld [vmem:[%s6699_s4 + $0x80] sm:$0xff]  }
 0x2a2   :  { %v1315_v38 = vpop.f32.mrb[60].mxu1 }
 0x2a3   :  { %v1317_v42 = vpop.f32.mrb[61].mxu1 }
 0x2a4   :  { %v1318_v20 = vpop.f32.mrb[62].mxu1 }
 0x2a5   :  { %v1441_v40 = vpack.c.bf16 %v1318_v20, %v1315_v38  ;;  %v1320_v47 = vpop.f32.mrb[63].mxu1  ;;  %v4570_v20 = vld [vmem:[%s6699_s4 + $0xc8] sm:$0xff]  }
 0x2a7   :  { %1488 = vrot.lane.b32.xlu1 %v1441_v40, %s4861_s11  ;;  %v4572_v40 = vld [vmem:[%s6699_s4 + $0xd0] sm:$0xff]  }
 0x2aa   :  { %v5572_v50 = vpop.f32.mrb[64].mxu1 }
 0x2ab   :  { %v1325_v55 = vpop.f32.mrb[65].mxu1 }
 0x2ac   :  { %v5574_v2 = vpop.f32.mrb[66].mxu1  ;;  %v4573_v55 = vld [vmem:[%s6699_s4 + $0x90] sm:$0xff]  }
 0x2ad   :  { %v1442_v57 = vpack.c.bf16 %v5574_v2, %v5572_v50  ;;  %v1328_v63 = vpop.f32.mrb[67].mxu1 }
 0x2b2   :  { %v5578_v6 = vpop.f32.mrb[68].mxu1 }
 0x2b3   :  { %v1333_v10 = vpop.f32.mrb[69].mxu1 }
 0x2b4   :  { %v5580_v12 = vpop.f32.mrb[70].mxu1 }
 0x2b5   :  { %v1443_v13 = vpack.c.bf16 %v5580_v12, %v5578_v6  ;;  %v1336_v15 = vpop.f32.mrb[71].mxu1 }
 0x2ba   :  { %v5584_v16 = vpop.f32.mrb[72].mxu1 }
 0x2bb   :  { %v1341_v19 = vpop.f32.mrb[73].mxu1 }
 0x2bc   :  { %v5586_v30 = vpop.f32.mrb[74].mxu1  ;;  %v4574_v19 = vld [vmem:[%s6699_s4 + $0xd8] sm:$0xff]  }
 0x2bd   :  { %v1444_v46 = vpack.c.bf16 %v5586_v30, %v5584_v16  ;;  %v1344_v21 = vpop.f32.mrb[75].mxu1 }
 0x2be   :  { %v4576_v21 = vld [vmem:[%s6699_s4 + $0xe0] sm:$0xff]  }
 0x2c1   :  { %v1471_v25 = vpop.permute.xlu0 %1470 }
 0x2c2   :  { %v5590_v26 = vpop.f32.mrb[76].mxu1  ;;  %v1521_v22 = vsel %vm1502_vm2, %v1426_v62, %v1471_v25 }
 0x2c3   :  { %v1349_v18 = vpop.f32.mrb[77].mxu1  ;;  %1906 = vmatprep.mubr.bf16.mxu0 %v1521_v22 }
 0x2c4   :  { %v5596_v33 = vpop.f32.mrb[78].mxu1  ;;  %v4577_v18 = vld [vmem:[%s6699_s4 + $0xa0] sm:$0xff]  }
 0x2c5   :  { %v1445_v60 = vpack.c.bf16 %v5596_v33, %v5590_v26  ;;  %v1352_v38 = vpop.f32.mrb[79].mxu1  ;;  %v1459_v42 = vpop.permute.xlu0 %1458 }
 0x2c6   :  { %v1505_v53 = vsel %vm1502_vm2, %v1418_v51, %v1459_v42  ;;  %v4578_v42 = vld [vmem:[%s6699_s4 + $0xe8] sm:$0xff]  }
 0x2c7   :  { %1907 = vmatmul.mubr.bf16.vlgmr.msra.gmra.mrb[64].mxu0 %v1505_v53 }
 0x2c8   :  { %4073 = vmatpush3.bf16.msra.mxu0 %v4569_v54 }
 0x2c9   :  { %v1473_v62 = vpop.permute.xlu1 %1472  ;;  %4074 = vmatprep.subr.bf16.mxu0 %v4570_v20  ;;  %v4580_v20 = vld [vmem:[%s6699_s4 + $0xf0] sm:$0xff]  }
 0x2ca   :  { %v1355_v47 = vpop.f32.mrb[80].mxu1  ;;  %v1525_v29 = vsel %vm1502_vm2, %v1427_v9, %v1473_v62  ;;  %v4581_v62 = vld [vmem:[%s6699_s4 + $0xb0] sm:$0xff]  }
 0x2cb   :  { %v1357_v56 = vpop.f32.mrb[81].mxu1  ;;  %1914 = vmatprep.mubr.bf16.mxu0 %v1525_v29  ;;  %v4582_v29 = vld [vmem:[%s6699_s4 + $0xf8] sm:$0xff]  }
 0x2cc   :  { %v1358_v51 = vpop.f32.mrb[82].mxu1  ;;  %4075 = vmatpush3.bf16.msra.mxu0 %v4571_v31 }
 0x2cd   :  { %v1446_v63 = vpack.c.bf16 %v1358_v51, %v1355_v47  ;;  %v1360_v10 = vpop.f32.mrb[83].mxu1  ;;  %v1461_v15 = vpop.permute.xlu1 %1460  ;;  %4076 = vmatprep.subr.bf16.mxu0 %v4572_v40 }
 0x2ce   :  { %v1509_v1 = vsel %vm1502_vm2, %v1419_v11, %v1461_v15 }
 0x2cf   :  { %1494 = vrot.lane.b32.xlu0 %v1446_v63, %s4861_s11  ;;  %1915 = vmatmul.mubr.bf16.gmra.mrb[68].mxu0 %v1509_v1 }
 0x2d0   :  { %4077 = vmatpush3.bf16.msra.mxu0 %v4573_v55 }
 0x2d1   :  { %v1475_v9 = vpop.permute.xlu0 %1474  ;;  %4078 = vmatprep.subr.bf16.mxu0 %v4574_v19  ;;  %v1463_v8 = vpop.permute.xlu1 %1462 }
 0x2d2   :  { %v1363_v25 = vpop.f32.mrb[84].mxu1  ;;  %v1529_v34 = vsel %vm1502_vm2, %v1428_v43, %v1475_v9  ;;  %v1513_v17 = vsel %vm1502_vm2, %v1420_v23, %v1463_v8 }
 0x2d3   :  { %v1365_v11 = vpop.f32.mrb[85].mxu1  ;;  %1922 = vmatprep.mubr.bf16.mxu0 %v1529_v34 }
 0x2d4   :  { %v1366_v22 = vpop.f32.mrb[86].mxu1  ;;  %4079 = vmatpush3.bf16.msra.mxu0 %v4575_v7 }
 0x2d5   :  { %v1447_v54 = vpack.c.bf16 %v1366_v22, %v1363_v25  ;;  %v1368_v38 = vpop.f32.mrb[87].mxu1  ;;  %4080 = vmatprep.subr.bf16.mxu0 %v4576_v21 }
 0x2d7   :  { %1496 = vrot.lane.b32.xlu0 %v1447_v54, %s4861_s11  ;;  %1923 = vmatmul.mubr.bf16.gmra.mrb[72].mxu0 %v1513_v17 }
 0x2d8   :  { %4081 = vmatpush3.bf16.msra.mxu0 %v4577_v18 }
 0x2d9   :  { %v1477_v43 = vpop.permute.xlu0 %1476  ;;  %4082 = vmatprep.subr.bf16.mxu0 %v4578_v42  ;;  %v1465_v36 = vpop.permute.xlu1 %1464 }
 0x2da   :  { %v1371_v53 = vpop.f32.mrb[88].mxu1  ;;  %v1533_v41 = vsel %vm1502_vm2, %v1429_v35, %v1477_v43  ;;  %v1517_v28 = vsel %vm1502_vm2, %v1421_v39, %v1465_v36  ;;  %v4584_v35 = vld [vmem:[%s6699_s4 + $0x100] sm:$0xff]  }
 0x2db   :  { %v1373_v23 = vpop.f32.mrb[89].mxu1  ;;  %1930 = vmatprep.mubr.bf16.mxu0 %v1533_v41  ;;  %v4585_v41 = vld [vmem:[%s6699_s4 + $0x108] sm:$0xff]  }
 0x2dc   :  { %v1374_v31 = vpop.f32.mrb[90].mxu1  ;;  %4083 = vmatpush3.bf16.msra.mxu0 %v4579_v49  ;;  %v4586_v23 = vld [vmem:[%s6699_s4 + $0x110] sm:$0xff]  }
 0x2dd   :  { %v1448_v40 = vpack.c.bf16 %v1374_v31, %v1371_v53  ;;  %v1376_v47 = vpop.f32.mrb[91].mxu1  ;;  %4084 = vmatprep.subr.bf16.mxu0 %v4580_v20 }
 0x2df   :  { %1498 = vrot.lane.b32.xlu0 %v1448_v40, %s4861_s11  ;;  %1931 = vmatmul.mubr.bf16.gmra.mrb[76].mxu0 %v1517_v28 }
 0x2e0   :  { %4085 = vmatpush3.bf16.msra.mxu0 %v4581_v62 }
 0x2e1   :  { %4086 = vmatprep.subr.bf16.mxu0 %v4582_v29 }
 0x2e2   :  { %v1379_v56 = vpop.f32.mrb[92].mxu1 }
 0x2e3   :  { %v1381_v51 = vpop.f32.mrb[93].mxu1 }
 0x2e4   :  { %v1382_v55 = vpop.f32.mrb[94].mxu1  ;;  %4087 = vmatpush3.bf16.msra.mxu0 %v4583_v37 }
 0x2e5   :  { %v1449_v32 = vpack.c.bf16 %v1382_v55, %v1379_v56  ;;  %v1384_v4 = vpop.f32.mrb[95].mxu1  ;;  %4166 = vmatprep.subr.bf16.mxu0 %v4584_v35 }
 0x2e7   :  { %1500 = vrot.lane.b32.xlu0 %v1449_v32, %s4861_s11 }
 0x2ea   :  { %v1387_v39 = vpop.f32.mrb[96].mxu1 }
 0x2eb   :  { %v1389_v63 = vpop.f32.mrb[97].mxu1 }
 0x2ec   :  { %v1390_v10 = vpop.f32.mrb[98].mxu1  ;;  %v4588_v63 = vld [vmem:[%s6701_s6] ss:$8 sps:$4 sm:$0xff]  }
 0x2ed   :  { %v1450_v15 = vpack.c.bf16 %v1390_v10, %v1387_v39  ;;  %v1392_v19 = vpop.f32.mrb[99].mxu1  ;;  %v4590_v39 = vld [vmem:[%s6701_s6 + $0x4] ss:$8 sps:$4 sm:$0xff]   ;;  %v4593_v10 = vld [vmem:[%s6701_s6 + $0x14] ss:$8 sps:$4 sm:$0xff]  }
 0x2ee   :  { %v4596_v19 = vld [vmem:[%s6701_s6 + $0x24] ss:$8 sps:$4 sm:$0xff]  }
 0x2f2   :  { %v1395_v1 = vpop.f32.mrb[100].mxu1 }
 0x2f3   :  { %v1397_v7 = vpop.f32.mrb[101].mxu1 }
 0x2f4   :  { %v1398_v9 = vpop.f32.mrb[102].mxu1  ;;  %v4599_v7 = vld [vmem:[%s6701_s6 + $0x34] ss:$8 sps:$4 sm:$0xff]  }
 0x2f5   :  { %v1451_v21 = vpack.c.bf16 %v1398_v9, %v1395_v1  ;;  %v1400_v25 = vpop.f32.mrb[103].mxu1  ;;  %v4594_v1 = vld [vmem:[%s6701_s6 + $0x20] ss:$8 sps:$4 sm:$0xff]   ;;  %v4597_v9 = vld [vmem:[%s6701_s6 + $0x30] ss:$8 sps:$4 sm:$0xff]  }
 0x2f6   :  { %v4600_v25 = vld [vmem:[%s6701_s6 + $0x40] ss:$8 sps:$4 sm:$0xff]  }
 0x2fa   :  { %v1403_v34 = vpop.f32.mrb[104].mxu1 }
 0x2fb   :  { %v1405_v8 = vpop.f32.mrb[105].mxu1 }
 0x2fc   :  { %v1406_v11 = vpop.f32.mrb[106].mxu1  ;;  %v4603_v8 = vld [vmem:[%s6701_s6 + $0x50] ss:$8 sps:$4 sm:$0xff]  }
 0x2fd   :  { %v1452_v22 = vpack.c.bf16 %v1406_v11, %v1403_v34  ;;  %v1408_v18 = vpop.f32.mrb[107].mxu1  ;;  %v4605_v34 = vld [vmem:[%s6701_s6 + $0x54] ss:$8 sps:$4 sm:$0xff]   ;;  %v4608_v11 = vld [vmem:[%s6701_s6 + $0x64] ss:$8 sps:$4 sm:$0xff]  }
 0x2fe   :  { %v4611_v18 = vld [vmem:[%s6701_s6 + $0x74] ss:$8 sps:$4 sm:$0xff]  }
 0x301   :  { %v1483_v43 = vpop.permute.xlu1 %1482 }
 0x302   :  { %v1411_v54 = vpop.f32.mrb[108].mxu1  ;;  %v1537_v36 = vsel %vm1502_vm2, %v1434_v45, %v1483_v43 }
 0x303   :  { %v1413_v38 = vpop.f32.mrb[109].mxu1 }
 0x304   :  { %v1414_v42 = vpop.f32.mrb[110].mxu1  ;;  %v3912_v38 = vld [vmem:[%s6700_s5] ss:$0 sm:$0xff] }
 0x305   :  { %v1453_v17 = vpack.c.bf16 %v1414_v42, %v1411_v54  ;;  %v1416_v49 = vpop.f32.mrb[111].mxu1  ;;  %v4609_v54 = vld [vmem:[%s6701_s6 + $0x70] ss:$8 sps:$4 sm:$0xff]  }
 0x309   :  { %v1485_v50 = vpop.permute.xlu1 %1484 }
 0x30a   :  { %v1541_v44 = vsel %vm1502_vm2, %v1435_v27, %v1485_v50 }
 0x311   :  { %v1487_v45 = vpop.permute.xlu1 %1486 }
 0x312   :  { %v1545_v12 = vsel %vm1502_vm2, %v1436_v5, %v1487_v45 }
 0x319   :  { %v1489_v48 = vpop.permute.xlu1 %1488 }
 0x341   :  { %v1495_v20 = vpop.permute.xlu0 %1494 }
 0x342   :  { %v1553_v53 = vsel %vm1502_vm2, %v1442_v57, %v1495_v20 }
 0x343   :  { %1971 = vmatprep.mubr.bf16.mxu0 %v1553_v53 }
 0x344   :  { %1972 = vmatmul.mubr.bf16.vlgmr.msra.gmra.mrb[80].mxu0 %v1537_v36 }
 0x345   :  { %4167 = vmatpush3.bf16.msra.mxu0 %v4584_v35 }
 0x346   :  { %4168 = vmatprep.subr.bf16.mxu0 %v4585_v41 }
 0x349   :  { %v1497_v2 = vpop.permute.xlu0 %1496  ;;  %4169 = vmatpush3.bf16.msra.mxu0 %v4585_v41 }
 0x34a   :  { %v1557_v57 = vsel %vm1502_vm2, %v1443_v13, %v1497_v2  ;;  %4170 = vmatprep.subr.bf16.mxu0 %v4586_v23  ;;  %v1549_v13 = vsel %vm1502_vm2, %v1437_v3, %v1489_v48 }
 0x34b   :  { %1979 = vmatprep.mubr.bf16.mxu0 %v1557_v57 }
 0x34c   :  { %1980 = vmatmul.mubr.bf16.gmra.mrb[84].mxu0 %v1541_v44 }
 0x34d   :  { %4171 = vmatpush3.bf16.msra.mxu0 %v4586_v23 }
 0x34e   :  { %4172 = vmatprep.subr.bf16.mxu0 %v4587_v14 }
 0x351   :  { %v1499_v31 = vpop.permute.xlu0 %1498  ;;  %4173 = vmatpush3.bf16.msra.mxu0 %v4587_v14 }
 0x352   :  { %v1561_v6 = vsel %vm1502_vm2, %v1444_v46, %v1499_v31  ;;  %2237 = vmatprep.subr.bf16.mxu0 %v4590_v39 }
 0x353   :  { %1987 = vmatprep.mubr.bf16.mxu0 %v1561_v6 }
 0x354   :  { %1988 = vmatmul.mubr.bf16.gmra.mrb[88].mxu0 %v1545_v12 }
 0x359   :  { %v1501_v52 = vpop.permute.xlu0 %1500 }
 0x35a   :  { %v1565_v27 = vsel %vm1502_vm2, %v1445_v60, %v1501_v52 }
 0x35b   :  { %1995 = vmatprep.mubr.bf16.mxu0 %v1565_v27 }
 0x35c   :  { %1996 = vmatmul.mubr.bf16.gmra.mrb[92].mxu0 %v1549_v13 }
 0x35d   :  { %4174 = vmatprep.mubr.msk.bf16.mxu0 %vm1502_vm2, %v1450_v15  ;;  %v4591_v15 = vld [vmem:[%s6701_s6 + $0x10] ss:$8 sps:$4 sm:$0xff]  }
 0x364   :  { %4175 = vmatmul.mubr.msk.bf16.vlgmr.msra.gmra.mrb[96].mxu0 %vm1502_vm2, %v1451_v21  ;;  %v4602_v21 = vld [vmem:[%s6701_s6 + $0x44] ss:$8 sps:$4 sm:$0xff]  }
 0x365   :  { %4178 = vmatprep.mubr.msk.bf16.mxu0 %vm1502_vm2, %v1452_v22  ;;  %2238 = vmatpush1.bf16.msra.mxu0 %v4588_v63  ;;  %v4606_v22 = vld [vmem:[%s6701_s6 + $0x60] ss:$8 sps:$4 sm:$0xff]   ;;  %s4874_s6 = smov 36  }
 0x366   :  { %2239 = vmatprep.subr.bf16.mxu0 %v4593_v10 }
 0x369   :  { %2240 = vmatpush1.bf16.msra.mxu0 %v4591_v15 }
 0x36a   :  { %2241 = vmatprep.subr.bf16.mxu0 %v4596_v19 }
 0x36c   :  { %4179 = vmatmul.mubr.msk.bf16.gmra.mrb[100].mxu0 %vm1502_vm2, %v1453_v17 }
 0x36d   :  { %2269 = vmatprep.mubr.bf16.mxu0 %v4860_v24  ;;  %2242 = vmatpush1.bf16.msra.mxu0 %v4594_v1 }
 0x36e   :  { %2243 = vmatprep.subr.bf16.mxu0 %v4599_v7 }
 0x371   :  { %2244 = vmatpush1.bf16.msra.mxu0 %v4597_v9 }
 0x372   :  { %2245 = vmatprep.subr.bf16.mxu0 %v4602_v21 }
 0x375   :  { %2246 = vmatpush1.bf16.msra.mxu0 %v4600_v25 }
 0x376   :  { %2247 = vmatprep.subr.bf16.mxu0 %v4605_v34 }
 0x379   :  { %2248 = vmatpush1.bf16.msra.mxu0 %v4603_v8 }
 0x37a   :  { %2249 = vmatprep.subr.bf16.mxu0 %v4608_v11 }
 0x37d   :  { %2250 = vmatpush1.bf16.msra.mxu0 %v4606_v22 }
 0x37e   :  { %2251 = vmatprep.subr.bf16.mxu0 %v4611_v18 }
 0x381   :  { %2252 = vmatpush1.bf16.msra.mxu0 %v4609_v54 }
 0x39a   :  { %v4048_v58 = vpop.f32.mrb[64].mxu0 }
 0x39b   :  { %v4049_v59 = vpop.f32.mrb[65].mxu0 }
 0x39c   :  { %v4050_v5 = vadd.f32 %v4049_v59, %v4048_v58  ;;  %v4051_v16 = vpop.f32.mrb[66].mxu0 }
 0x39d   :  { %v4052_v30 = vpop.f32.mrb[67].mxu0 }
 0x39e   :  { %v4053_v46 = vadd.f32 %v4052_v30, %v4051_v16  ;;  %v1909_v49 = vadd.f32 %v4050_v5, %v3912_v38 }
 0x3a0   :  { %v1912_v41 = vadd.f32 %v4053_v46, %v3912_v38 }
 0x3a2   :  { %v4054_v61 = vpop.f32.mrb[68].mxu0 }
 0x3a3   :  { %v4055_v0 = vpop.f32.mrb[69].mxu0 }
 0x3a4   :  { %v4056_v3 = vadd.f32 %v4055_v0, %v4054_v61  ;;  %v4057_v26 = vpop.f32.mrb[70].mxu0 }
 0x3a5   :  { %v4058_v33 = vpop.f32.mrb[71].mxu0 }
 0x3a6   :  { %v4059_v60 = vadd.f32 %v4058_v33, %v4057_v26  ;;  %v1917_v14 = vadd.f32 %v4056_v3, %v3912_v38 }
 0x3a8   :  { %v1920_v6 = vadd.f32 %v4059_v60, %v3912_v38 }
 0x3aa   :  { %v4060_v62 = vpop.f32.mrb[72].mxu0 }
 0x3ab   :  { %v4061_v40 = vpop.f32.mrb[73].mxu0 }
 0x3ac   :  { %v5726_v47 = vadd.f32 %v4061_v40, %v4060_v62  ;;  %v4063_v29 = vpop.f32.mrb[74].mxu0 }
 0x3ad   :  { %v4064_v28 = vpop.f32.mrb[75].mxu0 }
 0x3ae   :  { %v5728_v37 = vadd.f32 %v4064_v28, %v4063_v29  ;;  %v1925_v58 = vadd.f32 %v5726_v47, %v3912_v38 }
 0x3b0   :  { %v1928_v30 = vadd.f32 %v5728_v37, %v3912_v38 }
 0x3b2   :  { %v4066_v35 = vpop.f32.mrb[76].mxu0 }
 0x3b3   :  { %v4067_v56 = vpop.f32.mrb[77].mxu0 }
 0x3b4   :  { %v5730_v51 = vadd.f32 %v4067_v56, %v4066_v35  ;;  %v4069_v55 = vpop.f32.mrb[78].mxu0 }
 0x3b5   :  { %v4070_v32 = vpop.f32.mrb[79].mxu0 }
 0x3b6   :  { %v5732_v4 = vadd.f32 %v4070_v32, %v4069_v55  ;;  %v1933_v33 = vadd.f32 %v5730_v51, %v3912_v38 }
 0x3b8   :  { %v1936_v29 = vadd.f32 %v5732_v4, %v3912_v38 }
 0x417   :  { %v4088_v42 = vpop.f32.mrb[80].mxu0 }
 0x418   :  { %v4089_v17 = vpop.f32.mrb[81].mxu0 }
 0x419   :  { %v4090_v43 = vadd.f32 %v4089_v17, %v4088_v42  ;;  %v4091_v20 = vpop.f32.mrb[82].mxu0 }
 0x41a   :  { %v4092_v53 = vpop.f32.mrb[83].mxu0 }
 0x41b   :  { %v4093_v36 = vadd.f32 %v4092_v53, %v4091_v20  ;;  %v1974_v23 = vadd.f32 %v4090_v43, %v1909_v49 }
 0x41d   :  { %v1977_v50 = vadd.f32 %v4093_v36, %v1912_v41 }
 0x41f   :  { %v4094_v2 = vpop.f32.mrb[84].mxu0 }
 0x420   :  { %v4095_v57 = vpop.f32.mrb[85].mxu0 }
 0x421   :  { %v4096_v44 = vadd.f32 %v4095_v57, %v4094_v2  ;;  %v4097_v45 = vpop.f32.mrb[86].mxu0 }
 0x422   :  { %v4098_v31 = vpop.f32.mrb[87].mxu0 }
 0x423   :  { %v4099_v12 = vadd.f32 %v4098_v31, %v4097_v45  ;;  %v1982_v48 = vadd.f32 %v4096_v44, %v1917_v14 }
 0x425   :  { %v1985_v52 = vadd.f32 %v4099_v12, %v1920_v6 }
 0x427   :  { %v4100_v27 = vpop.f32.mrb[88].mxu0 }
 0x428   :  { %v4101_v13 = vpop.f32.mrb[89].mxu0 }
 0x429   :  { %v4102_v59 = vadd.f32 %v4101_v13, %v4100_v27  ;;  %v4103_v5 = vpop.f32.mrb[90].mxu0 }
 0x42a   :  { %v4104_v16 = vpop.f32.mrb[91].mxu0 }
 0x42b   :  { %v4105_v46 = vadd.f32 %v4104_v16, %v4103_v5  ;;  %v1990_v61 = vadd.f32 %v4102_v59, %v1925_v58 }
 0x42d   :  { %v1993_v0 = vadd.f32 %v4105_v46, %v1928_v30 }
 0x42f   :  { %v4106_v3 = vpop.f32.mrb[92].mxu0 }
 0x430   :  { %v4107_v26 = vpop.f32.mrb[93].mxu0 }
 0x431   :  { %v4108_v60 = vadd.f32 %v4107_v26, %v4106_v3  ;;  %v4109_v62 = vpop.f32.mrb[94].mxu0 }
 0x432   :  { %v4110_v40 = vpop.f32.mrb[95].mxu0 }
 0x433   :  { %v4111_v28 = vadd.f32 %v4110_v40, %v4109_v62  ;;  %v1998_v35 = vadd.f32 %v4108_v60, %v1933_v33 }
 0x435   :  { %v2001_v47 = vadd.f32 %v4111_v28, %v1936_v29  ;;  %v2147_v28 = vlaneseq }
 0x437   :  { %v4176_v56 = vpop.f32.mrb[96].mxu0 }
 0x438   :  { %v2047_v55 = vadd.f32 %v4176_v56, %v1982_v48  ;;  %v2038_v32 = vpop.f32.mrb[97].mxu0  ;;  %v2145_v56 = vld [vmem:[%s6702_s7] sm:$0x3]  ;;  %s4862_s7 = smov 116  }
 0x439   :  { %v2039_v39 = vadd.f32 %v2038_v32, %v1974_v23  ;;  %v4177_v37 = vpop.f32.mrb[98].mxu0 }
 0x43a   :  { %v3955_v63 = vmul.f32 -1.442695, %v2047_v55  ;;  %v2050_v10 = vadd.f32 %v4177_v37, %v1985_v52  ;;  %v2041_v15 = vpop.f32.mrb[99].mxu0 }
 0x43b   :  { %v3953_v19 = vmul.f32 -1.442695, %v2039_v39  ;;  %v2042_v1 = vadd.f32 %v2041_v15, %v1977_v50 }
 0x43c   :  { %4740 = vpow2.f32 %v3955_v63  ;;  %v3956_v51 = vmul.f32 -1.442695, %v2050_v10 }
 0x43d   :  { %4742 = vpow2.f32 %v3953_v19  ;;  %v3954_v7 = vmul.f32 -1.442695, %v2042_v1 }
 0x43e   :  { %4744 = vpow2.f32 %v3956_v51 }
 0x43f   :  { %4746 = vpow2.f32 %v3954_v7  ;;  %v4180_v4 = vpop.f32.mrb[100].mxu0 }
 0x440   :  { %v2063_v9 = vadd.f32 %v4180_v4, %v1998_v35  ;;  %v2054_v21 = vpop.f32.mrb[101].mxu0  ;;  %v5792_v35 = vshrl.u32 %v2147_v28, 7 }
 0x441   :  { %v2055_v25 = vadd.f32 %v2054_v21, %v1990_v61  ;;  %v4181_v34 = vpop.f32.mrb[102].mxu0 }
 0x442   :  { %v3959_v8 = vmul.f32 -1.442695, %v2063_v9  ;;  %v2066_v11 = vadd.f32 %v4181_v34, %v2001_v47  ;;  %v2057_v22 = vpop.f32.mrb[103].mxu0  ;;  %v2149_v47 = vsub.s32 0, %v5792_v35 }
 0x443   :  { %v3957_v18 = vmul.f32 -1.442695, %v2055_v25  ;;  %v2058_v54 = vadd.f32 %v2057_v22, %v1993_v0 }
 0x444   :  { %4748 = vpow2.f32 %v3959_v8  ;;  %v3960_v38 = vmul.f32 -1.442695, %v2066_v11  ;;  %v2150_v32 = vrot.slane %v2145_v56, %v2149_v47 }
 0x445   :  { %4750 = vpow2.f32 %v3957_v18  ;;  %v3958_v42 = vmul.f32 -1.442695, %v2058_v54 }
 0x446   :  { %v4741_v17 = vpop.eup %4740  ;;  %4752 = vpow2.f32 %v3960_v38 }
 0x447   :  { %v4743_v49 = vpop.eup %4742  ;;  %v2095_v43 = vadd.f32 1.0, %v4741_v17  ;;  %4754 = vpow2.f32 %v3958_v42 }
 0x448   :  { %v4745_v20 = vpop.eup %4744  ;;  %v2093_v53 = vadd.f32 1.0, %v4743_v49 }
 0x449   :  { %v4747_v41 = vpop.eup %4746  ;;  %4756 = vrcp.f32 %v2095_v43  ;;  %v2096_v36 = vadd.f32 1.0, %v4745_v20 }
 0x44a   :  { %4758 = vrcp.f32 %v2093_v53  ;;  %v2094_v23 = vadd.f32 1.0, %v4747_v41 }
 0x44b   :  { %4760 = vrcp.f32 %v2096_v36 }
 0x44c   :  { %4762 = vrcp.f32 %v2094_v23 }
 0x44e   :  { %v4749_v50 = vpop.eup %4748 }
 0x44f   :  { %v4751_v2 = vpop.eup %4750  ;;  %v2099_v57 = vadd.f32 1.0, %v4749_v50 }
 0x450   :  { %v4753_v14 = vpop.eup %4752  ;;  %v2097_v44 = vadd.f32 1.0, %v4751_v2 }
 0x451   :  { %v4755_v45 = vpop.eup %4754  ;;  %4764 = vrcp.f32 %v2099_v57  ;;  %v2100_v31 = vadd.f32 1.0, %v4753_v14 }
 0x452   :  { %4766 = vrcp.f32 %v2097_v44  ;;  %v2098_v6 = vadd.f32 1.0, %v4755_v45 }
 0x453   :  { %v4757_v12 = vpop.eup %4756  ;;  %4768 = vrcp.f32 %v2100_v31 }
 0x454   :  { %v4759_v48 = vpop.eup %4758  ;;  %4770 = vrcp.f32 %v2098_v6  ;;  %v2119_v13 = vmul.f32 %v4757_v12, %v2047_v55  ;;  %v2153_v55 = vsub.s32 1, %v5792_v35 }
 0x455   :  { %v4761_v52 = vpop.eup %4760  ;;  %v2117_v59 = vmul.f32 %v4759_v48, %v2039_v39 }
 0x456   :  { %v4763_v27 = vpop.eup %4762  ;;  %v2120_v58 = vmul.f32 %v4761_v52, %v2050_v10  ;;  %v5803_v39 = vrot.slane %v2145_v56, %v2153_v55 }
 0x457   :  { %v2118_v5 = vmul.f32 %v4763_v27, %v2042_v1 }
 0x458   :  { %v2126_v16 = vpack.c.bf16 %v2120_v58, %v2119_v13 }
 0x459   :  { %v2125_v30 = vpack.c.bf16 %v2118_v5, %v2117_v59 }
 0x45b   :  { %v4765_v46 = vpop.eup %4764  ;;  %2270 = vmatmul.mubr.bf16.vlgmr.msra.gmra.mrb[104].mxu0 %v2125_v30 }
 0x45c   :  { %v4767_v61 = vpop.eup %4766  ;;  %2279 = vmatprep.mubr.bf16.mxu0 %v4860_v24  ;;  %v2123_v26 = vmul.f32 %v4765_v46, %v2063_v9 }
 0x45d   :  { %v4769_v0 = vpop.eup %4768  ;;  %v2121_v60 = vmul.f32 %v4767_v61, %v2055_v25 }
 0x45e   :  { %v4771_v3 = vpop.eup %4770  ;;  %v2124_v33 = vmul.f32 %v4769_v0, %v2066_v11 }
 0x45f   :  { %v2122_v62 = vmul.f32 %v4771_v3, %v2058_v54 }
 0x460   :  { %v2128_v40 = vpack.c.bf16 %v2124_v33, %v2123_v26 }
 0x461   :  { %v2127_v29 = vpack.c.bf16 %v2122_v62, %v2121_v60 }
 0x463   :  { %2280 = vmatmul.mubr.bf16.gmra.mrb[108].mxu0 %v2126_v16 }
 0x464   :  { %2289 = vmatprep.mubr.bf16.mxu0 %v4860_v24 }
 0x46b   :  { %2290 = vmatmul.mubr.bf16.gmra.mrb[112].mxu0 %v2127_v29 }
 0x46c   :  { %2299 = vmatprep.mubr.bf16.mxu0 %v4860_v24 }
 0x473   :  { %2300 = vmatmul.mubr.bf16.gmra.mrb[116].mxu0 %v2128_v40 }
 0x52e   :  { %v2271_v24 = vpop.f32.mrb[104].mxu0 }
 0x52f   :  { %v2272_v37 = vadd.f32 %v2271_v24, %v2150_v32  ;;  %v2273_v63 = vpop.f32.mrb[105].mxu0 }
 0x530   :  { %v2274_v10 = vadd.f32 %v2273_v63, %v5803_v39  ;;  %v2275_v15 = vpop.f32.mrb[106].mxu0 }
 0x531   :  { %v3977_v19 = vmul.f32 -1.442695, %v2272_v37  ;;  %v2276_v1 = vadd.f32 %v2275_v15, %v2150_v32  ;;  %v2277_v51 = vpop.f32.mrb[107].mxu0 }
 0x532   :  { %v3978_v7 = vmul.f32 -1.442695, %v2274_v10  ;;  %v2278_v8 = vadd.f32 %v2277_v51, %v5803_v39 }
 0x533   :  { %4772 = vpow2.f32 %v3977_v19  ;;  %v3979_v4 = vmul.f32 -1.442695, %v2276_v1 }
 0x534   :  { %4774 = vpow2.f32 %v3978_v7  ;;  %v3980_v43 = vmul.f32 -1.442695, %v2278_v8 }
 0x535   :  { %4776 = vpow2.f32 %v3979_v4 }
 0x536   :  { %v2281_v9 = vpop.f32.mrb[108].mxu0 }
 0x537   :  { %v2283_v21 = vpop.f32.mrb[109].mxu0  ;;  %v2282_v57 = vadd.f32 %v2281_v9, %v2150_v32 }
 0x538   :  { %v2285_v25 = vpop.f32.mrb[110].mxu0  ;;  %v2284_v45 = vadd.f32 %v2283_v21, %v5803_v39 }
 0x539   :  { %v2287_v34 = vpop.f32.mrb[111].mxu0  ;;  %v3981_v58 = vmul.f32 -1.442695, %v2282_v57  ;;  %v2286_v5 = vadd.f32 %v2285_v25, %v2150_v32 }
 0x53a   :  { %v3982_v59 = vmul.f32 -1.442695, %v2284_v45  ;;  %v2288_v33 = vadd.f32 %v2287_v34, %v5803_v39 }
 0x53b   :  { %v3983_v46 = vmul.f32 -1.442695, %v2286_v5 }
 0x53c   :  { %v3984_v29 = vmul.f32 -1.442695, %v2288_v33 }
 0x53d   :  { %v4773_v11 = vpop.eup %4772 }
 0x53e   :  { %v4775_v22 = vpop.eup %4774  ;;  %v2358_v18 = vadd.f32 1.0, %v4773_v11  ;;  %v2291_v54 = vpop.f32.mrb[112].mxu0 }
 0x53f   :  { %v4777_v38 = vpop.eup %4776  ;;  %v2359_v42 = vadd.f32 1.0, %v4775_v22  ;;  %v5807_v17 = vadd.f32 %v2291_v54, %v2150_v32  ;;  %v2293_v49 = vpop.f32.mrb[113].mxu0 }
 0x540   :  { %4778 = vrcp.f32 %v2358_v18  ;;  %v5810_v20 = vadd.f32 %v2293_v49, %v5803_v39  ;;  %v2295_v53 = vpop.f32.mrb[114].mxu0  ;;  %v2360_v41 = vadd.f32 1.0, %v4777_v38 }
 0x541   :  { %4780 = vrcp.f32 %v2359_v42  ;;  %v5812_v36 = vadd.f32 %v2295_v53, %v2150_v32  ;;  %v2297_v23 = vpop.f32.mrb[115].mxu0 }
 0x542   :  { %v5815_v50 = vadd.f32 %v2297_v23, %v5803_v39  ;;  %4782 = vpow2.f32 %v3980_v43  ;;  %v3986_v24 = vmul.f32 -1.442695, %v5810_v20 }
 0x543   :  { %4784 = vrcp.f32 %v2360_v41  ;;  %v3987_v10 = vmul.f32 -1.442695, %v5812_v36 }
 0x544   :  { %4786 = vpow2.f32 %v3981_v58  ;;  %v3988_v21 = vmul.f32 -1.442695, %v5815_v50 }
 0x545   :  { %4788 = vpow2.f32 %v3982_v59 }
 0x546   :  { %v2301_v2 = vpop.f32.mrb[116].mxu0  ;;  %4790 = vpow2.f32 %v3983_v46 }
 0x547   :  { %v5817_v14 = vadd.f32 %v2301_v2, %v2150_v32  ;;  %v2303_v44 = vpop.f32.mrb[117].mxu0 }
 0x548   :  { %v5821_v31 = vadd.f32 %v2303_v44, %v5803_v39  ;;  %v2305_v6 = vpop.f32.mrb[118].mxu0 }
 0x549   :  { %v5823_v12 = vadd.f32 %v2305_v6, %v2150_v32  ;;  %v2307_v48 = vpop.f32.mrb[119].mxu0  ;;  %v3989_v34 = vmul.f32 -1.442695, %v5817_v14 }
 0x54a   :  { %v5825_v52 = vpop.eup %4778  ;;  %v5828_v27 = vadd.f32 %v2307_v48, %v5803_v39  ;;  %v3985_v39 = vmul.f32 -1.442695, %v5807_v17  ;;  %v3990_v8 = vmul.f32 -1.442695, %v5821_v31 }
 0x54b   :  { %v5830_v13 = vpop.eup %4780  ;;  %2599 = vrot.lane.b32.xlu0 %v5825_v52, %s4862_s7  ;;  %v3991_v18 = vmul.f32 -1.442695, %v5823_v12 }
 0x54c   :  { %2737 = vrot.lane.b32.xlu1 %v5830_v13, %s4863_s13  ;;  %v4783_v16 = vpop.eup %4782  ;;  %v3992_v23 = vmul.f32 -1.442695, %v5828_v27 }
 0x54d   :  { %v5836_v30 = vpop.eup %4784  ;;  %v2361_v61 = vadd.f32 1.0, %v4783_v16 }
 0x54e   :  { %v4787_v0 = vpop.eup %4786 }
 0x54f   :  { %2631 = vrot.lane.b32.xlu0 %v5825_v52, %s4864_s3  ;;  %4792 = vrcp.f32 %v2361_v61  ;;  %v4789_v3 = vpop.eup %4788  ;;  %v2362_v26 = vadd.f32 1.0, %v4787_v0 }
 0x550   :  { %2601 = vrot.lane.b32.xlu1 %v5836_v30, %s4862_s7  ;;  %v2363_v60 = vadd.f32 1.0, %v4789_v3  ;;  %v4791_v62 = vpop.eup %4790 }
 0x551   :  { %4794 = vrcp.f32 %v2362_v26  ;;  %v2364_v28 = vadd.f32 1.0, %v4791_v62 }
 0x552   :  { %4796 = vrcp.f32 %v2363_v60 }
 0x553   :  { %2663 = vrot.lane.b32.xlu0 %v5825_v52, %s4865_s14  ;;  %4798 = vpow2.f32 %v3984_v29 }
 0x554   :  { %2633 = vrot.lane.b32.xlu1 %v5836_v30, %s4864_s3  ;;  %4800 = vrcp.f32 %v2364_v28 }
 0x555   :  { %4802 = vpow2.f32 %v3985_v39 }
 0x556   :  { %4804 = vpow2.f32 %v3986_v24 }
 0x557   :  { %2695 = vrot.lane.b32.xlu0 %v5825_v52, %s4866_s1  ;;  %4806 = vpow2.f32 %v3987_v10 }
 0x558   :  { %2665 = vrot.lane.b32.xlu1 %v5836_v30, %s4865_s14 }
 0x559   :  { %v5855_v40 = vpop.eup %4792 }
 0x55b   :  { %2735 = vrot.lane.b32.xlu0 %v5825_v52, %s4863_s13  ;;  %v5869_v56 = vpop.eup %4794 }
 0x55c   :  { %2697 = vrot.lane.b32.xlu1 %v5836_v30, %s4866_s1  ;;  %v5871_v32 = vpop.eup %4796 }
 0x55d   :  { %v4799_v37 = vpop.eup %4798 }
 0x55e   :  { %v5879_v63 = vpop.eup %4800  ;;  %v2365_v15 = vadd.f32 1.0, %v4799_v37 }
 0x55f   :  { %2792 = vrot.lane.b32.xlu0 %v5830_v13, %s4867_s15  ;;  %v4803_v19 = vpop.eup %4802 }
 0x560   :  { %2741 = vrot.lane.b32.xlu1 %v5855_v40, %s4863_s13  ;;  %4808 = vrcp.f32 %v2365_v15  ;;  %v4805_v1 = vpop.eup %4804  ;;  %v2366_v51 = vadd.f32 1.0, %v4803_v19 }
 0x561   :  { %v2367_v7 = vadd.f32 1.0, %v4805_v1  ;;  %v4807_v4 = vpop.eup %4806 }
 0x562   :  { %4810 = vrcp.f32 %v2366_v51  ;;  %v2368_v25 = vadd.f32 1.0, %v4807_v4 }
 0x563   :  { %2824 = vrot.lane.b32.xlu0 %v5830_v13, %s4868_s16  ;;  %4812 = vrcp.f32 %v2367_v7 }
 0x564   :  { %2794 = vrot.lane.b32.xlu1 %v5855_v40, %s4867_s15  ;;  %4814 = vpow2.f32 %v3988_v21 }
 0x565   :  { %4816 = vrcp.f32 %v2368_v25 }
 0x566   :  { %4818 = vpow2.f32 %v3989_v34 }
 0x567   :  { %2739 = vrot.lane.b32.xlu0 %v5836_v30, %s4863_s13  ;;  %4820 = vpow2.f32 %v3990_v8 }
 0x568   :  { %2826 = vrot.lane.b32.xlu1 %v5855_v40, %s4868_s16  ;;  %4822 = vpow2.f32 %v3991_v18 }
 0x56a   :  { %v5898_v9 = vpop.eup %4808 }
 0x56b   :  { %2603 = vrot.lane.b32.xlu0 %v5869_v56, %s4862_s7 }
 0x56c   :  { %2745 = vrot.lane.b32.xlu1 %v5871_v32, %s4863_s13  ;;  %v5915_v11 = vpop.eup %4810 }
 0x56d   :  { %v5917_v22 = vpop.eup %4812 }
 0x56e   :  { %v4815_v54 = vpop.eup %4814 }
 0x56f   :  { %2635 = vrot.lane.b32.xlu0 %v5869_v56, %s4864_s3  ;;  %v5924_v38 = vpop.eup %4816  ;;  %v2369_v42 = vadd.f32 1.0, %v4815_v54 }
 0x570   :  { %2605 = vrot.lane.b32.xlu1 %v5879_v63, %s4862_s7  ;;  %v4819_v17 = vpop.eup %4818 }
 0x571   :  { %4824 = vrcp.f32 %v2369_v42  ;;  %v4821_v49 = vpop.eup %4820  ;;  %v2370_v43 = vadd.f32 1.0, %v4819_v17 }
 0x572   :  { %v2371_v20 = vadd.f32 1.0, %v4821_v49  ;;  %v4823_v53 = vpop.eup %4822 }
 0x573   :  { %2667 = vrot.lane.b32.xlu0 %v5869_v56, %s4865_s14  ;;  %4826 = vrcp.f32 %v2370_v43  ;;  %v2372_v41 = vadd.f32 1.0, %v4823_v53 }
 0x574   :  { %2637 = vrot.lane.b32.xlu1 %v5879_v63, %s4864_s3  ;;  %4828 = vrcp.f32 %v2371_v20 }
 0x575   :  { %4830 = vrcp.f32 %v2372_v41 }
 0x576   :  { %4832 = vpow2.f32 %v3992_v23 }
 0x577   :  { %2699 = vrot.lane.b32.xlu0 %v5869_v56, %s4866_s1 }
 0x578   :  { %2669 = vrot.lane.b32.xlu1 %v5879_v63, %s4865_s14 }
 0x57b   :  { %2743 = vrot.lane.b32.xlu0 %v5869_v56, %s4863_s13  ;;  %v5942_v36 = vpop.eup %4824 }
 0x57c   :  { %2701 = vrot.lane.b32.xlu1 %v5879_v63, %s4866_s1 }
 0x57d   :  { %v5953_v50 = vpop.eup %4826 }
 0x57e   :  { %v5955_v2 = vpop.eup %4828 }
 0x57f   :  { %2796 = vrot.lane.b32.xlu0 %v5871_v32, %s4867_s15  ;;  %v5961_v57 = vpop.eup %4830 }
 0x580   :  { %2749 = vrot.lane.b32.xlu1 %v5898_v9, %s4863_s13  ;;  %v4833_v14 = vpop.eup %4832 }
 0x581   :  { %v2373_v44 = vadd.f32 1.0, %v4833_v14 }
 0x583   :  { %2828 = vrot.lane.b32.xlu0 %v5871_v32, %s4868_s16  ;;  %4834 = vrcp.f32 %v2373_v44 }
 0x584   :  { %2798 = vrot.lane.b32.xlu1 %v5898_v9, %s4867_s15 }
 0x587   :  { %2747 = vrot.lane.b32.xlu0 %v5879_v63, %s4863_s13 }
 0x588   :  { %2830 = vrot.lane.b32.xlu1 %v5898_v9, %s4868_s16 }
 0x58b   :  { %2607 = vrot.lane.b32.xlu0 %v5915_v11, %s4862_s7 }
 0x58c   :  { %2753 = vrot.lane.b32.xlu1 %v5917_v22, %s4863_s13 }
 0x58d   :  { %v5983_v6 = vpop.eup %4834 }
 0x58f   :  { %2639 = vrot.lane.b32.xlu0 %v5915_v11, %s4864_s3 }
 0x590   :  { %2609 = vrot.lane.b32.xlu1 %v5924_v38, %s4862_s7 }
 0x593   :  { %2671 = vrot.lane.b32.xlu0 %v5915_v11, %s4865_s14 }
 0x594   :  { %2641 = vrot.lane.b32.xlu1 %v5924_v38, %s4864_s3 }
 0x597   :  { %2703 = vrot.lane.b32.xlu0 %v5915_v11, %s4866_s1 }
 0x598   :  { %2673 = vrot.lane.b32.xlu1 %v5924_v38, %s4865_s14 }
 0x59b   :  { %2751 = vrot.lane.b32.xlu0 %v5915_v11, %s4863_s13 }
 0x59c   :  { %2705 = vrot.lane.b32.xlu1 %v5924_v38, %s4866_s1 }
 0x59f   :  { %2800 = vrot.lane.b32.xlu0 %v5917_v22, %s4867_s15 }
 0x5a0   :  { %2757 = vrot.lane.b32.xlu1 %v5942_v36, %s4863_s13 }
 0x5a3   :  { %2755 = vrot.lane.b32.xlu0 %v5924_v38, %s4863_s13 }
 0x5a4   :  { %2802 = vrot.lane.b32.xlu1 %v5942_v36, %s4867_s15 }
 0x5a7   :  { %2611 = vrot.lane.b32.xlu0 %v5953_v50, %s4862_s7 }
 0x5a8   :  { %2761 = vrot.lane.b32.xlu1 %v5955_v2, %s4863_s13 }
 0x5ab   :  { %2643 = vrot.lane.b32.xlu0 %v5953_v50, %s4864_s3 }
 0x5ac   :  { %2613 = vrot.lane.b32.xlu1 %v5961_v57, %s4862_s7 }
 0x5af   :  { %2675 = vrot.lane.b32.xlu0 %v5953_v50, %s4865_s14 }
 0x5b0   :  { %2645 = vrot.lane.b32.xlu1 %v5961_v57, %s4864_s3 }
 0x5b3   :  { %2707 = vrot.lane.b32.xlu0 %v5953_v50, %s4866_s1 }
 0x5b4   :  { %2677 = vrot.lane.b32.xlu1 %v5961_v57, %s4865_s14  ;;  %s4877_s14 = smov 12  }
 0x5b7   :  { %2759 = vrot.lane.b32.xlu0 %v5953_v50, %s4863_s13 }
 0x5b8   :  { %2709 = vrot.lane.b32.xlu1 %v5961_v57, %s4866_s1 }
 0x5bb   :  { %2804 = vrot.lane.b32.xlu0 %v5955_v2, %s4867_s15 }
 0x5bc   :  { %2834 = vrot.lane.b32.xlu1 %v5942_v36, %s4868_s16 }
 0x5bd   :  { %v2600_v45 = vpop.permute.xlu0 %2599 }
 0x5be   :  { %v2738_v31 = vpop.permute.xlu1 %2737  ;;  %v2623_v59 = vmax.f32 %v5825_v52, %v2600_v45 }
 0x5bf   :  { %2763 = vrot.lane.b32.xlu0 %v5961_v57, %s4863_s13 }
 0x5c0   :  { %2765 = vrot.lane.b32.xlu1 %v5983_v6, %s4863_s13 }
 0x5c1   :  { %v2632_v12 = vpop.permute.xlu0 %2631 }
 0x5c2   :  { %v2602_v48 = vpop.permute.xlu1 %2601  ;;  %v2655_v16 = vmax.f32 %v2623_v59, %v2632_v12 }
 0x5c3   :  { %2832 = vrot.lane.b32.xlu0 %v5917_v22, %s4868_s16  ;;  %v2624_v28 = vmax.f32 %v5836_v30, %v2602_v48 }
 0x5c4   :  { %2806 = vrot.lane.b32.xlu1 %v5983_v6, %s4867_s15 }
 0x5c5   :  { %v2664_v27 = vpop.permute.xlu0 %2663 }
 0x5c6   :  { %v2634_v58 = vpop.permute.xlu1 %2633  ;;  %v2687_v61 = vmax.f32 %v2655_v16, %v2664_v27 }
 0x5c7   :  { %2836 = vrot.lane.b32.xlu0 %v5955_v2, %s4868_s16  ;;  %v2656_v24 = vmax.f32 %v2624_v28, %v2634_v58 }
 0x5c8   :  { %2838 = vrot.lane.b32.xlu1 %v5983_v6, %s4868_s16 }
 0x5c9   :  { %v2696_v5 = vpop.permute.xlu0 %2695 }
 0x5ca   :  { %v2666_v46 = vpop.permute.xlu1 %2665  ;;  %v2719_v3 = vmax.f32 %v2687_v61, %v2696_v5 }
 0x5cb   :  { %v2688_v19 = vmax.f32 %v2656_v24, %v2666_v46 }
 0x5cd   :  { %v2736_v0 = vpop.permute.xlu0 %2735 }
 0x5ce   :  { %v2768_v26 = vsel %vm2767_vm3, %v2736_v0, %v2738_v31  ;;  %v2698_v33 = vpop.permute.xlu1 %2697 }
 0x5cf   :  { %v2784_v60 = vmax.f32 %v2719_v3, %v2768_v26  ;;  %v2720_v1 = vmax.f32 %v2688_v19, %v2698_v33 }
 0x5d1   :  { %v2793_v62 = vpop.permute.xlu0 %2792 }
 0x5d2   :  { %v2742_v29 = vpop.permute.xlu1 %2741  ;;  %v2816_v39 = vmax.f32 %v2784_v60, %v2793_v62 }
 0x5d5   :  { %v2825_v37 = vpop.permute.xlu0 %2824 }
 0x5d6   :  { %v6000_v10 = vmax.f32 %v2816_v39, %v2825_v37  ;;  %v2795_v15 = vpop.permute.xlu1 %2794 }
 0x5d8   :  { %2864 = vrot.lane.b32.xlu0 %v6000_v10, %s4869_s17 }
 0x5d9   :  { %v2740_v51 = vpop.permute.xlu0 %2739 }
 0x5da   :  { %v2769_v7 = vsel %vm2767_vm3, %v2740_v51, %v2742_v29  ;;  %v2827_v4 = vpop.permute.xlu1 %2826 }
 0x5db   :  { %v2785_v21 = vmax.f32 %v2720_v1, %v2769_v7 }
 0x5dd   :  { %v2817_v25 = vmax.f32 %v2785_v21, %v2795_v15  ;;  %v2604_v34 = vpop.permute.xlu0 %2603 }
 0x5de   :  { %v2746_v8 = vpop.permute.xlu1 %2745  ;;  %v2625_v43 = vmax.f32 %v5869_v56, %v2604_v34 }
 0x5df   :  { %v6005_v18 = vmax.f32 %v2817_v25, %v2827_v4 }
 0x5e1   :  { %2866 = vrot.lane.b32.xlu1 %v6005_v18, %s4869_s17  ;;  %v2636_v54 = vpop.permute.xlu0 %2635 }
 0x5e2   :  { %v2606_v42 = vpop.permute.xlu1 %2605  ;;  %v2657_v53 = vmax.f32 %v2625_v43, %v2636_v54 }
 0x5e3   :  { %v2626_v58 = vmax.f32 %v5879_v63, %v2606_v42 }
 0x5e5   :  { %v2668_v17 = vpop.permute.xlu0 %2667 }
 0x5e6   :  { %v2638_v49 = vpop.permute.xlu1 %2637  ;;  %v2689_v23 = vmax.f32 %v2657_v53, %v2668_v17 }
 0x5e7   :  { %v2658_v5 = vmax.f32 %v2626_v58, %v2638_v49 }
 0x5e9   :  { %v2700_v20 = vpop.permute.xlu0 %2699 }
 0x5ea   :  { %v2670_v41 = vpop.permute.xlu1 %2669  ;;  %v2721_v44 = vmax.f32 %v2689_v23, %v2700_v20 }
 0x5eb   :  { %v2690_v0 = vmax.f32 %v2658_v5, %v2670_v41 }
 0x5ed   :  { %v2744_v14 = vpop.permute.xlu0 %2743 }
 0x5ee   :  { %v2770_v45 = vsel %vm2767_vm3, %v2744_v14, %v2746_v8  ;;  %v2702_v31 = vpop.permute.xlu1 %2701 }
 0x5ef   :  { %v2786_v12 = vmax.f32 %v2721_v44, %v2770_v45  ;;  %v2722_v3 = vmax.f32 %v2690_v0, %v2702_v31 }
 0x5f1   :  { %v2797_v48 = vpop.permute.xlu0 %2796 }
 0x5f2   :  { %v2750_v27 = vpop.permute.xlu1 %2749  ;;  %v2818_v59 = vmax.f32 %v2786_v12, %v2797_v48 }
 0x5f5   :  { %v2829_v16 = vpop.permute.xlu0 %2828 }
 0x5f6   :  { %v6012_v46 = vmax.f32 %v2818_v59, %v2829_v16  ;;  %v2799_v61 = vpop.permute.xlu1 %2798 }
 0x5f8   :  { %2868 = vrot.lane.b32.xlu0 %v6012_v46, %s4869_s17 }
 0x5f9   :  { %v2748_v26 = vpop.permute.xlu0 %2747 }
 0x5fa   :  { %v2771_v33 = vsel %vm2767_vm3, %v2748_v26, %v2750_v27  ;;  %v2831_v60 = vpop.permute.xlu1 %2830 }
 0x5fb   :  { %v2787_v62 = vmax.f32 %v2722_v3, %v2771_v33 }
 0x5fd   :  { %v2819_v29 = vmax.f32 %v2787_v62, %v2799_v61  ;;  %v2608_v28 = vpop.permute.xlu0 %2607 }
 0x5fe   :  { %v2754_v39 = vpop.permute.xlu1 %2753  ;;  %v2627_v48 = vmax.f32 %v5915_v11, %v2608_v28 }
 0x5ff   :  { %v6017_v24 = vmax.f32 %v2819_v29, %v2831_v60 }
 0x601   :  { %2870 = vrot.lane.b32.xlu1 %v6017_v24, %s4869_s17  ;;  %v2640_v37 = vpop.permute.xlu0 %2639 }
 0x602   :  { %v2610_v15 = vpop.permute.xlu1 %2609  ;;  %v2659_v59 = vmax.f32 %v2627_v48, %v2640_v37 }
 0x603   :  { %v2628_v20 = vmax.f32 %v5924_v38, %v2610_v15 }
 0x605   :  { %v2672_v19 = vpop.permute.xlu0 %2671 }
 0x606   :  { %v2642_v1 = vpop.permute.xlu1 %2641  ;;  %v2691_v16 = vmax.f32 %v2659_v59, %v2672_v19 }
 0x607   :  { %v2660_v23 = vmax.f32 %v2628_v20, %v2642_v1 }
 0x609   :  { %v2704_v51 = vpop.permute.xlu0 %2703 }
 0x60a   :  { %v2674_v7 = vpop.permute.xlu1 %2673  ;;  %v2723_v60 = vmax.f32 %v2691_v16, %v2704_v51 }
 0x60b   :  { %v2692_v14 = vmax.f32 %v2660_v23, %v2674_v7 }
 0x60d   :  { %v2752_v4 = vpop.permute.xlu0 %2751 }
 0x60e   :  { %v2706_v21 = vpop.permute.xlu1 %2705  ;;  %v2772_v0 = vsel %vm2767_vm3, %v2752_v4, %v2754_v39 }
 0x60f   :  { %v2724_v12 = vmax.f32 %v2692_v14, %v2706_v21  ;;  %v2788_v28 = vmax.f32 %v2723_v60, %v2772_v0 }
 0x611   :  { %v2801_v25 = vpop.permute.xlu0 %2800 }
 0x612   :  { %v2758_v34 = vpop.permute.xlu1 %2757  ;;  %v2820_v51 = vmax.f32 %v2788_v28, %v2801_v25 }
 0x615   :  { %v2756_v8 = vpop.permute.xlu0 %2755 }
 0x616   :  { %v2803_v54 = vpop.permute.xlu1 %2802  ;;  %v2773_v45 = vsel %vm2767_vm3, %v2756_v8, %v2758_v34 }
 0x617   :  { %v2789_v27 = vmax.f32 %v2724_v12, %v2773_v45 }
 0x619   :  { %v2612_v42 = vpop.permute.xlu0 %2611  ;;  %v2821_v3 = vmax.f32 %v2789_v27, %v2803_v54 }
 0x61a   :  { %v2762_v17 = vpop.permute.xlu1 %2761  ;;  %v2629_v61 = vmax.f32 %v5953_v50, %v2612_v42 }
 0x61d   :  { %v2644_v49 = vpop.permute.xlu0 %2643 }
 0x61e   :  { %v2614_v43 = vpop.permute.xlu1 %2613  ;;  %v2661_v62 = vmax.f32 %v2629_v61, %v2644_v49 }
 0x61f   :  { %v2630_v26 = vmax.f32 %v5961_v57, %v2614_v43 }
 0x621   :  { %v2676_v53 = vpop.permute.xlu0 %2675 }
 0x622   :  { %v2646_v41 = vpop.permute.xlu1 %2645  ;;  %v2693_v7 = vmax.f32 %v2661_v62, %v2676_v53 }
 0x623   :  { %v2662_v15 = vmax.f32 %v2630_v26, %v2646_v41 }
 0x625   :  { %v2708_v44 = vpop.permute.xlu0 %2707 }
 0x626   :  { %v2678_v31 = vpop.permute.xlu1 %2677  ;;  %v2725_v39 = vmax.f32 %v2693_v7, %v2708_v44 }
 0x627   :  { %v2694_v21 = vmax.f32 %v2662_v15, %v2678_v31  ;;  %v4871_v31 = vmov 8.0  }
 0x629   :  { %v2760_v58 = vpop.permute.xlu0 %2759 }
 0x62a   :  { %v2710_v5 = vpop.permute.xlu1 %2709  ;;  %v2774_v37 = vsel %vm2767_vm3, %v2760_v58, %v2762_v17 }
 0x62b   :  { %v2726_v34 = vmax.f32 %v2694_v21, %v2710_v5  ;;  %v2790_v54 = vmax.f32 %v2725_v39, %v2774_v37 }
 0x62d   :  { %v2805_v33 = vpop.permute.xlu0 %2804 }
 0x62e   :  { %v2835_v29 = vpop.permute.xlu1 %2834  ;;  %v2822_v53 = vmax.f32 %v2790_v54, %v2805_v33 }
 0x62f   :  { %v6027_v1 = vmax.f32 %v2821_v3, %v2835_v29 }
 0x631   :  { %2874 = vrot.lane.b32.xlu1 %v6027_v1, %s4869_s17  ;;  %v2764_v19 = vpop.permute.xlu0 %2763 }
 0x632   :  { %v2766_v4 = vpop.permute.xlu1 %2765 }
 0x633   :  { %v2775_v8 = vsel %vm2767_vm3, %v2764_v19, %v2766_v4 }
 0x634   :  { %v2791_v42 = vmax.f32 %v2726_v34, %v2775_v8 }
 0x635   :  { %v2833_v49 = vpop.permute.xlu0 %2832 }
 0x636   :  { %v6033_v43 = vmax.f32 %v2820_v51, %v2833_v49  ;;  %v2807_v20 = vpop.permute.xlu1 %2806 }
 0x637   :  { %v2823_v17 = vmax.f32 %v2791_v42, %v2807_v20 }
 0x638   :  { %2872 = vrot.lane.b32.xlu0 %v6033_v43, %s4869_s17 }
 0x639   :  { %v2837_v41 = vpop.permute.xlu0 %2836 }
 0x63a   :  { %v6037_v23 = vmax.f32 %v2822_v53, %v2837_v41  ;;  %v2839_v14 = vpop.permute.xlu1 %2838 }
 0x63b   :  { %v6039_v44 = vmax.f32 %v2823_v17, %v2839_v14 }
 0x63c   :  { %2876 = vrot.lane.b32.xlu0 %v6037_v23, %s4869_s17 }
 0x63d   :  { %2878 = vrot.lane.b32.xlu1 %v6039_v44, %s4869_s17 }
 0x640   :  { %2904 = vrot.lane.b32.xlu0 %v6000_v10, %s4870_s18 }
 0x641   :  { %2906 = vrot.lane.b32.xlu1 %v6005_v18, %s4870_s18 }
 0x644   :  { %2908 = vrot.lane.b32.xlu0 %v6012_v46, %s4870_s18 }
 0x645   :  { %2910 = vrot.lane.b32.xlu1 %v6017_v24, %s4870_s18 }
 0x648   :  { %2912 = vrot.lane.b32.xlu0 %v6033_v43, %s4870_s18 }
 0x649   :  { %2914 = vrot.lane.b32.xlu1 %v6027_v1, %s4870_s18 }
 0x64a   :  { %v2865_v25 = vpop.permute.xlu0 %2864 }
 0x64b   :  { %vm2888_vm4 = vcmp.ge.f32.partialorder %v5830_v13, %v2865_v25 }
 0x64c   :  { %2916 = vrot.lane.b32.xlu0 %v6037_v23, %s4870_s18  ;;  %v2896_v12 = vsel %vm2888_vm4, 7.0, %v4871_v31 }
 0x64d   :  { %2918 = vrot.lane.b32.xlu1 %v6039_v44, %s4870_s18 }
 0x653   :  { %v2867_v45 = vpop.permute.xlu1 %2866 }
 0x654   :  { %vm2889_vm5 = vcmp.ge.f32.partialorder %v5855_v40, %v2867_v45 }
 0x655   :  { %v2897_v48 = vsel %vm2889_vm5, 7.0, %v4871_v31 }
 0x656   :  { %v4237_v27 = vpack.i.bf16 %v2897_v48, %v2896_v12 }
 0x658   :  { %4238 = vrot.lane.b32.xlu0 %v4237_v27, %s4862_s7 }
 0x66a   :  { %v2869_v58 = vpop.permute.xlu0 %2868 }
 0x66b   :  { %vm2890_vm6 = vcmp.ge.f32.partialorder %v5871_v32, %v2869_v58 }
 0x66c   :  { %v2898_v5 = vsel %vm2890_vm6, 7.0, %v4871_v31 }
 0x673   :  { %v2871_v59 = vpop.permute.xlu1 %2870 }
 0x674   :  { %vm2891_vm7 = vcmp.ge.f32.partialorder %v5898_v9, %v2871_v59 }
 0x675   :  { %v2899_v16 = vsel %vm2891_vm7, 7.0, %v4871_v31 }
 0x676   :  { %v4242_v61 = vpack.i.bf16 %v2899_v16, %v2898_v5 }
 0x678   :  { %4243 = vrot.lane.b32.xlu1 %v4242_v61, %s4862_s7 }
 0x6a3   :  { %v2875_v0 = vpop.permute.xlu1 %2874 }
 0x6a4   :  { %vm2893_vm8 = vcmp.ge.f32.partialorder %v5942_v36, %v2875_v0 }
 0x6a5   :  { %v2901_v26 = vsel %vm2893_vm8, 7.0, %v4871_v31 }
 0x6aa   :  { %v2873_v3 = vpop.permute.xlu0 %2872 }
 0x6ab   :  { %vm2892_vm9 = vcmp.ge.f32.partialorder %v5917_v22, %v2873_v3 }
 0x6ac   :  { %v2900_v33 = vsel %vm2892_vm9, 7.0, %v4871_v31 }
 0x6ad   :  { %v4247_v60 = vpack.i.bf16 %v2901_v26, %v2900_v33  ;;  %v6087_v26 = vld [vmem:[%s6703_s8] sm:$0xff] }
 0x6ae   :  { %v2877_v62 = vpop.permute.xlu0 %2876 }
 0x6af   :  { %vm2894_vm10 = vcmp.ge.f32.partialorder %v5955_v2, %v2877_v62  ;;  %v2879_v29 = vpop.permute.xlu1 %2878  ;;  %4248 = vrot.lane.b32.xlu0 %v4247_v60, %s4862_s7 }
 0x6b0   :  { %v2902_v15 = vsel %vm2894_vm10, 7.0, %v4871_v31  ;;  %vm2895_vm11 = vcmp.ge.f32.partialorder %v5983_v6, %v2879_v29 }
 0x6b1   :  { %v2903_v28 = vsel %vm2895_vm11, 7.0, %v4871_v31 }
 0x6b2   :  { %v4252_v7 = vpack.i.bf16 %v2903_v28, %v2902_v15  ;;  %v2905_v21 = vpop.permute.xlu0 %2904  ;;  %v6094_v15 = vld [vmem:[%s6703_s8 + $0x18] sm:$0xff]  ;;  %v6099_v28 = vld [vmem:[%s6703_s8 + $0x8] sm:$0xff] }
 0x6b3   :  { %2976 = vrot.lane.b32.xlu0 %v6000_v10, %s4872_s19  ;;  %v2907_v4 = vpop.permute.xlu1 %2906  ;;  %vm2928_vm12 = vcmp.ge.f32.partialorder %v5830_v13, %v2905_v21  ;;  %v6111_v21 = vld [vmem:[%s6703_s8 + $0x10] sm:$0xff] }
 0x6b4   :  { %4253 = vrot.lane.b32.xlu1 %v4252_v7, %s4862_s7  ;;  %vm2929_vm13 = vcmp.ge.f32.partialorder %v5855_v40, %v2907_v4  ;;  %v6106_v7 = vld [vmem:[%s6703_s8 + $0x28] sm:$0xff] }
 0x6b6   :  { %v2909_v37 = vpop.permute.xlu0 %2908 }
 0x6b7   :  { %2980 = vrot.lane.b32.xlu0 %v6012_v46, %s4872_s19  ;;  %v2911_v20 = vpop.permute.xlu1 %2910  ;;  %vm2930_vm14 = vcmp.ge.f32.partialorder %v5871_v32, %v2909_v37 }
 0x6b8   :  { %2978 = vrot.lane.b32.xlu1 %v6005_v18, %s4872_s19  ;;  %vm2931_vm15 = vcmp.ge.f32.partialorder %v5898_v9, %v2911_v20 }
 0x6ba   :  { %v2913_v19 = vpop.permute.xlu0 %2912 }
 0x6bb   :  { %2984 = vrot.lane.b32.xlu0 %v6033_v43, %s4872_s19  ;;  %v2915_v53 = vpop.permute.xlu1 %2914  ;;  %vm2932_vm0 = vcmp.ge.f32.partialorder %v5917_v22, %v2913_v19  ;;  %v6118_v19 = vld [vmem:[%s6703_s8 + $0x20] sm:$0xff] }
 0x6bc   :  { %2982 = vrot.lane.b32.xlu1 %v6017_v24, %s4872_s19  ;;  %vm2933_vm1 = vcmp.ge.f32.partialorder %v5942_v36, %v2915_v53 }
 0x6be   :  { %v2917_v39 = vpop.permute.xlu0 %2916 }
 0x6bf   :  { %2988 = vrot.lane.b32.xlu0 %v6037_v23, %s4872_s19  ;;  %v2919_v17 = vpop.permute.xlu1 %2918  ;;  %vm2934_vm2 = vcmp.ge.f32.partialorder %v5955_v2, %v2917_v39 }
 0x6c0   :  { %2986 = vrot.lane.b32.xlu1 %v6027_v1, %s4872_s19  ;;  %vm2935_vm3 = vcmp.ge.f32.partialorder %v5983_v6, %v2919_v17 }
 0x6c4   :  { %2990 = vrot.lane.b32.xlu1 %v6039_v44, %s4872_s19 }
 0x6ca   :  { %v4239_v34 = vpop.permute.xlu0 %4238 }
 0x6cb   :  { %v4241_v8 = vunpack.i.h.bf16 %v4239_v34  ;;  %v4240_v51 = vunpack.i.l.bf16 %v4239_v34 }
 0x6cd   :  { %v2969_v54 = vsel %vm2929_vm13, 6.0, %v4241_v8  ;;  %v2968_v42 = vsel %vm2928_vm12, 6.0, %v4240_v51 }
 0x6ce   :  { %v4257_v49 = vpack.i.bf16 %v2969_v54, %v2968_v42 }
 0x6d0   :  { %4258 = vrot.lane.b32.xlu0 %v4257_v49, %s4862_s7 }
 0x6ea   :  { %v4244_v41 = vpop.permute.xlu1 %4243 }
 0x6eb   :  { %v4246_v14 = vunpack.i.h.bf16 %v4244_v41  ;;  %v4245_v25 = vunpack.i.l.bf16 %v4244_v41 }
 0x6ed   :  { %v2971_v45 = vsel %vm2931_vm15, 6.0, %v4246_v14  ;;  %v2970_v31 = vsel %vm2930_vm14, 6.0, %v4245_v25 }
 0x6ee   :  { %v4262_v12 = vpack.i.bf16 %v2971_v45, %v2970_v31 }
 0x6f0   :  { %4263 = vrot.lane.b32.xlu1 %v4262_v12, %s4862_s7 }
 0x721   :  { %v4249_v48 = vpop.permute.xlu0 %4248 }
 0x722   :  { %v4251_v27 = vunpack.i.h.bf16 %v4249_v48  ;;  %v4250_v58 = vunpack.i.l.bf16 %v4249_v48 }
 0x724   :  { %v2973_v59 = vsel %vm2933_vm1, 6.0, %v4251_v27  ;;  %v2972_v5 = vsel %vm2932_vm0, 6.0, %v4250_v58 }
 0x725   :  { %v4267_v16 = vpack.i.bf16 %v2973_v59, %v2972_v5  ;;  %v2977_v29 = vpop.permute.xlu0 %2976 }
 0x726   :  { %v4254_v61 = vpop.permute.xlu1 %4253  ;;  %vm3000_vm6 = vcmp.ge.f32.partialorder %v5825_v52, %v2977_v29  ;;  %vm3001_vm7 = vcmp.ge.f32.partialorder %v5830_v13, %v2977_v29 }
 0x727   :  { %v4256_v0 = vunpack.i.h.bf16 %v4254_v61  ;;  %v4255_v3 = vunpack.i.l.bf16 %v4254_v61  ;;  %4268 = vrot.lane.b32.xlu0 %v4267_v16, %s4862_s7 }
 0x729   :  { %v2975_v33 = vsel %vm2935_vm3, 6.0, %v4256_v0  ;;  %v2974_v60 = vsel %vm2934_vm2, 6.0, %v4255_v3  ;;  %v2981_v37 = vpop.permute.xlu0 %2980 }
 0x72a   :  { %v4272_v62 = vpack.i.bf16 %v2975_v33, %v2974_v60  ;;  %v2979_v34 = vpop.permute.xlu1 %2978  ;;  %vm3004_vm8 = vcmp.ge.f32.partialorder %v5869_v56, %v2981_v37  ;;  %vm3005_vm9 = vcmp.ge.f32.partialorder %v5871_v32, %v2981_v37 }
 0x72b   :  { %2432 = vperm.xlu0 %4277, %v6087_v26   ;;  %vm3002_vm4 = vcmp.ge.f32.partialorder %v5836_v30, %v2979_v34  ;;  %vm3003_vm5 = vcmp.ge.f32.partialorder %v5855_v40, %v2979_v34 }
 0x72c   :  { %4273 = vrot.lane.b32.xlu1 %v4272_v62, %s4862_s7 }
 0x72d   :  { %v2985_v39 = vpop.permute.xlu0 %2984 }
 0x72e   :  { %v2983_v14 = vpop.permute.xlu1 %2982  ;;  %vm3008_vm12 = vcmp.ge.f32.partialorder %v5915_v11, %v2985_v39  ;;  %vm3009_vm13 = vcmp.ge.f32.partialorder %v5917_v22, %v2985_v39 }
 0x72f   :  { %2447 = vperm.xlu0 %4277, %v6094_v15   ;;  %vm3006_vm10 = vcmp.ge.f32.partialorder %v5879_v63, %v2983_v14  ;;  %vm3007_vm11 = vcmp.ge.f32.partialorder %v5898_v9, %v2983_v14 }
 0x730   :  { %2437 = vperm.xlu1 %4278, %v6099_v28  }
 0x731   :  { %v6124_v4 = vpop.permute.xlu0 %2988 }
 0x732   :  { %v2987_v40 = vpop.permute.xlu1 %2986  ;;  %vm3012_vm0 = vcmp.ge.f32.partialorder %v5953_v50, %v6124_v4  ;;  %vm3013_vm1 = vcmp.ge.f32.partialorder %v5955_v2, %v6124_v4  ;;  %v6165_v2 = vld [vmem:[%s6703_s8 + $0x30] sm:$0xff]  ;;  %v4875_v4 = vmov 1  }
 0x733   :  { %2457 = vperm.xlu0 %4277, %v6106_v7   ;;  %vm3010_vm14 = vcmp.ge.f32.partialorder %v5924_v38, %v2987_v40  ;;  %vm3011_vm15 = vcmp.ge.f32.partialorder %v5942_v36, %v2987_v40 }
 0x734   :  { %2442 = vperm.xlu1 %4278, %v6111_v21  }
 0x736   :  { %v2991_v25 = vpop.permute.xlu1 %2990 }
 0x737   :  { %3066 = vrot.lane.b32.xlu0 %v6005_v18, %s4873_s28  ;;  %vm3014_vm2 = vcmp.ge.f32.partialorder %v5961_v57, %v2991_v25  ;;  %vm3015_vm3 = vcmp.ge.f32.partialorder %v5983_v6, %v2991_v25 }
 0x738   :  { %2452 = vperm.xlu1 %4278, %v6118_v19  }
 0x73b   :  { %3070 = vrot.lane.b32.xlu0 %v6017_v24, %s4873_s28 }
 0x73c   :  { %3064 = vrot.lane.b32.xlu1 %v6000_v10, %s4873_s28 }
 0x73f   :  { %3074 = vrot.lane.b32.xlu0 %v6027_v1, %s4873_s28 }
 0x740   :  { %3068 = vrot.lane.b32.xlu1 %v6012_v46, %s4873_s28 }
 0x742   :  { %v4259_v8 = vpop.permute.xlu0 %4258 }
 0x743   :  { %v4261_v51 = vunpack.i.h.bf16 %v4259_v8  ;;  %v4260_v54 = vunpack.i.l.bf16 %v4259_v8  ;;  %3078 = vrot.lane.b32.xlu0 %v6039_v44, %s4873_s28 }
 0x744   :  { %3072 = vrot.lane.b32.xlu1 %v6033_v43, %s4873_s28 }
 0x745   :  { %v3050_v42 = vsel %vm3002_vm4, 5.0, %v4261_v51  ;;  %v3051_v49 = vsel %vm3003_vm5, 5.0, %v4261_v51  ;;  %v3048_v53 = vsel %vm3000_vm6, 5.0, %v4260_v54  ;;  %v3049_v17 = vsel %vm3001_vm7, 5.0, %v4260_v54 }
 0x746   :  { %v4284_v20 = vpack.i.bf16 %v3051_v49, %v3050_v42  ;;  %v4279_v41 = vpack.i.bf16 %v3049_v17, %v3048_v53  ;;  %v6160_v42 = vld [vmem:[%s6703_s8 + $0x38] sm:$0xff]  ;;  %vm3144_vm4 = vcmask 949248  }
 0x748   :  { %3076 = vrot.lane.b32.xlu1 %v6037_v23, %s4873_s28  ;;  %4285 = vrot.lane.b32.xlu0 %v4284_v20, %s4862_s7 }
 0x74c   :  { %4280 = vrot.lane.b32.xlu1 %v4279_v41, %s4862_s7 }
 0x762   :  { %v4264_v45 = vpop.permute.xlu1 %4263 }
 0x763   :  { %v4266_v31 = vunpack.i.h.bf16 %v4264_v45  ;;  %v4265_v12 = vunpack.i.l.bf16 %v4264_v45 }
 0x765   :  { %v3054_v13 = vsel %vm3006_vm10, 5.0, %v4266_v31  ;;  %v3055_v48 = vsel %vm3007_vm11, 5.0, %v4266_v31  ;;  %v3052_v27 = vsel %vm3004_vm8, 5.0, %v4265_v12  ;;  %v3053_v58 = vsel %vm3005_vm9, 5.0, %v4265_v12 }
 0x766   :  { %v4294_v59 = vpack.i.bf16 %v3055_v48, %v3054_v13  ;;  %v4289_v5 = vpack.i.bf16 %v3053_v58, %v3052_v27 }
 0x768   :  { %4295 = vrot.lane.b32.xlu0 %v4294_v59, %s4862_s7  ;;  %4290 = vrot.lane.b32.xlu1 %v4289_v5, %s4862_s7 }
 0x799   :  { %v4269_v16 = vpop.permute.xlu0 %4268 }
 0x79a   :  { %v4271_v61 = vunpack.i.h.bf16 %v4269_v16  ;;  %v4270_v0 = vunpack.i.l.bf16 %v4269_v16 }
 0x79c   :  { %v3058_v32 = vsel %vm3010_vm14, 5.0, %v4271_v61  ;;  %v3059_v9 = vsel %vm3011_vm15, 5.0, %v4271_v61  ;;  %v3056_v3 = vsel %vm3008_vm12, 5.0, %v4270_v0  ;;  %v3057_v33 = vsel %vm3009_vm13, 5.0, %v4270_v0 }
 0x79d   :  { %v4304_v60 = vpack.i.bf16 %v3059_v9, %v3058_v32  ;;  %v4299_v62 = vpack.i.bf16 %v3057_v33, %v3056_v3 }
 0x79e   :  { %v4274_v29 = vpop.permute.xlu1 %4273 }
 0x79f   :  { %v4276_v37 = vunpack.i.h.bf16 %v4274_v29  ;;  %v4275_v34 = vunpack.i.l.bf16 %v4274_v29  ;;  %4305 = vrot.lane.b32.xlu0 %v4304_v60, %s4862_s7  ;;  %4300 = vrot.lane.b32.xlu1 %v4299_v62, %s4862_s7 }
 0x7a1   :  { %v3062_v22 = vsel %vm3014_vm2, 5.0, %v4276_v37  ;;  %v3063_v36 = vsel %vm3015_vm3, 5.0, %v4276_v37  ;;  %v3060_v39 = vsel %vm3012_vm0, 5.0, %v4275_v34  ;;  %v3061_v8 = vsel %vm3013_vm1, 5.0, %v4275_v34 }
 0x7a2   :  { %v4314_v51 = vpack.i.bf16 %v3063_v36, %v3062_v22  ;;  %v4309_v54 = vpack.i.bf16 %v3061_v8, %v3060_v39 }
 0x7a4   :  { %4315 = vrot.lane.b32.xlu0 %v4314_v51, %s4862_s7  ;;  %4310 = vrot.lane.b32.xlu1 %v4309_v54, %s4862_s7 }
 0x7a8   :  { %2467 = vperm.xlu0 %4277, %v6160_v42   ;;  %2462 = vperm.xlu1 %4278, %v6165_v2  }
 0x7aa   :  { %v6169_v6 = vpop.permute.xlu0 %2432 }
 0x7ac   :  { %3169 = vrot.lane.b32.xlu0 %v6000_v10, %s4874_s6  ;;  %4319 = vset.pattern.permute.xlu1 %v4875_v4 }
 0x7ad   :  { %2487 = vperm.xlu1 %4319, %v6087_v26   ;;  %4340 = vset.pattern.permute.xlu0 %v4875_v4 }
 0x7ae   :  { %v6174_v49 = vpop.permute.xlu0 %2447 }
 0x7af   :  { %v6176_v20 = vpop.permute.xlu1 %2437 }
 0x7b0   :  { %3173 = vrot.lane.b32.xlu0 %v6012_v46, %s4874_s6 }
 0x7b1   :  { %3171 = vrot.lane.b32.xlu1 %v6005_v18, %s4874_s6 }
 0x7b2   :  { %v6182_v53 = vpop.permute.xlu0 %2457 }
 0x7b3   :  { %v6184_v17 = vpop.permute.xlu1 %2442 }
 0x7b4   :  { %3177 = vrot.lane.b32.xlu0 %v6033_v43, %s4874_s6 }
 0x7b5   :  { %3175 = vrot.lane.b32.xlu1 %v6017_v24, %s4874_s6 }
 0x7b6   :  { %v3067_v26 = vpop.permute.xlu0 %3066 }
 0x7b7   :  { %v6190_v41 = vpop.permute.xlu1 %2452  ;;  %vm3089_vm5 = vcmp.ge.f32.partialorder %v5836_v30, %v3067_v26 }
 0x7b8   :  { %3181 = vrot.lane.b32.xlu0 %v6037_v23, %s4874_s6 }
 0x7b9   :  { %3179 = vrot.lane.b32.xlu1 %v6027_v1, %s4874_s6 }
 0x7ba   :  { %v3071_v14 = vpop.permute.xlu0 %3070 }
 0x7bb   :  { %v3065_v40 = vpop.permute.xlu1 %3064  ;;  %vm3091_vm7 = vcmp.ge.f32.partialorder %v5879_v63, %v3071_v14 }
 0x7bc   :  { %vm3088_vm6 = vcmp.ge.f32.partialorder %v5825_v52, %v3065_v40 }
 0x7bd   :  { %3183 = vrot.lane.b32.xlu1 %v6039_v44, %s4874_s6 }
 0x7be   :  { %v3075_v25 = vpop.permute.xlu0 %3074 }
 0x7bf   :  { %v3069_v45 = vpop.permute.xlu1 %3068  ;;  %vm3093_vm9 = vcmp.ge.f32.partialorder %v5924_v38, %v3075_v25 }
 0x7c0   :  { %vm3090_vm8 = vcmp.ge.f32.partialorder %v5869_v56, %v3069_v45 }
 0x7c2   :  { %v3079_v31 = vpop.permute.xlu0 %3078 }
 0x7c3   :  { %v3073_v12 = vpop.permute.xlu1 %3072  ;;  %vm3095_vm11 = vcmp.ge.f32.partialorder %v5961_v57, %v3079_v31  ;;  %v2534_v31 = vld [vmem:[%s6704_s9] sm:$0x3]  ;;  %s4876_s9 = smov 24  }
 0x7c4   :  { %vm3092_vm10 = vcmp.ge.f32.partialorder %v5915_v11, %v3073_v12 }
 0x7c6   :  { %v4286_v13 = vpop.permute.xlu0 %4285 }
 0x7c7   :  { %v3077_v48 = vpop.permute.xlu1 %3076  ;;  %v4288_v27 = vunpack.i.h.bf16 %v4286_v13  ;;  %v4287_v58 = vunpack.i.l.bf16 %v4286_v13 }
 0x7c8   :  { %vm3094_vm12 = vcmp.ge.f32.partialorder %v5953_v50, %v3077_v48  ;;  %v6225_v48 = vmul.f32 2.0, %v5961_v57 }
 0x7c9   :  { %v3146_v5 = vsel %vm3144_vm4, %v4287_v58, %v4288_v27 }
 0x7ca   :  { %v3162_v9 = vsel %vm3089_vm5, 4.0, %v3146_v5 }
 0x7cb   :  { %v4281_v59 = vpop.permute.xlu1 %4280 }
 0x7cc   :  { %v4283_v16 = vunpack.i.h.bf16 %v4281_v59  ;;  %v4282_v61 = vunpack.i.l.bf16 %v4281_v59 }
 0x7ce   :  { %v3145_v0 = vsel %vm3144_vm4, %v4282_v61, %v4283_v16 }
 0x7cf   :  { %v3161_v32 = vsel %vm3088_vm6, 4.0, %v3145_v0 }
 0x7d0   :  { %v4320_v3 = vpack.i.bf16 %v3162_v9, %v3161_v32 }
 0x7d2   :  { %4321 = vrot.lane.b32.xlu0 %v4320_v3, %s4862_s7 }
 0x7da   :  { %v4296_v33 = vpop.permute.xlu0 %4295  ;;  %v4291_v60 = vpop.permute.xlu1 %4290 }
 0x7db   :  { %v4298_v62 = vunpack.i.h.bf16 %v4296_v33  ;;  %v4297_v29 = vunpack.i.l.bf16 %v4296_v33  ;;  %v4293_v37 = vunpack.i.h.bf16 %v4291_v60  ;;  %v4292_v34 = vunpack.i.l.bf16 %v4291_v60 }
 0x7dd   :  { %v3148_v22 = vsel %vm3144_vm4, %v4297_v29, %v4298_v62  ;;  %v3147_v36 = vsel %vm3144_vm4, %v4292_v34, %v4293_v37  ;;  %v6228_v29 = vmul.f32 2.0, %v5953_v50  ;;  %v6241_v37 = vmul.f32 2.0, %v5825_v52 }
 0x7de   :  { %v3163_v39 = vsel %vm3090_vm8, 4.0, %v3147_v36  ;;  %v3164_v8 = vsel %vm3091_vm7, 4.0, %v3148_v22 }
 0x7df   :  { %v4325_v51 = vpack.i.bf16 %v3164_v8, %v3163_v39 }
 0x7e1   :  { %4326 = vrot.lane.b32.xlu1 %v4325_v51, %s4862_s7 }
 0x811   :  { %v4306_v54 = vpop.permute.xlu0 %4305  ;;  %v4301_v4 = vpop.permute.xlu1 %4300 }
 0x812   :  { %v4308_v26 = vunpack.i.h.bf16 %v4306_v54  ;;  %v4307_v40 = vunpack.i.l.bf16 %v4306_v54  ;;  %v4303_v13 = vunpack.i.h.bf16 %v4301_v4  ;;  %v4302_v27 = vunpack.i.l.bf16 %v4301_v4 }
 0x814   :  { %v3150_v14 = vsel %vm3144_vm4, %v4307_v40, %v4308_v26  ;;  %v3149_v45 = vsel %vm3144_vm4, %v4302_v27, %v4303_v13 }
 0x815   :  { %v3166_v58 = vsel %vm3093_vm9, 4.0, %v3150_v14  ;;  %v3165_v59 = vsel %vm3092_vm10, 4.0, %v3149_v45 }
 0x816   :  { %v4316_v5 = vpop.permute.xlu0 %4315  ;;  %v4311_v16 = vpop.permute.xlu1 %4310  ;;  %v4330_v61 = vpack.i.bf16 %v3166_v58, %v3165_v59 }
 0x817   :  { %v4318_v0 = vunpack.i.h.bf16 %v4316_v5  ;;  %v4317_v32 = vunpack.i.l.bf16 %v4316_v5  ;;  %v4313_v9 = vunpack.i.h.bf16 %v4311_v16  ;;  %v4312_v3 = vunpack.i.l.bf16 %v4311_v16 }
 0x818   :  { %4331 = vrot.lane.b32.xlu0 %v4330_v61, %s4862_s7 }
 0x819   :  { %v3152_v25 = vsel %vm3144_vm4, %v4317_v32, %v4318_v0  ;;  %v3151_v12 = vsel %vm3144_vm4, %v4312_v3, %v4313_v9 }
 0x81a   :  { %v3168_v33 = vsel %vm3095_vm11, 4.0, %v3152_v25  ;;  %v3167_v60 = vsel %vm3094_vm12, 4.0, %v3151_v12 }
 0x81b   :  { %v4335_v62 = vpack.i.bf16 %v3168_v33, %v3167_v60 }
 0x81c   :  { %2491 = vperm.xlu0 %4340, %v6099_v28   ;;  %v2570_v28 = vrot.slane %v2534_v31, %v2153_v55  ;;  %v2546_v55 = vrot.slane %v2534_v31, %v2149_v47 }
 0x81d   :  { %4336 = vrot.lane.b32.xlu1 %v4335_v62, %s4862_s7 }
 0x820   :  { %2503 = vperm.xlu0 %4340, %v6118_v19   ;;  %v6235_v19 = vadd.f32 -0.5, %v6225_v48 }
 0x821   :  { %2495 = vperm.xlu1 %4319, %v6111_v21   ;;  %v6238_v21 = vadd.f32 -0.5, %v6228_v29 }
 0x824   :  { %2511 = vperm.xlu0 %4340, %v6165_v2  }
 0x825   :  { %2499 = vperm.xlu1 %4319, %v6094_v15   ;;  %v6254_v15 = vadd.f32 -0.5, %v6241_v37 }
 0x827   :  { %v2468_v34 = vpop.permute.xlu0 %2467  ;;  %v2463_v22 = vpop.permute.xlu1 %2462 }
 0x828   :  { %v6244_v36 = vadd.f32 %v6235_v19, %v2468_v34  ;;  %v6247_v2 = vadd.f32 %v6238_v21, %v2463_v22  ;;  %2572 = vrot.lane.b32.xlu0 %v2570_v28, %s4874_s6 }
 0x829   :  { %2507 = vperm.xlu1 %4319, %v6106_v7  }
 0x82b   :  { %v3170_v51 = vpop.permute.xlu0 %3169 }
 0x82c   :  { %v2488_v39 = vpop.permute.xlu1 %2487  ;;  %3243 = vrot.lane.b32.xlu0 %v6005_v18, %s4876_s9  ;;  %vm3193_vm13 = vcmp.ge.f32.partialorder %v5825_v52, %v3170_v51 }
 0x82d   :  { %v6259_v8 = vadd.f32 %v6254_v15, %v2488_v39  ;;  %2548 = vrot.lane.b32.xlu1 %v2546_v55, %s4876_s9  ;;  %v2415_v39 = vmul.f32 2.0, %v5836_v30 }
 0x82f   :  { %v3174_v35 = vpop.permute.xlu0 %3173  ;;  %v6306_v51 = vadd.f32 -0.5, %v2415_v39 }
 0x830   :  { %3247 = vrot.lane.b32.xlu0 %v6017_v24, %s4876_s9  ;;  %v3172_v7 = vpop.permute.xlu1 %3171  ;;  %vm3195_vm15 = vcmp.ge.f32.partialorder %v5869_v56, %v3174_v35  ;;  %v2418_v35 = vmul.f32 2.0, %v5915_v11 }
 0x831   :  { %3241 = vrot.lane.b32.xlu1 %v6000_v10, %s4876_s9  ;;  %vm3194_vm14 = vcmp.ge.f32.partialorder %v5836_v30, %v3172_v7 }
 0x833   :  { %v3178_v47 = vpop.permute.xlu0 %3177 }
 0x834   :  { %3251 = vrot.lane.b32.xlu0 %v6027_v1, %s4876_s9  ;;  %v3176_v4 = vpop.permute.xlu1 %3175  ;;  %vm3197_vm1 = vcmp.ge.f32.partialorder %v5915_v11, %v3178_v47  ;;  %v2416_v47 = vmul.f32 2.0, %v5869_v56 }
 0x835   :  { %3245 = vrot.lane.b32.xlu1 %v6012_v46, %s4876_s9  ;;  %vm3196_vm0 = vcmp.ge.f32.partialorder %v5879_v63, %v3176_v4  ;;  %v6313_v4 = vadd.f32 -0.5, %v2418_v35 }
 0x837   :  { %v3182_v54 = vpop.permute.xlu0 %3181 }
 0x838   :  { %3255 = vrot.lane.b32.xlu0 %v6039_v44, %s4876_s9  ;;  %v3180_v27 = vpop.permute.xlu1 %3179  ;;  %vm3199_vm3 = vcmp.ge.f32.partialorder %v5953_v50, %v3182_v54 }
 0x839   :  { %3249 = vrot.lane.b32.xlu1 %v6033_v43, %s4876_s9  ;;  %vm3198_vm2 = vcmp.ge.f32.partialorder %v5924_v38, %v3180_v27 }
 0x83c   :  { %3313 = vrot.lane.b32.xlu0 %v6000_v10, %s4877_s14  ;;  %v3184_v45 = vpop.permute.xlu1 %3183 }
 0x83d   :  { %3253 = vrot.lane.b32.xlu1 %v6037_v23, %s4876_s9  ;;  %vm3200_vm4 = vcmp.ge.f32.partialorder %v5961_v57, %v3184_v45 }
 0x840   :  { %3317 = vrot.lane.b32.xlu0 %v6012_v46, %s4877_s14 }
 0x841   :  { %2515 = vperm.xlu1 %4319, %v6160_v42  }
 0x844   :  { %3321 = vrot.lane.b32.xlu0 %v6033_v43, %s4877_s14  ;;  %v4322_v26 = vpop.permute.xlu0 %4321 }
 0x845   :  { %3315 = vrot.lane.b32.xlu1 %v6005_v18, %s4877_s14  ;;  %v4324_v40 = vunpack.i.h.bf16 %v4322_v26  ;;  %v4323_v13 = vunpack.i.l.bf16 %v4322_v26  ;;  %v2417_v26 = vmul.f32 2.0, %v5879_v63 }
 0x847   :  { %v3234_v14 = vsel %vm3194_vm14, 3.0, %v4324_v40  ;;  %v3233_v42 = vsel %vm3193_vm13, 3.0, %v4323_v13  ;;  %v6316_v40 = vadd.f32 -0.5, %v2416_v47  ;;  %v6324_v45 = vadd.f32 -0.5, %v2417_v26 }
 0x848   :  { %v4341_v58 = vpack.i.bf16 %v3234_v14, %v3233_v42  ;;  %vm3681_vm13 = vcmask 97280  }
 0x849   :  { %3319 = vrot.lane.b32.xlu1 %v6017_v24, %s4877_s14 }
 0x84d   :  { %3323 = vrot.lane.b32.xlu1 %v6027_v1, %s4877_s14 }
 0x851   :  { %4342 = vrot.lane.b32.xlu1 %v4341_v58, %s4862_s7  ;;  %v2419_v58 = vmul.f32 2.0, %v5924_v38 }
 0x853   :  { %v4327_v59 = vpop.permute.xlu1 %4326 }
 0x854   :  { %v4329_v5 = vunpack.i.h.bf16 %v4327_v59  ;;  %v4328_v16 = vunpack.i.l.bf16 %v4327_v59 }
 0x856   :  { %v3236_v61 = vsel %vm3196_vm0, 3.0, %v4329_v5  ;;  %v3235_v0 = vsel %vm3195_vm15, 3.0, %v4328_v16 }
 0x857   :  { %v4346_v32 = vpack.i.bf16 %v3236_v61, %v3235_v0  ;;  %v6333_v0 = vadd.f32 -0.5, %v2419_v58 }
 0x859   :  { %4347 = vrot.lane.b32.xlu0 %v4346_v32, %s4862_s7 }
 0x88a   :  { %v4332_v9 = vpop.permute.xlu0 %4331 }
 0x88b   :  { %v4334_v3 = vunpack.i.h.bf16 %v4332_v9  ;;  %v4333_v25 = vunpack.i.l.bf16 %v4332_v9 }
 0x88d   :  { %v3238_v12 = vsel %vm3198_vm2, 3.0, %v4334_v3  ;;  %v3237_v33 = vsel %vm3197_vm1, 3.0, %v4333_v25  ;;  %v2535_v25 = vmul.f32 %v6241_v37, %v6241_v37 }
 0x88e   :  { %v4351_v60 = vpack.i.bf16 %v3238_v12, %v3237_v33  ;;  %v2536_v12 = vmul.f32 %v2415_v39, %v2415_v39 }
 0x88f   :  { %v4337_v62 = vpop.permute.xlu1 %4336 }
 0x890   :  { %v4339_v31 = vunpack.i.h.bf16 %v4337_v62  ;;  %v4338_v28 = vunpack.i.l.bf16 %v4337_v62  ;;  %4352 = vrot.lane.b32.xlu1 %v4351_v60, %s4862_s7  ;;  %v2538_v60 = vmul.f32 %v2417_v26, %v2417_v26 }
 0x892   :  { %v3240_v34 = vsel %vm3200_vm4, 3.0, %v4339_v31  ;;  %v3239_v22 = vsel %vm3199_vm3, 3.0, %v4338_v28 }
 0x893   :  { %v4356_v55 = vpack.i.bf16 %v3240_v34, %v3239_v22 }
 0x894   :  { %3327 = vrot.lane.b32.xlu1 %v6039_v44, %s4877_s14 }
 0x895   :  { %4357 = vrot.lane.b32.xlu0 %v4356_v55, %s4862_s7 }
 0x899   :  { %3325 = vrot.lane.b32.xlu0 %v6037_v23, %s4877_s14 }
 0x89b   :  { %v2492_v7 = vpop.permute.xlu0 %2491 }
 0x89c   :  { %v6311_v54 = vadd.f32 %v6306_v51, %v2492_v7 }
 0x89f   :  { %v2504_v13 = vpop.permute.xlu0 %2503 }
 0x8a0   :  { %v6319_v27 = vadd.f32 %v6313_v4, %v2504_v13  ;;  %v2496_v14 = vpop.permute.xlu1 %2495 }
 0x8a1   :  { %v6322_v42 = vadd.f32 %v6316_v40, %v2496_v14  ;;  %v2540_v14 = vmul.f32 %v2419_v58, %v2419_v58 }
 0x8a3   :  { %v2512_v59 = vpop.permute.xlu0 %2511 }
 0x8a4   :  { %v6328_v5 = vadd.f32 %v6238_v21, %v2512_v59  ;;  %v2500_v16 = vpop.permute.xlu1 %2499  ;;  %v2537_v21 = vmul.f32 %v2416_v47, %v2416_v47  ;;  %v2539_v59 = vmul.f32 %v2418_v35, %v2418_v35 }
 0x8a5   :  { %v6331_v61 = vadd.f32 %v6324_v45, %v2500_v16 }
 0x8a6   :  { %6706 = vst [vmem:[#allocation5_spill] sm:$0xff] %v6328_v5 }
 0x8a7   :  { %v6335_v32 = vpop.permute.xlu0 %2572 }
 0x8a8   :  { %v2508_v9 = vpop.permute.xlu1 %2507 }
 0x8a9   :  { %v6338_v3 = vadd.f32 %v6333_v0, %v2508_v9 }
 0x8ab   :  { %6707 = vst [vmem:[#allocation6_spill] sm:$0xff] %v6338_v3  ;;  %v6342_v62 = vpop.permute.xlu0 %3243 }
 0x8ac   :  { %v2549_v33 = vpop.permute.xlu1 %2548  ;;  %vm3266_vm5 = vcmp.ge.f32.partialorder %v5836_v30, %v6342_v62 }
 0x8ad   :  { %v2552_v31 = vmul.f32 %v2549_v33, %v2536_v12  ;;  %v2551_v28 = vmul.f32 %v2549_v33, %v2535_v25  ;;  %v2554_v55 = vmul.f32 %v2549_v33, %v2538_v60  ;;  %v2553_v7 = vmul.f32 %v2549_v33, %v2537_v21 }
 0x8ae   :  { %v2556_v26 = vmul.f32 %v2549_v33, %v2540_v14  ;;  %v2555_v16 = vmul.f32 %v2549_v33, %v2539_v59 }
 0x8af   :  { %v2560_v34 = vmul.f32 0.5, %v2552_v31  ;;  %v2559_v22 = vmul.f32 0.5, %v2551_v28  ;;  %v6348_v37 = vpop.permute.xlu0 %3247  ;;  %v2562_v39 = vmul.f32 0.5, %v2554_v55  ;;  %v2561_v47 = vmul.f32 0.5, %v2553_v7 }
 0x8b0   :  { %v6344_v13 = vpop.permute.xlu1 %3241  ;;  %v2542_v31 = vmul.f32 %v6225_v48, %v6225_v48  ;;  %v2541_v28 = vmul.f32 %v6228_v29, %v6228_v29  ;;  %v2564_v35 = vmul.f32 0.5, %v2556_v26  ;;  %v2563_v58 = vmul.f32 0.5, %v2555_v16 }
 0x8b1   :  { %3499 = vrot.lane.b32.xlu0 %v2560_v34, %s4864_s3  ;;  %3497 = vrot.lane.b32.xlu1 %v2559_v22, %s4864_s3  ;;  %v2576_v29 = vmul.f32 %v6335_v32, %v2536_v12  ;;  %v2578_v16 = vmul.f32 %v6335_v32, %v2538_v60  ;;  %vm3268_vm6 = vcmp.ge.f32.partialorder %v5879_v63, %v6348_v37 }
 0x8b2   :  { %v2558_v34 = vmul.f32 %v2549_v33, %v2542_v31  ;;  %v2557_v22 = vmul.f32 %v2549_v33, %v2541_v28  ;;  %vm3265_vm7 = vcmp.ge.f32.partialorder %v5825_v52, %v6344_v13 }
 0x8b3   :  { %v6360_v7 = vpop.permute.xlu0 %3251 }
 0x8b4   :  { %v6350_v9 = vpop.permute.xlu1 %3245  ;;  %v2566_v48 = vmul.f32 0.5, %v2558_v34  ;;  %v2565_v5 = vmul.f32 0.5, %v2557_v22  ;;  %v2579_v22 = vmul.f32 %v6335_v32, %v2539_v59  ;;  %vm3270_vm9 = vcmp.ge.f32.partialorder %v5924_v38, %v6360_v7 }
 0x8b5   :  { %3503 = vrot.lane.b32.xlu0 %v2562_v39, %s4864_s3  ;;  %3501 = vrot.lane.b32.xlu1 %v2561_v47, %s4864_s3  ;;  %v2575_v39 = vmul.f32 %v6335_v32, %v2535_v25  ;;  %v2584_v47 = vmul.f32 0.5, %v2576_v29  ;;  %v2586_v25 = vmul.f32 0.5, %v2578_v16  ;;  %vm3267_vm8 = vcmp.ge.f32.partialorder %v5869_v56, %v6350_v9 }
 0x8b6   :  { %v2587_v60 = vmul.f32 0.5, %v2579_v22 }
 0x8b7   :  { %v6370_v33 = vpop.permute.xlu0 %3255  ;;  %v2583_v26 = vmul.f32 0.5, %v2575_v39  ;;  %v2581_v39 = vmul.f32 %v6335_v32, %v2541_v28 }
 0x8b8   :  { %v6358_v55 = vpop.permute.xlu1 %3249  ;;  %vm3272_vm11 = vcmp.ge.f32.partialorder %v5961_v57, %v6370_v33  ;;  %v2473_v33 = vadd.f32 %v6324_v45, %v6174_v49 }
 0x8b9   :  { %3507 = vrot.lane.b32.xlu0 %v2564_v35, %s4864_s3  ;;  %3505 = vrot.lane.b32.xlu1 %v2563_v58, %s4864_s3  ;;  %v2577_v35 = vmul.f32 %v6335_v32, %v2537_v21  ;;  %v2582_v21 = vmul.f32 %v6335_v32, %v2542_v31  ;;  %vm3269_vm10 = vcmp.ge.f32.partialorder %v5915_v11, %v6358_v55 }
 0x8ba   :  { %v2470_v55 = vadd.f32 %v6254_v15, %v6169_v6 }
 0x8bb   :  { %v2585_v12 = vmul.f32 0.5, %v2577_v35  ;;  %v6383_v29 = vpop.permute.xlu0 %3313  ;;  %v2590_v59 = vmul.f32 0.5, %v2582_v21 }
 0x8bc   :  { %v6366_v3 = vpop.permute.xlu1 %3253  ;;  %vm3337_vm2 = vcmp.ge.f32.partialorder %v5825_v52, %v6383_v29 }
 0x8bd   :  { %3511 = vrot.lane.b32.xlu0 %v2566_v48, %s4864_s3  ;;  %3509 = vrot.lane.b32.xlu1 %v2565_v5, %s4864_s3  ;;  %v2580_v5 = vmul.f32 %v6335_v32, %v2540_v14  ;;  %vm3271_vm12 = vcmp.ge.f32.partialorder %v5953_v50, %v6366_v3 }
 0x8bf   :  { %v6393_v14 = vpop.permute.xlu0 %3317 }
 0x8c0   :  { %v2516_v58 = vpop.permute.xlu1 %2515 }
 0x8c1   :  { %v6375_v34 = vadd.f32 %v6235_v19, %v2516_v58  ;;  %3539 = vrot.lane.b32.xlu0 %v2584_v47, %s4864_s3  ;;  %3537 = vrot.lane.b32.xlu1 %v2583_v26, %s4864_s3  ;;  %v2588_v19 = vmul.f32 0.5, %v2580_v5  ;;  %v2589_v26 = vmul.f32 0.5, %v2581_v39 }
 0x8c3   :  { %v6399_v35 = vpop.permute.xlu0 %3321 }
 0x8c4   :  { %v6381_v48 = vpop.permute.xlu1 %3315 }
 0x8c5   :  { %3543 = vrot.lane.b32.xlu0 %v2586_v25, %s4864_s3  ;;  %3541 = vrot.lane.b32.xlu1 %v2585_v12, %s4864_s3  ;;  %vm3338_vm3 = vcmp.ge.f32.partialorder %v5836_v30, %v6381_v48 }
 0x8c8   :  { %v6389_v47 = vpop.permute.xlu1 %3319 }
 0x8c9   :  { %3547 = vrot.lane.b32.xlu0 %v2588_v19, %s4864_s3  ;;  %3545 = vrot.lane.b32.xlu1 %v2587_v60, %s4864_s3  ;;  %vm3340_vm4 = vcmp.ge.f32.partialorder %v5879_v63, %v6389_v47 }
 0x8cb   :  { %v4348_v32 = vpop.permute.xlu0 %4347 }
 0x8cc   :  { %v6397_v16 = vpop.permute.xlu1 %3323  ;;  %v4350_v28 = vunpack.i.h.bf16 %v4348_v32  ;;  %v4349_v58 = vunpack.i.l.bf16 %v4348_v32 }
 0x8cd   :  { %3551 = vrot.lane.b32.xlu0 %v2590_v59, %s4864_s3  ;;  %3549 = vrot.lane.b32.xlu1 %v2589_v26, %s4864_s3 }
 0x8ce   :  { %v3308_v5 = vsel %vm3268_vm6, 2.0, %v4350_v28  ;;  %v3307_v22 = vsel %vm3267_vm8, 2.0, %v4349_v58  ;;  %vm3341_vm6 = vcmp.ge.f32.partialorder %v5915_v11, %v6399_v35 }
 0x8cf   :  { %v4366_v62 = vpack.i.bf16 %v3308_v5, %v3307_v22 }
 0x8d0   :  { %v4343_v31 = vpop.permute.xlu1 %4342 }
 0x8d1   :  { %3435 = vrot.lane.b32.xlu0 %v6005_v18, %s4862_s7  ;;  %3433 = vrot.lane.b32.xlu1 %v6000_v10, %s4862_s7  ;;  %v4345_v25 = vunpack.i.h.bf16 %v4343_v31  ;;  %v4344_v12 = vunpack.i.l.bf16 %v4343_v31 }
 0x8d3   :  { %v3306_v19 = vsel %vm3266_vm5, 2.0, %v4345_v25  ;;  %v3305_v60 = vsel %vm3265_vm7, 2.0, %v4344_v12  ;;  %v2471_v12 = vadd.f32 %v6306_v51, %v6176_v20  ;;  %v2475_v20 = vadd.f32 %v6333_v0, %v6182_v53 }
 0x8d4   :  { %v4361_v21 = vpack.i.bf16 %v3306_v19, %v3305_v60  ;;  %v2478_v19 = vmul.f32 4.0, %v2470_v55  ;;  %v2472_v60 = vadd.f32 %v6316_v40, %v6184_v17  ;;  %vm3339_vm5 = vcmp.ge.f32.partialorder %v5869_v56, %v6393_v14 }
 0x8d5   :  { %3439 = vrot.lane.b32.xlu0 %v6017_v24, %s4862_s7  ;;  %3437 = vrot.lane.b32.xlu1 %v6012_v46, %s4862_s7  ;;  %v2479_v3 = vmul.f32 4.0, %v2471_v12  ;;  %vm3342_vm7 = vcmp.ge.f32.partialorder %v5924_v38, %v6397_v16 }
 0x8d6   :  { %v2480_v51 = vmul.f32 4.0, %v2472_v60 }
 0x8d9   :  { %3443 = vrot.lane.b32.xlu0 %v6027_v1, %s4862_s7  ;;  %3441 = vrot.lane.b32.xlu1 %v6033_v43, %s4862_s7 }
 0x8dd   :  { %3447 = vrot.lane.b32.xlu0 %v6039_v44, %s4862_s7  ;;  %3445 = vrot.lane.b32.xlu1 %v6037_v23, %s4862_s7 }
 0x8e1   :  { %4362 = vrot.lane.b32.xlu0 %v4361_v21, %s4862_s7  ;;  %4367 = vrot.lane.b32.xlu1 %v4366_v62, %s4862_s7 }
 0x902   :  { %v4353_v13 = vpop.permute.xlu1 %4352 }
 0x903   :  { %v4355_v37 = vunpack.i.h.bf16 %v4353_v13  ;;  %v4354_v39 = vunpack.i.l.bf16 %v4353_v13 }
 0x905   :  { %v3310_v9 = vsel %vm3270_vm9, 2.0, %v4355_v37  ;;  %v3309_v59 = vsel %vm3269_vm10, 2.0, %v4354_v39  ;;  %v2481_v39 = vmul.f32 4.0, %v2473_v33 }
 0x906   :  { %v4371_v26 = vpack.i.bf16 %v3310_v9, %v3309_v59  ;;  %v6441_v5 = vpop.permute.xlu1 %3327  ;;  %v2474_v9 = vadd.f32 %v6313_v4, %v6190_v41 }
 0x907   :  { %v4358_v32 = vpop.permute.xlu0 %4357  ;;  %vm3344_vm10 = vcmp.ge.f32.partialorder %v5961_v57, %v6441_v5 }
 0x908   :  { %v4360_v31 = vunpack.i.h.bf16 %v4358_v32  ;;  %v4359_v28 = vunpack.i.l.bf16 %v4358_v32  ;;  %4372 = vrot.lane.b32.xlu0 %v4371_v26, %s4862_s7  ;;  %v2483_v32 = vmul.f32 4.0, %v2475_v20 }
 0x90a   :  { %v3312_v58 = vsel %vm3272_vm11, 2.0, %v4360_v31  ;;  %v3311_v25 = vsel %vm3271_vm12, 2.0, %v4359_v28  ;;  %v2482_v31 = vmul.f32 4.0, %v2474_v9  ;;  %v2529_v9 = vmul.f32 4.0, %v6331_v61 }
 0x90b   :  { %v4376_v7 = vpack.i.bf16 %v3312_v58, %v3311_v25  ;;  %v6443_v22 = vpop.permute.xlu0 %3325  ;;  %v2485_v25 = vmul.f32 4.0, %v6244_v36 }
 0x90c   :  { %vm3343_vm11 = vcmp.ge.f32.partialorder %v5953_v50, %v6443_v22 }
 0x90d   :  { %4377 = vrot.lane.b32.xlu1 %v4376_v7, %s4862_s7  ;;  %v2484_v7 = vmul.f32 4.0, %v6247_v2 }
 0x923   :  { %v3500_v62 = vpop.permute.xlu0 %3499  ;;  %v3498_v21 = vpop.permute.xlu1 %3497 }
 0x924   :  { %v3522_v13 = vsub.f32 %v2479_v3, %v3500_v62  ;;  %v3570_v37 = vadd.f32 %v3500_v62, %v2479_v3  ;;  %v3521_v6 = vsub.f32 %v2478_v19, %v3498_v21  ;;  %v3569_v15 = vadd.f32 %v3498_v21, %v2478_v19 }
 0x925   :  { %v2526_v62 = vmul.f32 4.0, %v6259_v8  ;;  %v2527_v21 = vmul.f32 4.0, %v6311_v54 }
 0x926   :  { %3595 = vrot.lane.b32.xlu1 %v3570_v37, %s4876_s9  ;;  %3593 = vrot.lane.b32.xlu0 %v3569_v15, %s4876_s9 }
 0x927   :  { %v3504_v49 = vpop.permute.xlu0 %3503  ;;  %v3502_v17 = vpop.permute.xlu1 %3501 }
 0x928   :  { %v3524_v40 = vsub.f32 %v2481_v39, %v3504_v49  ;;  %v3572_v45 = vadd.f32 %v3504_v49, %v2481_v39  ;;  %v3523_v59 = vsub.f32 %v2480_v51, %v3502_v17  ;;  %v3571_v26 = vadd.f32 %v3502_v17, %v2480_v51 }
 0x929   :  { %v2528_v51 = vmul.f32 4.0, %v6322_v42  ;;  %v2530_v42 = vmul.f32 4.0, %v6319_v27 }
 0x92a   :  { %3599 = vrot.lane.b32.xlu1 %v3572_v45, %s4876_s9  ;;  %3597 = vrot.lane.b32.xlu0 %v3571_v26, %s4876_s9 }
 0x92b   :  { %v3508_v53 = vpop.permute.xlu0 %3507  ;;  %v3506_v0 = vpop.permute.xlu1 %3505 }
 0x92c   :  { %v3526_v28 = vsub.f32 %v2483_v32, %v3508_v53  ;;  %v3574_v41 = vadd.f32 %v3508_v53, %v2483_v32  ;;  %v3525_v4 = vsub.f32 %v2482_v31, %v3506_v0  ;;  %v3573_v58 = vadd.f32 %v3506_v0, %v2482_v31  ;;  %v6708_v53 = vld [vmem:[#allocation6_spill] sm:$0xff] }
 0x92d   :  { %v2531_v61 = vmul.f32 4.0, %v6708_v53 }
 0x92e   :  { %3603 = vrot.lane.b32.xlu1 %v3574_v41, %s4876_s9  ;;  %3601 = vrot.lane.b32.xlu0 %v3573_v58, %s4876_s9 }
 0x92f   :  { %v3512_v55 = vpop.permute.xlu0 %3511  ;;  %v3510_v12 = vpop.permute.xlu1 %3509 }
 0x930   :  { %v3528_v19 = vsub.f32 %v2485_v25, %v3512_v55  ;;  %v3576_v33 = vadd.f32 %v3512_v55, %v2485_v25  ;;  %v3527_v3 = vsub.f32 %v2484_v7, %v3510_v12  ;;  %v3575_v60 = vadd.f32 %v3510_v12, %v2484_v7  ;;  %v6709_v12 = vld [vmem:[#allocation5_spill] sm:$0xff] }
 0x931   :  { %v2532_v27 = vmul.f32 4.0, %v6709_v12 }
 0x932   :  { %3607 = vrot.lane.b32.xlu1 %v3576_v33, %s4876_s9  ;;  %3605 = vrot.lane.b32.xlu0 %v3575_v60, %s4876_s9  ;;  %v2533_v33 = vmul.f32 4.0, %v6375_v34 }
 0x933   :  { %v3540_v36 = vpop.permute.xlu0 %3539  ;;  %v3538_v2 = vpop.permute.xlu1 %3537 }
 0x934   :  { %v3562_v37 = vsub.f32 %v2527_v21, %v3540_v36  ;;  %v3578_v15 = vadd.f32 %v3540_v36, %v2527_v21  ;;  %v3561_v39 = vsub.f32 %v2526_v62, %v3538_v2  ;;  %v3577_v20 = vadd.f32 %v3538_v2, %v2526_v62 }
 0x936   :  { %3627 = vrot.lane.b32.xlu1 %v3578_v15, %s4876_s9  ;;  %3625 = vrot.lane.b32.xlu0 %v3577_v20, %s4876_s9  ;;  %v6470_v8 = vsel %vm3681_vm13, %v3522_v13, %v3562_v37  ;;  %v6473_v54 = vsel %vm3681_vm13, %v3521_v6, %v3561_v39 }
 0x937   :  { %v3544_v49 = vpop.permute.xlu0 %3543  ;;  %v3542_v17 = vpop.permute.xlu1 %3541 }
 0x938   :  { %v3564_v45 = vsub.f32 %v2529_v9, %v3544_v49  ;;  %v3580_v26 = vadd.f32 %v3544_v49, %v2529_v9  ;;  %v3563_v32 = vsub.f32 %v2528_v51, %v3542_v17  ;;  %v3579_v31 = vadd.f32 %v3542_v17, %v2528_v51 }
 0x939   :  { %v4878_v51 = vmov 0.0  }
 0x93a   :  { %3631 = vrot.lane.b32.xlu1 %v3580_v26, %s4876_s9  ;;  %3629 = vrot.lane.b32.xlu0 %v3579_v31, %s4876_s9  ;;  %v6480_v13 = vsel %vm3681_vm13, %v3524_v40, %v3564_v45  ;;  %v6483_v6 = vsel %vm3681_vm13, %v3523_v59, %v3563_v32 }
 0x93b   :  { %v3548_v0 = vpop.permute.xlu0 %3547  ;;  %v3546_v41 = vpop.permute.xlu1 %3545 }
 0x93c   :  { %v3566_v58 = vsub.f32 %v2531_v61, %v3548_v0  ;;  %v3582_v25 = vadd.f32 %v3548_v0, %v2531_v61  ;;  %v3565_v7 = vsub.f32 %v2530_v42, %v3546_v41  ;;  %v3581_v55 = vadd.f32 %v3546_v41, %v2530_v42 }
 0x93e   :  { %3635 = vrot.lane.b32.xlu1 %v3582_v25, %s4876_s9  ;;  %3633 = vrot.lane.b32.xlu0 %v3581_v55, %s4876_s9  ;;  %v6490_v40 = vsel %vm3681_vm13, %v3526_v28, %v3566_v58  ;;  %v6493_v59 = vsel %vm3681_vm13, %v3525_v4, %v3565_v7 }
 0x93f   :  { %v3552_v60 = vpop.permute.xlu0 %3551  ;;  %v3550_v62 = vpop.permute.xlu1 %3549 }
 0x940   :  { %v3568_v21 = vsub.f32 %v2533_v33, %v3552_v60  ;;  %v3584_v36 = vadd.f32 %v3552_v60, %v2533_v33  ;;  %v3567_v2 = vsub.f32 %v2532_v27, %v3550_v62  ;;  %v3583_v37 = vadd.f32 %v3550_v62, %v2532_v27 }
 0x942   :  { %3639 = vrot.lane.b32.xlu1 %v3584_v36, %s4876_s9  ;;  %3637 = vrot.lane.b32.xlu0 %v3583_v37, %s4876_s9  ;;  %v6498_v34 = vsel %vm3681_vm13, %v3528_v19, %v3568_v21  ;;  %v6501_v15 = vsel %vm3681_vm13, %v3527_v3, %v3567_v2 }
 0x943   :  { %v3436_v28 = vpop.permute.xlu0 %3435  ;;  %v3434_v39 = vpop.permute.xlu1 %3433 }
 0x944   :  { %v6504_v4 = vmul.f32 %v5836_v30, %v3436_v28  ;;  %v6507_v20 = vmul.f32 %v5825_v52, %v3434_v39 }
 0x946   :  { %vm3466_vm14 = vcmp.gt.f32.partialorder %v6504_v4, 0.5  ;;  %vm3465_vm15 = vcmp.gt.f32.partialorder %v6507_v20, 0.5 }
 0x947   :  { %v4002_v9 = vsel %vm3466_vm14, 1.0, %v4878_v51  ;;  %v4001_v19 = vsel %vm3465_vm15, 1.0, %v4878_v51  ;;  %v3440_v49 = vpop.permute.xlu0 %3439  ;;  %v3438_v3 = vpop.permute.xlu1 %3437  ;;  %vm3690_vm14 = vcmask 195584   ;;  %vm3699_vm15 = vcmask 293888  }
 0x948   :  { %v4381_v17 = vpack.i.bf16 %v4002_v9, %v4001_v19  ;;  %v6514_v45 = vmul.f32 %v5879_v63, %v3440_v49  ;;  %v6517_v26 = vmul.f32 %v5869_v56, %v3438_v3 }
 0x94a   :  { %vm3468_vm0 = vcmp.gt.f32.partialorder %v6514_v45, 0.5  ;;  %vm3467_vm1 = vcmp.gt.f32.partialorder %v6517_v26, 0.5  ;;  %4382 = vrot.lane.b32.xlu0 %v4381_v17, %s4876_s9 }
 0x94b   :  { %v4004_v32 = vsel %vm3468_vm0, 1.0, %v4878_v51  ;;  %v4003_v31 = vsel %vm3467_vm1, 1.0, %v4878_v51  ;;  %v3444_v42 = vpop.permute.xlu0 %3443  ;;  %v3442_v53 = vpop.permute.xlu1 %3441  ;;  %vm3708_vm0 = vcmask 392192   ;;  %vm3385_vm1 = vcmp.ge.f32.partialorder %v5825_v52, %v6000_v10 }
 0x94c   :  { %v4386_v61 = vpack.i.bf16 %v4004_v32, %v4003_v31  ;;  %v6536_v29 = vmul.f32 %v5924_v38, %v3444_v42  ;;  %v6539_v48 = vmul.f32 %v5915_v11, %v3442_v53 }
 0x94e   :  { %4387 = vrot.lane.b32.xlu1 %v4386_v61, %s4876_s9  ;;  %vm3470_vm8 = vcmp.gt.f32.partialorder %v6536_v29, 0.5  ;;  %vm3469_vm9 = vcmp.gt.f32.partialorder %v6539_v48, 0.5 }
 0x94f   :  { %v3448_v0 = vpop.permute.xlu0 %3447  ;;  %v3446_v41 = vpop.permute.xlu1 %3445  ;;  %v4006_v3 = vsel %vm3470_vm8, 1.0, %v4878_v51  ;;  %v4005_v35 = vsel %vm3469_vm9, 1.0, %v4878_v51  ;;  %vm3389_vm8 = vcmp.ge.f32.partialorder %v5915_v11, %v6033_v43  ;;  %vm3390_vm9 = vcmp.ge.f32.partialorder %v5924_v38, %v6027_v1 }
 0x950   :  { %v6548_v14 = vmul.f32 %v5961_v57, %v3448_v0  ;;  %v6551_v39 = vmul.f32 %v5953_v50, %v3446_v41  ;;  %v4411_v31 = vpack.i.bf16 %v4006_v3, %v4005_v35 }
 0x952   :  { %vm3472_vm12 = vcmp.gt.f32.partialorder %v6548_v14, 0.5  ;;  %vm3471_vm13 = vcmp.gt.f32.partialorder %v6551_v39, 0.5 }
 0x953   :  { %v4363_v58 = vpop.permute.xlu0 %4362  ;;  %v4368_v25 = vpop.permute.xlu1 %4367  ;;  %v4008_v0 = vsel %vm3472_vm12, 1.0, %v4878_v51  ;;  %v4007_v41 = vsel %vm3471_vm13, 1.0, %v4878_v51 }
 0x954   :  { %v4365_v7 = vunpack.i.h.bf16 %v4363_v58  ;;  %v4364_v55 = vunpack.i.l.bf16 %v4363_v58  ;;  %v4370_v12 = vunpack.i.h.bf16 %v4368_v25  ;;  %v4369_v27 = vunpack.i.l.bf16 %v4368_v25 }
 0x955   :  { %v4416_v5 = vpack.i.bf16 %v4008_v0, %v4007_v41 }
 0x956   :  { %v3378_v33 = vsel %vm3338_vm3, 1.0, %v4365_v7  ;;  %v3377_v60 = vsel %vm3337_vm2, 1.0, %v4364_v55  ;;  %v3380_v62 = vsel %vm3340_vm4, 1.0, %v4370_v12  ;;  %v3379_v36 = vsel %vm3339_vm5, 1.0, %v4369_v27 }
 0x957   :  { %v4391_v21 = vpack.i.bf16 %v3378_v33, %v3377_v60  ;;  %v4396_v2 = vpack.i.bf16 %v3380_v62, %v3379_v36  ;;  %vm3387_vm2 = vcmp.ge.f32.partialorder %v5869_v56, %v6012_v46  ;;  %vm3388_vm3 = vcmp.ge.f32.partialorder %v5879_v63, %v6017_v24 }
 0x958   :  { %vm3717_vm4 = vcmask 490496   ;;  %vm3386_vm5 = vcmp.ge.f32.partialorder %v5836_v30, %v6005_v18 }
 0x959   :  { %4392 = vrot.lane.b32.xlu0 %v4391_v21, %s4862_s7  ;;  %4397 = vrot.lane.b32.xlu1 %v4396_v2, %s4862_s7 }
 0x97a   :  { %v4373_v47 = vpop.permute.xlu0 %4372 }
 0x97b   :  { %v4375_v37 = vunpack.i.h.bf16 %v4373_v47  ;;  %v4374_v28 = vunpack.i.l.bf16 %v4373_v47 }
 0x97d   :  { %v3382_v9 = vsel %vm3342_vm7, 1.0, %v4375_v37  ;;  %v3381_v19 = vsel %vm3341_vm6, 1.0, %v4374_v28  ;;  %vm3726_vm6 = vcmask 588800   ;;  %vm3735_vm7 = vcmask 687104  }
 0x97e   :  { %v4401_v49 = vpack.i.bf16 %v3382_v9, %v3381_v19 }
 0x97f   :  { %v4378_v17 = vpop.permute.xlu1 %4377 }
 0x980   :  { %v4380_v32 = vunpack.i.h.bf16 %v4378_v17  ;;  %v4379_v16 = vunpack.i.l.bf16 %v4378_v17  ;;  %4402 = vrot.lane.b32.xlu0 %v4401_v49, %s4862_s7 }
 0x982   :  { %v3384_v42 = vsel %vm3344_vm10, 1.0, %v4380_v32  ;;  %v3383_v53 = vsel %vm3343_vm11, 1.0, %v4379_v16  ;;  %vm3391_vm10 = vcmp.ge.f32.partialorder %v5953_v50, %v6037_v23  ;;  %vm3392_vm11 = vcmp.ge.f32.partialorder %v5961_v57, %v6039_v44 }
 0x983   :  { %v4406_v61 = vpack.i.bf16 %v3384_v42, %v3383_v53 }
 0x984   :  { %4412 = vrot.lane.b32.xlu0 %v4411_v31, %s4876_s9 }
 0x985   :  { %4407 = vrot.lane.b32.xlu1 %v4406_v61, %s4862_s7  ;;  %s4879_s7 = smov [#allocation2]  }
 0x986   :  { %s3757_s3 = sshll.u32 %s4879_s7, 4  ;;  %s3758_s3 = int_to_ptr.vmem [resolvable:$true] %s3757_s3 }
 0x987   :  { %s4836_s1 = scalar_lea.vmem %s3758_s3, 1024  ;;  %p4841_p1 = scmp.lt.s32.totalorder %s3758_s3, %s3758_s3 }
 0x988   :  { %p4837_p0 = scmp.ne.s32.totalorder %s3758_s3, %s4836_s1  ;;  %p4842_p2 = scmp.lt.s32.totalorder %s4836_s1, %s4836_s1 }
 0x989   :  { %4417 = vrot.lane.b32.xlu1 %v4416_v5, %s4876_s9 }
 0x98a   :  { %p4843_p3 = por %p4842_p2, %p4841_p1 }
 0x98c   :  { %p4844_p4 = pnand %p4843_p3, %p4837_p0 }
 0x998   :  { %v3596_v22 = vpop.permute.xlu1 %3595  ;;  %v3594_v58 = vpop.permute.xlu0 %3593 }
 0x999   :  { %v3692_v19 = vsel %vm3690_vm14, %v6470_v8, %v3596_v22 }
 0x99c   :  { %v3600_v25 = vpop.permute.xlu1 %3599  ;;  %v3598_v7 = vpop.permute.xlu0 %3597 }
 0x99d   :  { %v3694_v49 = vsel %vm3690_vm14, %v6480_v13, %v3600_v25  ;;  %v3693_v3 = vsel %vm3690_vm14, %v6483_v6, %v3598_v7 }
 0x9a0   :  { %v3604_v55 = vpop.permute.xlu1 %3603  ;;  %v3602_v12 = vpop.permute.xlu0 %3601 }
 0x9a1   :  { %v6569_v27 = vsel %vm3690_vm14, %v6490_v40, %v3604_v55  ;;  %v6573_v51 = vsel %vm3690_vm14, %v6493_v59, %v3602_v12 }
 0x9a4   :  { %v3608_v33 = vpop.permute.xlu1 %3607  ;;  %v3606_v60 = vpop.permute.xlu0 %3605 }
 0x9a5   :  { %v6577_v62 = vsel %vm3690_vm14, %v6498_v34, %v3608_v33  ;;  %v6581_v21 = vsel %vm3690_vm14, %v6501_v15, %v3606_v60  ;;  %v3691_v34 = vsel %vm3690_vm14, %v6473_v54, %v3594_v58 }
 0x9a8   :  { %v3626_v36 = vpop.permute.xlu0 %3625  ;;  %v3628_v2 = vpop.permute.xlu1 %3627 }
 0x9a9   :  { %v3701_v35 = vsel %vm3699_vm15, %v3692_v19, %v3628_v2  ;;  %v3700_v17 = vsel %vm3699_vm15, %v3691_v34, %v3626_v36 }
 0x9aa   :  { %v3710_v54 = vsel %vm3708_vm0, %v3701_v35, %v6504_v4  ;;  %v3709_v13 = vsel %vm3708_vm0, %v3700_v17, %v6507_v20 }
 0x9ac   :  { %v3630_v47 = vpop.permute.xlu0 %3629  ;;  %v3632_v37 = vpop.permute.xlu1 %3631 }
 0x9ad   :  { %v3703_v16 = vsel %vm3699_vm15, %v3694_v49, %v3632_v37  ;;  %v3702_v8 = vsel %vm3699_vm15, %v3693_v3, %v3630_v47 }
 0x9ae   :  { %v3712_v31 = vsel %vm3708_vm0, %v3703_v16, %v6514_v45  ;;  %v3711_v42 = vsel %vm3708_vm0, %v3702_v8, %v6517_v26 }
 0x9b0   :  { %v3634_v40 = vpop.permute.xlu0 %3633  ;;  %v3636_v28 = vpop.permute.xlu1 %3635 }
 0x9b1   :  { %v3705_v37 = vsel %vm3699_vm15, %v6569_v27, %v3636_v28  ;;  %v3704_v19 = vsel %vm3699_vm15, %v6573_v51, %v3634_v40 }
 0x9b2   :  { %v3714_v27 = vsel %vm3708_vm0, %v3705_v37, %v6536_v29  ;;  %v3713_v51 = vsel %vm3708_vm0, %v3704_v19, %v6539_v48 }
 0x9b4   :  { %v6583_v9 = vpop.permute.xlu0 %3637  ;;  %v6585_v59 = vpop.permute.xlu1 %3639 }
 0x9b5   :  { %v3707_v35 = vsel %vm3699_vm15, %v6577_v62, %v6585_v59  ;;  %v3706_v29 = vsel %vm3699_vm15, %v6581_v21, %v6583_v9 }
 0x9b6   :  { %v3716_v21 = vsel %vm3708_vm0, %v3707_v35, %v6548_v14  ;;  %v3715_v9 = vsel %vm3708_vm0, %v3706_v29, %v6551_v39 }
 0x9bc   :  { %v4383_v15 = vpop.permute.xlu0 %4382 }
 0x9bd   :  { %v4385_v41 = vunpack.i.h.bf16 %v4383_v15  ;;  %v4384_v5 = vunpack.i.l.bf16 %v4383_v15 }
 0x9c0   :  { %v4388_v32 = vpop.permute.xlu1 %4387 }
 0x9c1   :  { %v4390_v4 = vunpack.i.h.bf16 %v4388_v32  ;;  %v4389_v25 = vunpack.i.l.bf16 %v4388_v32 }
 0x9cb   :  { %v4393_v6 = vpop.permute.xlu0 %4392  ;;  %v4398_v53 = vpop.permute.xlu1 %4397 }
 0x9cc   :  { %v4395_v61 = vunpack.i.h.bf16 %v4393_v6  ;;  %v4394_v0 = vunpack.i.l.bf16 %v4393_v6  ;;  %v4400_v22 = vunpack.i.h.bf16 %v4398_v53  ;;  %v4399_v58 = vunpack.i.l.bf16 %v4398_v53 }
 0x9ce   :  { %v3426_v20 = vsel %vm3386_vm5, 0.0, %v4395_v61  ;;  %v3425_v45 = vsel %vm3385_vm1, 0.0, %v4394_v0  ;;  %v3428_v26 = vsel %vm3388_vm3, 0.0, %v4400_v22  ;;  %v3427_v7 = vsel %vm3387_vm2, 0.0, %v4399_v58 }
 0x9cf   :  { %v3719_v55 = vsel %vm3717_vm4, %v3710_v54, %v3426_v20  ;;  %v3718_v12 = vsel %vm3717_vm4, %v3709_v13, %v3425_v45  ;;  %v3721_v33 = vsel %vm3717_vm4, %v3712_v31, %v3428_v26  ;;  %v3720_v30 = vsel %vm3717_vm4, %v3711_v42, %v3427_v7 }
 0x9d0   :  { %v3727_v18 = vsel %vm3726_vm6, %v3718_v12, %v4384_v5  ;;  %v3728_v52 = vsel %vm3726_vm6, %v3719_v55, %v4385_v41  ;;  %v3730_v10 = vsel %vm3726_vm6, %v3721_v33, %v4390_v4  ;;  %v3729_v63 = vsel %vm3726_vm6, %v3720_v30, %v4389_v25 }
 0x9d1   :  { %v3736_v24 = vsel %vm3735_vm7, %v3727_v18, 0.0  ;;  %v3737_v56 = vsel %vm3735_vm7, %v3728_v52, 0.0  ;;  %v3739_v46 = vsel %vm3735_vm7, %v3730_v10, 0.0  ;;  %v3738_v60 = vsel %vm3735_vm7, %v3729_v63, 0.0 }
 0x9d2   :  { %3744 = vst [vmem:[#allocation2] sm:$0xff] %v3736_v24  ;;  %3745 = vst [vmem:[#allocation2 + $0x8] sm:$0xff] %v3737_v56 }
 0x9d3   :  { %3747 = vst [vmem:[#allocation2 + $0x18] sm:$0xff] %v3739_v46  ;;  %3746 = vst [vmem:[#allocation2 + $0x10] sm:$0xff] %v3738_v60 }
 0x9f2   :  { %v4403_v36 = vpop.permute.xlu0 %4402 }
 0x9f3   :  { %v4405_v2 = vunpack.i.h.bf16 %v4403_v36  ;;  %v4404_v47 = vunpack.i.l.bf16 %v4403_v36 }
 0x9f5   :  { %v3430_v34 = vsel %vm3390_vm9, 0.0, %v4405_v2  ;;  %v3429_v15 = vsel %vm3389_vm8, 0.0, %v4404_v47 }
 0x9f6   :  { %v4413_v49 = vpop.permute.xlu0 %4412  ;;  %v3723_v38 = vsel %vm3717_vm4, %v3714_v27, %v3430_v34  ;;  %v3722_v1 = vsel %vm3717_vm4, %v3713_v51, %v3429_v15 }
 0x9f7   :  { %v4415_v40 = vunpack.i.h.bf16 %v4413_v49  ;;  %v4414_v11 = vunpack.i.l.bf16 %v4413_v49  ;;  %v4408_v43 = vpop.permute.xlu1 %4407 }
 0x9f8   :  { %v4410_v28 = vunpack.i.h.bf16 %v4408_v43  ;;  %v4409_v3 = vunpack.i.l.bf16 %v4408_v43 }
 0x9f9   :  { %v3731_v17 = vsel %vm3726_vm6, %v3722_v1, %v4414_v11  ;;  %v3732_v48 = vsel %vm3726_vm6, %v3723_v38, %v4415_v40 }
 0x9fa   :  { %v3740_v32 = vsel %vm3735_vm7, %v3731_v17, 0.0  ;;  %v3741_v16 = vsel %vm3735_vm7, %v3732_v48, 0.0  ;;  %v3432_v8 = vsel %vm3392_vm11, 0.0, %v4410_v28  ;;  %v3431_v62 = vsel %vm3391_vm10, 0.0, %v4409_v3 }
 0x9fb   :  { %3748 = vst [vmem:[#allocation2 + $0x20] sm:$0xff] %v3740_v32  ;;  %3749 = vst [vmem:[#allocation2 + $0x28] sm:$0xff] %v3741_v16  ;;  %v4418_v59 = vpop.permute.xlu1 %4417  ;;  %v3725_v57 = vsel %vm3717_vm4, %v3716_v21, %v3432_v8  ;;  %v3724_v44 = vsel %vm3717_vm4, %v3715_v9, %v3431_v62 }
 0x9fc   :  { %v4420_v54 = vunpack.i.h.bf16 %v4418_v59  ;;  %v4419_v13 = vunpack.i.l.bf16 %v4418_v59 }
 0x9fe   :  { %v3733_v50 = vsel %vm3726_vm6, %v3724_v44, %v4419_v13  ;;  %v3734_v23 = vsel %vm3726_vm6, %v3725_v57, %v4420_v54 }
 0x9ff   :  { %v3742_v6 = vsel %vm3735_vm7, %v3733_v50, 0.0  ;;  %v3743_v31 = vsel %vm3735_vm7, %v3734_v23, 0.0 }
 0xa00   :  { %3750 = vst [vmem:[#allocation2 + $0x30] sm:$0xff] %v3742_v6  ;;  %3751 = vst [vmem:[#allocation2 + $0x38] sm:$0xff] %v3743_v31 }
 0xa01   :  { %4847 = shalt.err (!%p4844_p4)
}
 0xa02   :  { %s4848_s17 = scalar_lea.hbm %s6705_s10, 1024 }
 0xa03   :  { %p4849_p5 = scmp.ne.s32.totalorder %s6705_s10, %s4848_s17  ;;  %p4852_p6 = scmp.lt.u32.totalorder %s4848_s17, %s6705_s10 }
 0xa05   :  { %p4854_p7 = pnand %p4852_p6, %p4849_p5 }
 0xa07   :  { %4857 = shalt.err (!%p4854_p7)
}
 0xa08   :  { %s4880_s0 = smov 128   ;;  %s4881_s21 = smov 8  }
 0xa09   :  { %3763 = dma.vmem_to_hbm [thread:$0]  %s3758_s3, 1024, %s6705_s10, [#allocation3], %s4880_s0, %s4880_s0, %s4881_s21  }
 0xa0a   :  { %4858 = dma.done.wait [#allocation3], 1024  }
 0xa0b   :  { %4859 = vsyncadd [#allocation3], 4294966272 }
 0xa0c   :  { %3767 = vsyncpa [#allocation3], 1 }

</bundles_post_ra>
